<compile_context>
chip_gen: v7x
topology: tpu7x:2x2x1
jax: 0.10.0
libtpu: 0.0.40
codegen_flags: <defaults>
</compile_context>

<pallas_src>
import math

import jax
import jax.numpy as jnp
from jax.experimental import pallas as pl
from jax.experimental.pallas import tpu as pltpu

IN_FEATURES = 4096
HIDDEN = 256


def _voxelnet_head_kernel(x_ref, w1_ref, b1_ref, w2_ref, b2_ref, w3_ref, b3_ref,
                          o_ref):
    # In-VMEM f32 -> bf16 cast of the feature tile (VPU; hidden under DMA/MXU).
    x = x_ref[...].astype(jnp.bfloat16)
    # fc1 + ReLU  (bf16 x bf16 -> f32 accumulate on the MXU)
    h1 = jnp.dot(x, w1_ref[...], preferred_element_type=jnp.float32)
    h1 = jnp.maximum(h1 + b1_ref[...], 0.0)
    # fc2 + ReLU
    h2 = jnp.dot(h1.astype(jnp.bfloat16), w2_ref[...],
                 preferred_element_type=jnp.float32)
    h2 = jnp.maximum(h2 + b2_ref[...], 0.0)
    # Dropout(p=0.5) in eval mode == identity.
    # fc3
    y = jnp.dot(h2.astype(jnp.bfloat16), w3_ref[...],
                preferred_element_type=jnp.float32)
    y = y + b3_ref[...]
    # F.normalize(y, p=2, dim=1): y / max(||y||, 1e-12) == y * rsqrt(max(ss, 1e-24))
    # rsqrt is a single EUP op; the broadcast multiply rides the VPU.
    ss = jnp.sum(y * y, axis=-1, keepdims=True)
    o_ref[...] = (y * jax.lax.rsqrt(jnp.maximum(ss, 1e-24))).astype(o_ref.dtype)


def _num_tensorcores():
    """Best-effort TensorCores-per-chip (v7x: 2; v5e/v6e: 1). Defaults to 1."""
    try:
        get_info = getattr(pltpu, "get_tpu_info", None)
        if get_info is not None:
            info = get_info()
            for name in ("num_cores", "num_tensorcores", "tensorcore_count",
                         "cores_per_chip", "num_cores_per_chip"):
                n = getattr(info, name, None)
                if isinstance(n, int) and n > 0:
                    return n
    except Exception:
        pass
    try:
        n = getattr(jax.devices()[0], "num_cores", None)
        if isinstance(n, int) and n > 0:
            return n
    except Exception:
        pass
    return 1


def _pick_batch_tile(batch, n_cores):
    """Rows per grid step.

    * Very small batches: a single tile (the weight DMA dominates; splitting
      would just re-DMA ~2.3 MiB of weights per core for no gain).
    * Multi-TC chips (v7x): once batch >= 64, force >= n_cores grid steps so
      every TensorCore gets work under dimension_semantics=("parallel",).
    * Single-TC chips (v5e/v6e): biggest tile up to 512 rows (single full-batch
      tile for batches <= 512); never the old 128-row tiles.
    Tiles are multiples of 16 rows (bf16 vreg sublane packing).
    """
    padded = max(16, ((batch + 15) // 16) * 16)
    max_tile = 512  # 8 MiB f32 x-tile; ~21.7 MiB total with default double-buffering
    if n_cores > 1 and padded >= 64:
        per_core = -(-padded // n_cores)          # ceil
        tile = ((per_core + 15) // 16) * 16
        return min(max_tile, tile)
    return min(padded, max_tile)


def voxelnet_head(x, params):
    """x: (B, 4096) float32 features from the (untranslated) pretrain backbone."""
    w1, b1, w2, b2, w3, b3 = params
    B, F = x.shape
    assert F == IN_FEATURES

    tile = _pick_batch_tile(B, _num_tensorcores())
    grid = (pl.cdiv(B, tile),)

    def row_map(i):
        return (i, 0)

    def whole(i):
        # Constant block index -> weights/biases are DMA'd once and remain
        # VMEM-resident across all grid steps.
        return (0, 0)

    return pl.pallas_call(
        _voxelnet_head_kernel,
        out_shape=jax.ShapeDtypeStruct((B, HIDDEN), jnp.float32),
        grid=grid,
        in_specs=[
            pl.BlockSpec((tile, IN_FEATURES), row_map),   # x tile (f32, cast in VMEM)
            pl.BlockSpec((IN_FEATURES, HIDDEN), whole),   # w1 (bf16, ~2 MiB)
            pl.BlockSpec((1, HIDDEN), whole),             # b1 (f32)
            pl.BlockSpec((HIDDEN, HIDDEN), whole),        # w2 (bf16)
            pl.BlockSpec((1, HIDDEN), whole),             # b2 (f32)
            pl.BlockSpec((HIDDEN, HIDDEN), whole),        # w3 (bf16)
            pl.BlockSpec((1, HIDDEN), whole),             # b3 (f32)
        ],
        out_specs=pl.BlockSpec((tile, HIDDEN), row_map),  # lane-dense (256) store
        compiler_params=pltpu.CompilerParams(
            dimension_semantics=("parallel",)),
    )(x, w1, b1, w2, b2, w3, b3)


def init_params(key):
    """Deterministic init mimicking PyTorch nn.Linear default (uniform +-1/sqrt(fan_in)).

    Weights are stored transposed (in_features, out_features) in bfloat16;
    biases stay float32 (added in the f32 elementwise path).
    """
    def linear(k, fan_in, fan_out):
        kw, kb = jax.random.split(k)
        bound = 1.0 / math.sqrt(fan_in)
        w = jax.random.uniform(kw, (fan_in, fan_out), jnp.float32, -bound, bound)
        b = jax.random.uniform(kb, (1, fan_out), jnp.float32, -bound, bound)
        return w.astype(jnp.bfloat16), b

    k1, k2, k3 = jax.random.split(key, 3)
    w1, b1 = linear(k1, IN_FEATURES, HIDDEN)
    w2, b2 = linear(k2, HIDDEN, HIDDEN)
    w3, b3 = linear(k3, HIDDEN, HIDDEN)
    return (w1, b1, w2, b2, w3, b3)


def reference(x, params):
    """Pure-JAX reference of the same forward pass (same bf16 matmul inputs,
    f32 accumulation), so it tracks the kernel's numerics."""
    w1, b1, w2, b2, w3, b3 = params

    def mm(a, w):
        return jnp.dot(a.astype(jnp.bfloat16), w,
                       preferred_element_type=jnp.float32)

    h = jnp.maximum(mm(x, w1) + b1, 0.0)
    h = jnp.maximum(mm(h, w2) + b2, 0.0)
    y = mm(h, w3) + b3
    norm = jnp.sqrt(jnp.sum(y * y, axis=1, keepdims=True))
    return y / jnp.maximum(norm, 1e-12)


if __name__ == "__main__":
    key = jax.random.PRNGKey(0)
    k_param, k_x = jax.random.split(key)

    params = init_params(k_param)

    # batch=2: tiny single-tile latency path (partial block, masked store).
    # batch=100: non-multiple-of-tile batch; exercises implicit partial-block
    # masking and (on 2-TC parts) a multi-step "parallel" grid.
    for batch in (2, 100):
        kx = jax.random.fold_in(k_x, batch)
        # Features the pretrained backbone would emit for a voxel batch.
        x = jax.random.normal(kx, (batch, IN_FEATURES), jnp.float32)

        out = jax.block_until_ready(voxelnet_head(x, params))
        ref = reference(x, params)

        assert out.shape == (batch, HIDDEN)
        assert jnp.allclose(out, ref, atol=2e-3, rtol=2e-3), "mismatch vs reference"
        # Each row should be (approximately) unit L2 norm (normalize runs in f32).
        assert jnp.allclose(jnp.linalg.norm(out, axis=1), 1.0, atol=1e-4)

    print("KERNEL_OK")
</pallas_src>

<mosaic_0001>
module attributes {stable_mosaic.version = 11 : i64} {
  func.func @_voxelnet_head_kernel(%arg0: i32, %arg1: memref<16x4096xf32, #tpu.memory_space<vmem>>, %arg2: memref<4096x256xbf16, #tpu.memory_space<vmem>>, %arg3: memref<1x256xf32, #tpu.memory_space<vmem>>, %arg4: memref<256x256xbf16, #tpu.memory_space<vmem>>, %arg5: memref<1x256xf32, #tpu.memory_space<vmem>>, %arg6: memref<256x256xbf16, #tpu.memory_space<vmem>>, %arg7: memref<1x256xf32, #tpu.memory_space<vmem>>, %arg8: memref<16x256xf32, #tpu.memory_space<vmem>>) attributes {dimension_semantics = [#tpu.dimension_semantics<parallel>], iteration_bounds = array<i64: 1>, scalar_prefetch = 0 : i64, scratch_operands = 0 : i64, tpu.core_type = #tpu.core_type<tc>, window_params = [{transform_indices = @transform_0, window_bounds = array<i64: 16, 4096>}, {pipeline_mode = #tpu.pipeline_mode<synchronous>, transform_indices = @transform_1, window_bounds = array<i64: 4096, 256>}, {pipeline_mode = #tpu.pipeline_mode<synchronous>, transform_indices = @transform_2, window_bounds = array<i64: 1, 256>}, {pipeline_mode = #tpu.pipeline_mode<synchronous>, transform_indices = @transform_3, window_bounds = array<i64: 256, 256>}, {pipeline_mode = #tpu.pipeline_mode<synchronous>, transform_indices = @transform_4, window_bounds = array<i64: 1, 256>}, {pipeline_mode = #tpu.pipeline_mode<synchronous>, transform_indices = @transform_5, window_bounds = array<i64: 256, 256>}, {pipeline_mode = #tpu.pipeline_mode<synchronous>, transform_indices = @transform_6, window_bounds = array<i64: 1, 256>}, {transform_indices = @transform_7, window_bounds = array<i64: 16, 256>}]} {
    %c0 = arith.constant 0 : index
    %c0_0 = arith.constant 0 : index
    %0 = vector.load %arg1[%c0, %c0_0] : memref<16x4096xf32, #tpu.memory_space<vmem>>, vector<16x4096xf32>
    %1 = arith.truncf %0 : vector<16x4096xf32> to vector<16x4096xbf16>
    %c0_1 = arith.constant 0 : index
    %c0_2 = arith.constant 0 : index
    %2 = vector.load %arg2[%c0_1, %c0_2] : memref<4096x256xbf16, #tpu.memory_space<vmem>>, vector<4096x256xbf16>
    %cst = arith.constant dense<0.000000e+00> : vector<16x256xf32>
    %3 = tpu.matmul %1, %2, %cst {dimension_numbers = #tpu.dot_dimension_numbers<[1], [0], [0], [1], [0, 0, 1, 1], [], []>} : vector<16x4096xbf16>, vector<4096x256xbf16>, vector<16x256xf32> -> vector<16x256xf32>
    %c0_3 = arith.constant 0 : index
    %c0_4 = arith.constant 0 : index
    %4 = vector.load %arg3[%c0_3, %c0_4] : memref<1x256xf32, #tpu.memory_space<vmem>>, vector<1x256xf32>
    %5 = vector.broadcast %4 : vector<1x256xf32> to vector<16x256xf32>
    %6 = arith.addf %3, %5 : vector<16x256xf32>
    %cst_5 = arith.constant 0.000000e+00 : f32
    %7 = vector.broadcast %cst_5 : f32 to vector<16x256xf32>
    %8 = arith.maximumf %6, %7 : vector<16x256xf32>
    %9 = arith.truncf %8 : vector<16x256xf32> to vector<16x256xbf16>
    %c0_6 = arith.constant 0 : index
    %c0_7 = arith.constant 0 : index
    %10 = vector.load %arg4[%c0_6, %c0_7] : memref<256x256xbf16, #tpu.memory_space<vmem>>, vector<256x256xbf16>
    %cst_8 = arith.constant dense<0.000000e+00> : vector<16x256xf32>
    %11 = tpu.matmul %9, %10, %cst_8 {dimension_numbers = #tpu.dot_dimension_numbers<[1], [0], [0], [1], [0, 0, 1, 1], [], []>} : vector<16x256xbf16>, vector<256x256xbf16>, vector<16x256xf32> -> vector<16x256xf32>
    %c0_9 = arith.constant 0 : index
    %c0_10 = arith.constant 0 : index
    %12 = vector.load %arg5[%c0_9, %c0_10] : memref<1x256xf32, #tpu.memory_space<vmem>>, vector<1x256xf32>
    %13 = vector.broadcast %12 : vector<1x256xf32> to vector<16x256xf32>
    %14 = arith.addf %11, %13 : vector<16x256xf32>
    %cst_11 = arith.constant 0.000000e+00 : f32
    %15 = vector.broadcast %cst_11 : f32 to vector<16x256xf32>
    %16 = arith.maximumf %14, %15 : vector<16x256xf32>
    %17 = arith.truncf %16 : vector<16x256xf32> to vector<16x256xbf16>
    %c0_12 = arith.constant 0 : index
    %c0_13 = arith.constant 0 : index
    %18 = vector.load %arg6[%c0_12, %c0_13] : memref<256x256xbf16, #tpu.memory_space<vmem>>, vector<256x256xbf16>
    %cst_14 = arith.constant dense<0.000000e+00> : vector<16x256xf32>
    %19 = tpu.matmul %17, %18, %cst_14 {dimension_numbers = #tpu.dot_dimension_numbers<[1], [0], [0], [1], [0, 0, 1, 1], [], []>} : vector<16x256xbf16>, vector<256x256xbf16>, vector<16x256xf32> -> vector<16x256xf32>
    %c0_15 = arith.constant 0 : index
    %c0_16 = arith.constant 0 : index
    %20 = vector.load %arg7[%c0_15, %c0_16] : memref<1x256xf32, #tpu.memory_space<vmem>>, vector<1x256xf32>
    %21 = vector.broadcast %20 : vector<1x256xf32> to vector<16x256xf32>
    %22 = arith.addf %19, %21 : vector<16x256xf32>
    %23 = arith.mulf %22, %22 : vector<16x256xf32>
    %cst_17 = arith.constant dense<0.000000e+00> : vector<16xf32>
    %24 = vector.multi_reduction <add>, %23, %cst_17 [1] : vector<16x256xf32> to vector<16xf32>
    %25 = vector.shape_cast %24 : vector<16xf32> to vector<16x1xf32>
    %cst_18 = arith.constant 1.000000e-24 : f32
    %26 = vector.broadcast %cst_18 : f32 to vector<16x1xf32>
    %27 = arith.maximumf %25, %26 : vector<16x1xf32>
    %28 = math.rsqrt %27 : vector<16x1xf32>
    %29 = vector.broadcast %28 : vector<16x1xf32> to vector<16x256xf32>
    %30 = arith.mulf %22, %29 : vector<16x256xf32>
    %c0_19 = arith.constant 0 : index
    %c0_20 = arith.constant 0 : index
    %31 = vector.load %arg8[%c0_19, %c0_20] : memref<16x256xf32, #tpu.memory_space<vmem>>, vector<16x256xf32>
    tpu.vector_store %arg8[%c0_19, %c0_20], %30 {strides = array<i32>} : memref<16x256xf32, #tpu.memory_space<vmem>>, vector<16x256xf32>,
    return
  }
  func.func @transform_0(%arg0: i32) -> (i32, i32) {
    %c0_i32 = arith.constant 0 : i32
    %c0_i32_0 = arith.constant 0 : i32
    return %arg0, %c0_i32 : i32, i32
  }
  func.func @transform_1(%arg0: i32) -> (i32, i32) {
    %c0_i32 = arith.constant 0 : i32
    %c0_i32_0 = arith.constant 0 : i32
    %c0_i32_1 = arith.constant 0 : i32
    return %c0_i32, %c0_i32_0 : i32, i32
  }
  func.func @transform_2(%arg0: i32) -> (i32, i32) {
    %c0_i32 = arith.constant 0 : i32
    %c0_i32_0 = arith.constant 0 : i32
    %c0_i32_1 = arith.constant 0 : i32
    return %c0_i32, %c0_i32_0 : i32, i32
  }
  func.func @transform_3(%arg0: i32) -> (i32, i32) {
    %c0_i32 = arith.constant 0 : i32
    %c0_i32_0 = arith.constant 0 : i32
    %c0_i32_1 = arith.constant 0 : i32
    return %c0_i32, %c0_i32_0 : i32, i32
  }
  func.func @transform_4(%arg0: i32) -> (i32, i32) {
    %c0_i32 = arith.constant 0 : i32
    %c0_i32_0 = arith.constant 0 : i32
    %c0_i32_1 = arith.constant 0 : i32
    return %c0_i32, %c0_i32_0 : i32, i32
  }
  func.func @transform_5(%arg0: i32) -> (i32, i32) {
    %c0_i32 = arith.constant 0 : i32
    %c0_i32_0 = arith.constant 0 : i32
    %c0_i32_1 = arith.constant 0 : i32
    return %c0_i32, %c0_i32_0 : i32, i32
  }
  func.func @transform_6(%arg0: i32) -> (i32, i32) {
    %c0_i32 = arith.constant 0 : i32
    %c0_i32_0 = arith.constant 0 : i32
    %c0_i32_1 = arith.constant 0 : i32
    return %c0_i32, %c0_i32_0 : i32, i32
  }
  func.func @transform_7(%arg0: i32) -> (i32, i32) {
    %c0_i32 = arith.constant 0 : i32
    %c0_i32_0 = arith.constant 0 : i32
    return %arg0, %c0_i32 : i32, i32
  }
}

</mosaic_0001>

<bundles_post_ra>
// kernel: tpu_custom_call.1
= control target key start
LH: loop header
LB: loop body
LE: loop exit
PB: predicated region body
PF: predicated region fallthrough
CT: control target
= control target key end

     0   :  { %12 = vsyncpa [#allocation3], 0  ;;  %s7612_s0 = inlined_call_operand.hbm [shape: f32[2,4096], index: 0, kind: input, shape index: {}]   ;;  %s7613_s1 = inlined_call_operand.hbm [shape: bf16[4096,256], index: 1, kind: input, shape index: {}]   ;;  %s7614_s2 = inlined_call_operand.hbm [shape: f32[1,256], index: 2, kind: input, shape index: {}]   ;;  %s7615_s3 = inlined_call_operand.hbm [shape: bf16[256,256], index: 3, kind: input, shape index: {}]   ;;  %s7616_s4 = inlined_call_operand.hbm [shape: f32[1,256], index: 4, kind: input, shape index: {}]   ;;  %s7617_s5 = inlined_call_operand.hbm [shape: bf16[256,256], index: 5, kind: input, shape index: {}]   ;;  %s7618_s6 = inlined_call_operand.hbm [shape: f32[1,256], index: 6, kind: input, shape index: {}]   ;;  %s7619_s7 = inlined_call_operand.hbm [shape: f32[2,256], index: 7, kind: output, shape index: {}]  }
   0x1   :  { %13 = vsyncpa [#allocation6], 0 }
   0x2   :  { %14 = vsyncpa [#allocation9], 0 }
   0x3   :  { %15 = vsyncpa [#allocation12], 0 }
   0x4   :  { %16 = vsyncpa [#allocation4], 0 }
   0x5   :  { %21 = vsyncadd [#allocation3], 7168  ;;  %s7000_s24 = smov [#allocation5]   ;;  %s6814_s28 = scalar_lea.hbm %s7613_s1, 65536 }
   0x6   :  { %s34_s25 = sshll.u32 %s7000_s24, 4  ;;  %p6815_p0 = scmp.ne.s32.totalorder %s7613_s1, %s6814_s28  ;;  %s35_s25 = int_to_ptr.vmem [resolvable:$true] %s34_s25 }
   0x7   :  { %p6818_p1 = scmp.lt.u32.totalorder %s6814_s28, %s7613_s1 }
   0x9   :  { %p6820_p2 = pnand %p6818_p1, %p6815_p0 }
   0xb   :  { %6823 = shalt.err (!%p6820_p2)
}
   0xc   :  { %s6824_s10 = scalar_lea.vmem %s35_s25, 65536  ;;  %p6829_p4 = scmp.lt.s32.totalorder %s35_s25, %s35_s25 }
   0xd   :  { %p6825_p3 = scmp.ne.s32.totalorder %s35_s25, %s6824_s10  ;;  %p6830_p5 = scmp.lt.s32.totalorder %s6824_s10, %s6824_s10 }
   0xf   :  { %p6831_p6 = por %p6830_p5, %p6829_p4 }
  0x11   :  { %p6832_p7 = pnand %p6831_p6, %p6825_p3 }
  0x13   :  { %6835 = shalt.err (!%p6832_p7)
}
  0x14   :  { %s7001_s11 = smov 128   ;;  %s7002_s12 = smov 8  }
  0x15   :  { %40 = dma.hbm_to_vmem [thread:$0]  %s7613_s1, 65536, %s35_s25, [#allocation6], %s7001_s11, %s7001_s11, %s7002_s12  }
  0x16   :  { %s7003_s15 = smov [#allocation8]   ;;  %s7004_s17 = smov [#allocation11]  }
  0x17   :  { %s56_s16 = sshll.u32 %s7003_s15, 4  ;;  %s78_s18 = sshll.u32 %s7004_s17, 4  ;;  %s57_s16 = int_to_ptr.vmem [resolvable:$true] %s56_s16  ;;  %s79_s18 = int_to_ptr.vmem [resolvable:$true] %s78_s18 }
  0x18   :  { %s6836_s21 = scalar_lea.hbm %s7615_s3, 4096 }
  0x19   :  { %p6837_p8 = scmp.ne.s32.totalorder %s7615_s3, %s6836_s21  ;;  %p6840_p9 = scmp.lt.u32.totalorder %s6836_s21, %s7615_s3 }
  0x1b   :  { %p6842_p10 = pnand %p6840_p9, %p6837_p8 }
  0x1d   :  { %6845 = shalt.err (!%p6842_p10)
}
  0x1e   :  { %s6846_s1 = scalar_lea.vmem %s57_s16, 4096  ;;  %p6851_p12 = scmp.lt.s32.totalorder %s57_s16, %s57_s16 }
  0x1f   :  { %p6847_p11 = scmp.ne.s32.totalorder %s57_s16, %s6846_s1  ;;  %p6852_p13 = scmp.lt.s32.totalorder %s6846_s1, %s6846_s1 }
  0x21   :  { %p6853_p0 = por %p6852_p13, %p6851_p12 }
  0x23   :  { %p6854_p1 = pnand %p6853_p0, %p6847_p11 }
  0x25   :  { %6857 = shalt.err (!%p6854_p1)
}
  0x26   :  { %62 = dma.hbm_to_vmem [thread:$0]  %s7615_s3, 4096, %s57_s16, [#allocation9], %s7001_s11, %s7001_s11, %s7002_s12  }
  0x27   :  { %s6858_s30 = scalar_lea.hbm %s7617_s5, 4096 }
  0x28   :  { %p6859_p2 = scmp.ne.s32.totalorder %s7617_s5, %s6858_s30  ;;  %p6862_p3 = scmp.lt.u32.totalorder %s6858_s30, %s7617_s5 }
  0x2a   :  { %p6864_p4 = pnand %p6862_p3, %p6859_p2 }
  0x2c   :  { %6867 = shalt.err (!%p6864_p4)
}
  0x2d   :  { %s6868_s14 = scalar_lea.vmem %s79_s18, 4096  ;;  %p6873_p6 = scmp.lt.s32.totalorder %s79_s18, %s79_s18 }
  0x2e   :  { %p6869_p5 = scmp.ne.s32.totalorder %s79_s18, %s6868_s14  ;;  %p6874_p7 = scmp.lt.s32.totalorder %s6868_s14, %s6868_s14 }
  0x30   :  { %p6875_p8 = por %p6874_p7, %p6873_p6 }
  0x32   :  { %p6876_p9 = pnand %p6875_p8, %p6869_p5 }
  0x34   :  { %6879 = shalt.err (!%p6876_p9)
}
  0x35   :  { %84 = dma.hbm_to_vmem [thread:$0]  %s7617_s5, 4096, %s79_s18, [#allocation12], %s7001_s11, %s7001_s11, %s7002_s12  }
  0x36   :  { %s7005_s16 = smov [#allocation2]   ;;  %s6880_s21 = scalar_lea.hbm %s7612_s0, 1024 }
  0x37   :  { %s22_s17 = sshll.u32 %s7005_s16, 4  ;;  %p6881_p10 = scmp.ne.s32.totalorder %s7612_s0, %s6880_s21  ;;  %s23_s17 = int_to_ptr.vmem [resolvable:$true] %s22_s17 }
  0x38   :  { %p6884_p11 = scmp.lt.u32.totalorder %s6880_s21, %s7612_s0 }
  0x3a   :  { %p6886_p12 = pnand %p6884_p11, %p6881_p10 }
  0x3c   :  { %6889 = shalt.err (!%p6886_p12)
}
  0x3d   :  { %s6890_s1 = scalar_lea.vmem %s23_s17, 1024  ;;  %s6894_s5 = scalar_lea.vmem %s23_s17, 8192 }
  0x3e   :  { %p6891_p13 = scmp.ne.s32.totalorder %s23_s17, %s6890_s1  ;;  %p6895_p0 = scmp.lt.s32.totalorder %s23_s17, %s23_s17 }
  0x3f   :  { %p6896_p1 = scmp.lt.s32.totalorder %s6894_s5, %s6890_s1 }
  0x41   :  { %p6897_p2 = por %p6896_p1, %p6895_p0 }
  0x43   :  { %p6898_p3 = pnand %p6897_p2, %p6891_p13 }
  0x45   :  { %6901 = shalt.err (!%p6898_p3)
}
  0x46   :  { %s7006_s11 = smov 1024   ;;  %s7007_s12 = smov 64  }
  0x47   :  { %28 = dma.hbm_to_vmem [thread:$0]  %s7612_s0, 1024, %s23_s17, [#allocation3], %s7006_s11, %s7006_s11, %s7007_s12  }
  0x48   :  { %s7008_s27 = smov [#allocation7]   ;;  %s7009_s29 = smov [#allocation10]  }
  0x49   :  { %s47_s28 = sshll.u32 %s7008_s27, 4  ;;  %s69_s30 = sshll.u32 %s7009_s29, 4  ;;  %s48_s28 = int_to_ptr.vmem [resolvable:$true] %s47_s28  ;;  %s70_s30 = int_to_ptr.vmem [resolvable:$true] %s69_s30 }
  0x4a   :  { %s6902_s10 = scalar_lea.hbm %s7614_s2, 32 }
  0x4b   :  { %p6903_p4 = scmp.ne.s32.totalorder %s7614_s2, %s6902_s10  ;;  %p6906_p5 = scmp.lt.u32.totalorder %s6902_s10, %s7614_s2 }
  0x4d   :  { %p6908_p6 = pnand %p6906_p5, %p6903_p4 }
  0x4f   :  { %6911 = shalt.err (!%p6908_p6)
}
  0x50   :  { %s6912_s0 = scalar_lea.vmem %s48_s28, 32  ;;  %p6917_p8 = scmp.lt.s32.totalorder %s48_s28, %s48_s28 }
  0x51   :  { %p6913_p7 = scmp.ne.s32.totalorder %s48_s28, %s6912_s0  ;;  %p6918_p9 = scmp.lt.s32.totalorder %s6912_s0, %s6912_s0 }
  0x53   :  { %p6919_p10 = por %p6918_p9, %p6917_p8 }
  0x55   :  { %p6920_p11 = pnand %p6919_p10, %p6913_p7 }
  0x57   :  { %6923 = shalt.err (!%p6920_p11)
}
  0x58   :  { %50 = dma.hbm_to_vmem [thread:$0]  %s7614_s2, 32, %s48_s28, [#allocation6]  }
  0x59   :  { %s6924_s21 = scalar_lea.hbm %s7616_s4, 32 }
  0x5a   :  { %p6925_p12 = scmp.ne.s32.totalorder %s7616_s4, %s6924_s21  ;;  %p6928_p13 = scmp.lt.u32.totalorder %s6924_s21, %s7616_s4 }
  0x5c   :  { %p6930_p0 = pnand %p6928_p13, %p6925_p12 }
  0x5e   :  { %6933 = shalt.err (!%p6930_p0)
}
  0x5f   :  { %s6934_s1 = scalar_lea.vmem %s70_s30, 32  ;;  %p6939_p2 = scmp.lt.s32.totalorder %s70_s30, %s70_s30 }
  0x60   :  { %p6935_p1 = scmp.ne.s32.totalorder %s70_s30, %s6934_s1  ;;  %p6940_p3 = scmp.lt.s32.totalorder %s6934_s1, %s6934_s1 }
  0x62   :  { %p6941_p4 = por %p6940_p3, %p6939_p2 }
  0x64   :  { %p6942_p5 = pnand %p6941_p4, %p6935_p1 }
  0x66   :  { %6945 = shalt.err (!%p6942_p5)
}
  0x67   :  { %72 = dma.hbm_to_vmem [thread:$0]  %s7616_s4, 32, %s70_s30, [#allocation9]  }
  0x68   :  { %s7010_s11 = smov [#allocation13]   ;;  %s6946_s28 = scalar_lea.hbm %s7618_s6, 32 }
  0x69   :  { %s91_s18 = sshll.u32 %s7010_s11, 4  ;;  %p6947_p6 = scmp.ne.s32.totalorder %s7618_s6, %s6946_s28  ;;  %s92_s18 = int_to_ptr.vmem [resolvable:$true] %s91_s18 }
  0x6a   :  { %p6950_p7 = scmp.lt.u32.totalorder %s6946_s28, %s7618_s6 }
  0x6c   :  { %p6952_p8 = pnand %p6950_p7, %p6947_p6 }
  0x6e   :  { %6955 = shalt.err (!%p6952_p8)
}
  0x6f   :  { %s6956_s13 = scalar_lea.vmem %s92_s18, 32  ;;  %p6961_p10 = scmp.lt.s32.totalorder %s92_s18, %s92_s18 }
  0x70   :  { %p6957_p9 = scmp.ne.s32.totalorder %s92_s18, %s6956_s13  ;;  %p6962_p11 = scmp.lt.s32.totalorder %s6956_s13, %s6956_s13 }
  0x72   :  { %p6963_p12 = por %p6962_p11, %p6961_p10 }
  0x74   :  { %p6964_p13 = pnand %p6963_p12, %p6957_p9 }
  0x76   :  { %6967 = shalt.err (!%p6964_p13)
}
  0x77   :  { %94 = dma.hbm_to_vmem [thread:$0]  %s7618_s6, 32, %s92_s18, [#allocation12]  }
  0x78   :  { %6990 = dma.done.wait [#allocation3], 8192  }
  0x79   :  { %6991 = vsyncadd [#allocation3], 4294959104 }
  0x7a   :  { %6992 = dma.done.wait [#allocation6], 65568  }
  0x7b   :  { %6993 = vsyncadd [#allocation6], 4294901728 }
  0x7c   :  { %6994 = dma.done.wait [#allocation9], 4128  }
  0x7d   :  { %6995 = vsyncadd [#allocation9], 4294963168 }
  0x7e   :  { %6996 = dma.done.wait [#allocation12], 4128  }
  0x7f   :  { %6997 = vsyncadd [#allocation12], 4294963168  ;;  %v5946_v0 = vld [vmem:[#allocation5 + $0x4] ss:$8 sps:$4 sm:$0xff]   ;;  %v5950_v2 = vld [vmem:[#allocation5] ss:$8 sps:$4 sm:$0xff]   ;;  %v251_v40 = vlaneseq }
  0x80   :  { %v5948_v1 = vld [vmem:[#allocation5 + $0x704] ss:$8 sps:$4 sm:$0xff]   ;;  %4000 = vmatprep.subr.bf16.mxu1 %v5946_v0  ;;  %v5951_v3 = vld [vmem:[#allocation5 + $0x700] ss:$8 sps:$4 sm:$0xff]   ;;  %v5952_v4 = vld [vmem:[#allocation5 + $0x14] ss:$8 sps:$4 sm:$0xff]  }
  0x81   :  { %4301 = vmatprep.subr.bf16.mxu0 %v5948_v1  ;;  %4001 = vmatpush1.bf16.msra.mxu1 %v5950_v2  ;;  %v5954_v5 = vld [vmem:[#allocation5 + $0x714] ss:$8 sps:$4 sm:$0xff]   ;;  %v5956_v6 = vld [vmem:[#allocation5 + $0x10] ss:$8 sps:$4 sm:$0xff]   ;;  %v5958_v8 = vld [vmem:[#allocation5 + $0x24] ss:$8 sps:$4 sm:$0xff]  }
  0x82   :  { %4302 = vmatpush1.bf16.msra.mxu0 %v5951_v3  ;;  %4002 = vmatprep.subr.bf16.mxu1 %v5952_v4  ;;  %v5957_v7 = vld [vmem:[#allocation5 + $0x710] ss:$8 sps:$4 sm:$0xff]   ;;  %v5960_v9 = vld [vmem:[#allocation5 + $0x724] ss:$8 sps:$4 sm:$0xff]   ;;  %v5962_v10 = vld [vmem:[#allocation5 + $0x20] ss:$8 sps:$4 sm:$0xff]  }
  0x83   :  { %4303 = vmatprep.subr.bf16.mxu0 %v5954_v5  ;;  %v5963_v11 = vld [vmem:[#allocation5 + $0x720] ss:$8 sps:$4 sm:$0xff]   ;;  %v5964_v12 = vld [vmem:[#allocation5 + $0x34] ss:$8 sps:$4 sm:$0xff]   ;;  %v5968_v14 = vld [vmem:[#allocation5 + $0x30] ss:$8 sps:$4 sm:$0xff]  }
  0x84   :  { %v5966_v13 = vld [vmem:[#allocation5 + $0x734] ss:$8 sps:$4 sm:$0xff]   ;;  %v5969_v15 = vld [vmem:[#allocation5 + $0x730] ss:$8 sps:$4 sm:$0xff]   ;;  %v5970_v16 = vld [vmem:[#allocation5 + $0x44] ss:$8 sps:$4 sm:$0xff]  }
  0x85   :  { %4003 = vmatpush1.bf16.msra.mxu1 %v5956_v6  ;;  %v5972_v17 = vld [vmem:[#allocation5 + $0x744] ss:$8 sps:$4 sm:$0xff]   ;;  %v5974_v18 = vld [vmem:[#allocation5 + $0x40] ss:$8 sps:$4 sm:$0xff]   ;;  %v5976_v20 = vld [vmem:[#allocation5 + $0x54] ss:$8 sps:$4 sm:$0xff]  }
  0x86   :  { %4304 = vmatpush1.bf16.msra.mxu0 %v5957_v7  ;;  %4004 = vmatprep.subr.bf16.mxu1 %v5958_v8  ;;  %v5975_v19 = vld [vmem:[#allocation5 + $0x740] ss:$8 sps:$4 sm:$0xff]   ;;  %v5978_v21 = vld [vmem:[#allocation5 + $0x754] ss:$8 sps:$4 sm:$0xff]   ;;  %v5980_v22 = vld [vmem:[#allocation5 + $0x50] ss:$8 sps:$4 sm:$0xff]  }
  0x87   :  { %4305 = vmatprep.subr.bf16.mxu0 %v5960_v9  ;;  %v5981_v23 = vld [vmem:[#allocation5 + $0x750] ss:$8 sps:$4 sm:$0xff]   ;;  %v5982_v24 = vld [vmem:[#allocation5 + $0x64] ss:$8 sps:$4 sm:$0xff]   ;;  %v5986_v26 = vld [vmem:[#allocation5 + $0x60] ss:$8 sps:$4 sm:$0xff]  }
  0x88   :  { %v5984_v25 = vld [vmem:[#allocation5 + $0x764] ss:$8 sps:$4 sm:$0xff]   ;;  %v5987_v27 = vld [vmem:[#allocation5 + $0x760] ss:$8 sps:$4 sm:$0xff]   ;;  %v5988_v28 = vld [vmem:[#allocation5 + $0x74] ss:$8 sps:$4 sm:$0xff]  }
  0x89   :  { %4005 = vmatpush1.bf16.msra.mxu1 %v5962_v10  ;;  %v5990_v29 = vld [vmem:[#allocation5 + $0x774] ss:$8 sps:$4 sm:$0xff]   ;;  %v5992_v30 = vld [vmem:[#allocation5 + $0x70] ss:$8 sps:$4 sm:$0xff]   ;;  %v5994_v32 = vld [vmem:[#allocation5 + $0x84] ss:$8 sps:$4 sm:$0xff]  }
  0x8a   :  { %4306 = vmatpush1.bf16.msra.mxu0 %v5963_v11  ;;  %4006 = vmatprep.subr.bf16.mxu1 %v5964_v12  ;;  %v5993_v31 = vld [vmem:[#allocation5 + $0x770] ss:$8 sps:$4 sm:$0xff]   ;;  %v5996_v33 = vld [vmem:[#allocation5 + $0x784] ss:$8 sps:$4 sm:$0xff]   ;;  %v5998_v34 = vld [vmem:[#allocation5 + $0x80] ss:$8 sps:$4 sm:$0xff]  }
  0x8b   :  { %4307 = vmatprep.subr.bf16.mxu0 %v5966_v13  ;;  %v5999_v35 = vld [vmem:[#allocation5 + $0x780] ss:$8 sps:$4 sm:$0xff]   ;;  %v6000_v36 = vld [vmem:[#allocation5 + $0x94] ss:$8 sps:$4 sm:$0xff]   ;;  %v7011_v38 = vmov 1983009808  }
  0x8c   :  { %v6002_v37 = vld [vmem:[#allocation5 + $0x794] ss:$8 sps:$4 sm:$0xff]   ;;  %v249_v39 = vunpack.c.l.s4 %v7011_v38  ;;  %v6004_v41 = vld [vmem:[#allocation5 + $0x90] ss:$8 sps:$4 sm:$0xff]   ;;  %v6006_v43 = vld [vmem:[#allocation5 + $0xa4] ss:$8 sps:$4 sm:$0xff]  }
  0x8d   :  { %4007 = vmatpush1.bf16.msra.mxu1 %v5968_v14  ;;  %v6005_v42 = vld [vmem:[#allocation5 + $0x790] ss:$8 sps:$4 sm:$0xff]   ;;  %v6008_v44 = vld [vmem:[#allocation5 + $0x7a4] ss:$8 sps:$4 sm:$0xff]   ;;  %v7148_v46 = vshrl.u32 %v251_v40, 7 }
  0x8e   :  { %4308 = vmatpush1.bf16.msra.mxu0 %v5969_v15  ;;  %4008 = vmatprep.subr.bf16.mxu1 %v5970_v16  ;;  %v250_v45 = vunpack.c.0.s8 %v249_v39  ;;  %v6010_v47 = vld [vmem:[#allocation5 + $0xa0] ss:$8 sps:$4 sm:$0xff]   ;;  %v6012_v49 = vld [vmem:[#allocation5 + $0xb4] ss:$8 sps:$4 sm:$0xff]   ;;  %v6016_v51 = vld [vmem:[#allocation5 + $0xb0] ss:$8 sps:$4 sm:$0xff]  }
  0x8f   :  { %4309 = vmatprep.subr.bf16.mxu0 %v5972_v17  ;;  %v6011_v48 = vld [vmem:[#allocation5 + $0x7a0] ss:$8 sps:$4 sm:$0xff]   ;;  %v6014_v50 = vld [vmem:[#allocation5 + $0x7b4] ss:$8 sps:$4 sm:$0xff]   ;;  %v6017_v52 = vld [vmem:[#allocation5 + $0x7b0] ss:$8 sps:$4 sm:$0xff]  }
  0x90   :  { %v7150_v53 = vld [vmem:[#allocation2] sm:$0xff]  ;;  %v7153_v54 = vsub.s32 %v250_v45, %v7148_v46  ;;  %v7183_v8 = vld [vmem:[#allocation2 + $0x18] sm:$0xff] }
  0x91   :  { %4009 = vmatpush1.bf16.msra.mxu1 %v5974_v18  ;;  %v6018_v55 = vld [vmem:[#allocation5 + $0xc4] ss:$8 sps:$4 sm:$0xff]   ;;  %v6022_v3 = vld [vmem:[#allocation5 + $0xc0] ss:$8 sps:$4 sm:$0xff]   ;;  %v6024_v9 = vld [vmem:[#allocation5 + $0xd4] ss:$8 sps:$4 sm:$0xff]  }
  0x92   :  { %4310 = vmatpush1.bf16.msra.mxu0 %v5975_v19  ;;  %4010 = vmatprep.subr.bf16.mxu1 %v5976_v20  ;;  %v6020_v56 = vld [vmem:[#allocation5 + $0x7c4] ss:$8 sps:$4 sm:$0xff]   ;;  %v6023_v4 = vld [vmem:[#allocation5 + $0x7c0] ss:$8 sps:$4 sm:$0xff]   ;;  %v6026_v10 = vld [vmem:[#allocation5 + $0x7d4] ss:$8 sps:$4 sm:$0xff]  }
  0x93   :  { %4311 = vmatprep.subr.bf16.mxu0 %v5978_v21  ;;  %v7155_v57 = vld [vmem:[#allocation2 + $0x40] sm:$0xff]  ;;  %v7188_v12 = vld [vmem:[#allocation2 + $0x58] sm:$0xff] }
  0x94   :  { %v7157_v58 = vld [vmem:[#allocation2 + $0x80] sm:$0xff]  ;;  %v244_v63 = vcombine.low %v7150_v53, %v7155_v57  ;;  %v7190_v13 = vld [vmem:[#allocation2 + $0x98] sm:$0xff]  ;;  %v352_v20 = vcombine.low %v7183_v8, %v7188_v12  ;;  %v245_v40 = vcombine.high %v7150_v53, %v7155_v57 }
  0x95   :  { %4011 = vmatpush1.bf16.msra.mxu1 %v5980_v22  ;;  %v7159_v59 = vld [vmem:[#allocation2 + $0xc0] sm:$0xff]  ;;  %v7192_v14 = vld [vmem:[#allocation2 + $0xd8] sm:$0xff]  ;;  %v353_v22 = vcombine.high %v7183_v8, %v7188_v12 }
  0x96   :  { %4312 = vmatpush1.bf16.msra.mxu0 %v5981_v23  ;;  %4012 = vmatprep.subr.bf16.mxu1 %v5982_v24  ;;  %v7161_v60 = vld [vmem:[#allocation2 + $0x100] sm:$0xff]  ;;  %v246_v0 = vcombine.low %v7157_v58, %v7159_v59  ;;  %v7176_v5 = vrot.slane %v244_v63, %v7153_v54  ;;  %v7199_v17 = vld [vmem:[#allocation2 + $0x118] sm:$0xff]  ;;  %v354_v23 = vcombine.low %v7190_v13, %v7192_v14 }
  0x97   :  { %4313 = vmatprep.subr.bf16.mxu0 %v5984_v25  ;;  %v7163_v61 = vld [vmem:[#allocation2 + $0x140] sm:$0xff]  ;;  %v7201_v18 = vld [vmem:[#allocation2 + $0x158] sm:$0xff]  ;;  %v355_v24 = vcombine.high %v7190_v13, %v7192_v14 }
  0x98   :  { %v7165_v62 = vld [vmem:[#allocation2 + $0x180] sm:$0xff]  ;;  %v532_v2 = vcombine.low %v7161_v60, %v7163_v61  ;;  %v7179_v6 = vrot.slane %v246_v0, %v7153_v54  ;;  %v7203_v19 = vld [vmem:[#allocation2 + $0x198] sm:$0xff] }
  0x99   :  { %4013 = vmatpush1.bf16.msra.mxu1 %v5986_v26  ;;  %v7171_v1 = vld [vmem:[#allocation2 + $0x1c0] sm:$0xff]  ;;  %v7207_v21 = vld [vmem:[#allocation2 + $0x1d8] sm:$0xff]  ;;  %v640_v26 = vcombine.low %v7199_v17, %v7201_v18 }
  0x9a   :  { %4314 = vmatpush1.bf16.msra.mxu0 %v5987_v27  ;;  %4014 = vmatprep.subr.bf16.mxu1 %v5988_v28  ;;  %v534_v7 = vcombine.low %v7165_v62, %v7171_v1  ;;  %v7186_v11 = vrot.slane %v532_v2, %v7153_v54  ;;  %v277_v15 = vcombine.high %v7176_v5, %v7179_v6  ;;  %v6035_v45 = vld [vmem:[#allocation5 + $0x7e0] ss:$8 sps:$4 sm:$0xff]   ;;  %v6041_v57 = vld [vmem:[#allocation5 + $0x7f0] ss:$8 sps:$4 sm:$0xff]   ;;  %v6047_v63 = vld [vmem:[#allocation5 + $0x804] ss:$8 sps:$4 sm:$0xff]  }
  0x9b   :  { %4315 = vmatprep.subr.bf16.mxu0 %v5990_v29  ;;  %v641_v27 = vcombine.high %v7199_v17, %v7201_v18  ;;  %v642_v28 = vcombine.low %v7203_v19, %v7207_v21  ;;  %v6028_v29 = vld [vmem:[#allocation5 + $0xd0] ss:$8 sps:$4 sm:$0xff]   ;;  %v6042_v2 = vld [vmem:[#allocation5 + $0x100] ss:$8 sps:$4 sm:$0xff]  }
  0x9c   :  { %v7197_v16 = vrot.slane %v534_v7, %v7153_v54  ;;  %v6053_v7 = vld [vmem:[#allocation5 + $0x814] ss:$8 sps:$4 sm:$0xff]   ;;  %v6426_v13 = vld [vmem:[#allocation5 + $0x500] ss:$8 sps:$4 sm:$0xff]  }
  0x9d   :  { %4015 = vmatpush1.bf16.msra.mxu1 %v5992_v30  ;;  %v6029_v30 = vld [vmem:[#allocation5 + $0x7d0] ss:$8 sps:$4 sm:$0xff]   ;;  %v664_v8 = vrot.slane %v642_v28, %v7153_v54  ;;  %v6429_v14 = vld [vmem:[#allocation5 + $0xc00] ss:$8 sps:$4 sm:$0xff]  }
  0x9e   :  { %4316 = vmatpush1.bf16.msra.mxu0 %v5993_v31  ;;  %4016 = vmatprep.subr.bf16.mxu1 %v5994_v32  ;;  %v565_v25 = vcombine.high %v7186_v11, %v7197_v16  ;;  %v369_v31 = vrot.slane %v353_v22, %v7153_v54  ;;  %v383_v32 = vrot.slane %v355_v24, %v7153_v54  ;;  %v6054_v22 = vld [vmem:[#allocation5 + $0x120] ss:$8 sps:$4 sm:$0xff]  }
  0x9f   :  { %4317 = vmatprep.subr.bf16.mxu0 %v5996_v33  ;;  %v643_v33 = vcombine.high %v7203_v19, %v7207_v21  ;;  %v6057_v24 = vld [vmem:[#allocation5 + $0x820] ss:$8 sps:$4 sm:$0xff]  }
  0xa0   :  { %v387_v38 = vcombine.high %v369_v31, %v383_v32 }
  0xa1   :  { %4017 = vmatpush1.bf16.msra.mxu1 %v5998_v34  ;;  %v6030_v34 = vld [vmem:[#allocation5 + $0xe4] ss:$8 sps:$4 sm:$0xff]   ;;  %v671_v39 = vrot.slane %v643_v33, %v7153_v54  ;;  %v6066_v33 = vld [vmem:[#allocation5 + $0x140] ss:$8 sps:$4 sm:$0xff]  }
  0xa2   :  { %4318 = vmatpush1.bf16.msra.mxu0 %v5999_v35  ;;  %4018 = vmatprep.subr.bf16.mxu1 %v6000_v36  ;;  %v885_v35 = vpack.c.bf16 %v565_v25, %v277_v15  ;;  %v657_v36 = vrot.slane %v641_v27, %v7153_v54  ;;  %v6056_v15 = vld [vmem:[#allocation5 + $0x124] ss:$8 sps:$4 sm:$0xff]   ;;  %v6062_v25 = vld [vmem:[#allocation5 + $0x134] ss:$8 sps:$4 sm:$0xff]  }
  0xa3   :  { %4319 = vmatprep.subr.bf16.mxu0 %v6002_v37  ;;  %v6032_v37 = vld [vmem:[#allocation5 + $0x7e4] ss:$8 sps:$4 sm:$0xff]   ;;  %v6065_v27 = vld [vmem:[#allocation5 + $0x834] ss:$8 sps:$4 sm:$0xff]  }
  0xa4   :  { %4032 = vmatprep.mubr.bf16.mxu1 %v885_v35  ;;  %v6074_v35 = vld [vmem:[#allocation5 + $0x154] ss:$8 sps:$4 sm:$0xff]  }
  0xa5   :  { %4019 = vmatpush1.bf16.msra.mxu1 %v6004_v41  ;;  %v247_v41 = vcombine.high %v7157_v58, %v7159_v59  ;;  %v276_v58 = vcombine.low %v7176_v5, %v7179_v6  ;;  %v564_v59 = vcombine.low %v7186_v11, %v7197_v16  ;;  %v6050_v6 = vld [vmem:[#allocation5 + $0x114] ss:$8 sps:$4 sm:$0xff]   ;;  %v6051_v11 = vld [vmem:[#allocation5 + $0x810] ss:$8 sps:$4 sm:$0xff]   ;;  %v6059_v16 = vld [vmem:[#allocation5 + $0x824] ss:$8 sps:$4 sm:$0xff]  }
  0xa6   :  { %4320 = vmatpush1.bf16.msra.mxu0 %v6005_v42  ;;  %4020 = vmatprep.subr.bf16.mxu1 %v6006_v43  ;;  %v533_v42 = vcombine.high %v7161_v60, %v7163_v61  ;;  %v535_v43 = vcombine.high %v7165_v62, %v7171_v1  ;;  %v386_v60 = vcombine.low %v369_v31, %v383_v32  ;;  %v6044_v62 = vld [vmem:[#allocation5 + $0x104] ss:$8 sps:$4 sm:$0xff]  }
  0xa7   :  { %4321 = vmatprep.subr.bf16.mxu0 %v6008_v44  ;;  %v6034_v44 = vld [vmem:[#allocation5 + $0xe0] ss:$8 sps:$4 sm:$0xff]   ;;  %v674_v61 = vcombine.low %v657_v36, %v671_v39  ;;  %v6068_v31 = vld [vmem:[#allocation5 + $0x144] ss:$8 sps:$4 sm:$0xff]  }
  0xa8   :  { %v7244_v53 = vrot.slane %v533_v42, %v7153_v54  ;;  %v6071_v32 = vld [vmem:[#allocation5 + $0x844] ss:$8 sps:$4 sm:$0xff]   ;;  %v6081_v42 = vld [vmem:[#allocation5 + $0x860] ss:$8 sps:$4 sm:$0xff]  }
  0xa9   :  { %4021 = vmatpush1.bf16.msra.mxu1 %v6010_v47  ;;  %v675_v47 = vcombine.high %v657_v36, %v671_v39  ;;  %v898_v5 = vpack.c.bf16 %v674_v61, %v386_v60  ;;  %v6077_v36 = vld [vmem:[#allocation5 + $0x854] ss:$8 sps:$4 sm:$0xff]   ;;  %v6080_v39 = vld [vmem:[#allocation5 + $0x164] ss:$8 sps:$4 sm:$0xff]  }
  0xaa   :  { %4322 = vmatpush1.bf16.msra.mxu0 %v6011_v48  ;;  %4022 = vmatprep.subr.bf16.mxu1 %v6012_v49  ;;  %v6036_v48 = vld [vmem:[#allocation5 + $0xf4] ss:$8 sps:$4 sm:$0xff]   ;;  %v7267_v60 = vld [vmem:[#allocation2 + $0x160] sm:$0xff] }
  0xab   :  { %4323 = vmatprep.subr.bf16.mxu0 %v6014_v50  ;;  %v6038_v49 = vld [vmem:[#allocation5 + $0x7f4] ss:$8 sps:$4 sm:$0xff]   ;;  %v899_v50 = vpack.c.bf16 %v675_v47, %v387_v38  ;;  %v6075_v38 = vld [vmem:[#allocation5 + $0x850] ss:$8 sps:$4 sm:$0xff]  }
  0xac   :  { %v6087_v47 = vld [vmem:[#allocation5 + $0x870] ss:$8 sps:$4 sm:$0xff]  }
  0xad   :  { %4023 = vmatpush1.bf16.msra.mxu1 %v6016_v51  ;;  %v7238_v51 = vrot.slane %v245_v40, %v7153_v54  ;;  %4333 = vmatprep.mubr.bf16.mxu0 %v899_v50  ;;  %v6083_v40 = vld [vmem:[#allocation5 + $0x864] ss:$8 sps:$4 sm:$0xff]  }
  0xae   :  { %4324 = vmatpush1.bf16.msra.mxu0 %v6017_v52  ;;  %4024 = vmatprep.subr.bf16.mxu1 %v6018_v55  ;;  %v7241_v52 = vrot.slane %v247_v41, %v7153_v54  ;;  %v7247_v55 = vrot.slane %v535_v43, %v7153_v54  ;;  %v6078_v41 = vld [vmem:[#allocation5 + $0x160] ss:$8 sps:$4 sm:$0xff]   ;;  %v6086_v43 = vld [vmem:[#allocation5 + $0x174] ss:$8 sps:$4 sm:$0xff]  }
  0xaf   :  { %4325 = vmatprep.subr.bf16.mxu0 %v6020_v56  ;;  %v6040_v56 = vld [vmem:[#allocation5 + $0xf0] ss:$8 sps:$4 sm:$0xff]   ;;  %v7257_v50 = vld [vmem:[#allocation2 + $0x20] sm:$0xff] }
  0xb0   :  { %v279_v0 = vcombine.high %v7238_v51, %v7241_v52  ;;  %v567_v1 = vcombine.high %v7244_v53, %v7247_v55 }
  0xb1   :  { %4025 = vmatpush1.bf16.msra.mxu1 %v6022_v3  ;;  %v6045_v3 = vld [vmem:[#allocation5 + $0x800] ss:$8 sps:$4 sm:$0xff]  }
  0xb2   :  { %4326 = vmatpush1.bf16.msra.mxu0 %v6023_v4  ;;  %4026 = vmatprep.subr.bf16.mxu1 %v6024_v9  ;;  %v884_v4 = vpack.c.bf16 %v564_v59, %v276_v58  ;;  %v887_v9 = vpack.c.bf16 %v567_v1, %v279_v0  ;;  %v7263_v58 = vld [vmem:[#allocation2 + $0xe0] sm:$0xff] }
  0xb3   :  { %4327 = vmatprep.subr.bf16.mxu0 %v6026_v10  ;;  %v6048_v10 = vld [vmem:[#allocation5 + $0x110] ss:$8 sps:$4 sm:$0xff]   ;;  %v7265_v59 = vld [vmem:[#allocation2 + $0x120] sm:$0xff] }
  0xb4   :  { %v676_v1 = vcombine.low %v7265_v59, %v7267_v60 }
  0xb5   :  { %4027 = vmatpush1.bf16.msra.mxu1 %v6028_v29  ;;  %v6060_v29 = vld [vmem:[#allocation5 + $0x130] ss:$8 sps:$4 sm:$0xff]  }
  0xb6   :  { %4328 = vmatpush1.bf16.msra.mxu0 %v6029_v30  ;;  %4028 = vmatprep.subr.bf16.mxu1 %v6030_v34  ;;  %v6063_v30 = vld [vmem:[#allocation5 + $0x830] ss:$8 sps:$4 sm:$0xff]   ;;  %v6069_v34 = vld [vmem:[#allocation5 + $0x840] ss:$8 sps:$4 sm:$0xff]  }
  0xb7   :  { %4329 = vmatprep.subr.bf16.mxu0 %v6032_v37  ;;  %v6072_v37 = vld [vmem:[#allocation5 + $0x150] ss:$8 sps:$4 sm:$0xff]  }
  0xb9   :  { %4029 = vmatpush1.bf16.msra.mxu1 %v6034_v44  ;;  %v6089_v44 = vld [vmem:[#allocation5 + $0x874] ss:$8 sps:$4 sm:$0xff]  }
  0xba   :  { %4330 = vmatpush1.bf16.msra.mxu0 %v6035_v45  ;;  %4030 = vmatprep.subr.bf16.mxu1 %v6036_v48  ;;  %v6084_v45 = vld [vmem:[#allocation5 + $0x170] ss:$8 sps:$4 sm:$0xff]   ;;  %v6092_v48 = vld [vmem:[#allocation5 + $0x184] ss:$8 sps:$4 sm:$0xff]  }
  0xbb   :  { %4331 = vmatprep.subr.bf16.mxu0 %v6038_v49  ;;  %v6095_v49 = vld [vmem:[#allocation5 + $0x884] ss:$8 sps:$4 sm:$0xff]  }
  0xbd   :  { %4031 = vmatpush1.bf16.msra.mxu1 %v6040_v56  ;;  %v7259_v56 = vld [vmem:[#allocation2 + $0x60] sm:$0xff] }
  0xbe   :  { %4332 = vmatpush1.bf16.msra.mxu0 %v6041_v57  ;;  %4043 = vmatprep.subr.bf16.mxu1 %v6044_v62  ;;  %v7261_v57 = vld [vmem:[#allocation2 + $0xa0] sm:$0xff]  ;;  %v388_v61 = vcombine.low %v7257_v50, %v7259_v56 }
  0xbf   :  { %4344 = vmatprep.subr.bf16.mxu0 %v6047_v63  ;;  %v7271_v62 = vld [vmem:[#allocation2 + $0x1a0] sm:$0xff]  ;;  %v390_v0 = vcombine.low %v7261_v57, %v7263_v58 }
  0xc0   :  { %4033 = vmatmul.mubr.bf16.vlgmr.msra.gmra.mrb[0].mxu1 %v884_v4  ;;  %v7273_v63 = vld [vmem:[#allocation2 + $0x1e0] sm:$0xff]  ;;  %v7280_v4 = vrot.slane %v388_v61, %v7153_v54 }
  0xc1   :  { %4334 = vmatmul.mubr.bf16.vlgmr.msra.gmra.mrb[0].mxu0 %v898_v5  ;;  %4044 = vmatpush1.bf16.msra.mxu1 %v6042_v2  ;;  %v6090_v2 = vld [vmem:[#allocation5 + $0x180] ss:$8 sps:$4 sm:$0xff]   ;;  %v678_v5 = vcombine.low %v7271_v62, %v7273_v63  ;;  %v679_v61 = vcombine.high %v7271_v62, %v7273_v63  ;;  %v566_v62 = vcombine.low %v7244_v53, %v7247_v55 }
  0xc2   :  { %4345 = vmatpush1.bf16.msra.mxu0 %v6045_v3  ;;  %4045 = vmatprep.subr.bf16.mxu1 %v6050_v6  ;;  %v6093_v3 = vld [vmem:[#allocation5 + $0x880] ss:$8 sps:$4 sm:$0xff]   ;;  %v6098_v6 = vld [vmem:[#allocation5 + $0x194] ss:$8 sps:$4 sm:$0xff]  }
  0xc3   :  { %4346 = vmatprep.subr.bf16.mxu0 %v6053_v7  ;;  %4075 = vmatprep.mubr.bf16.mxu1 %v887_v9  ;;  %v7285_v7 = vrot.slane %v390_v0, %v7153_v54  ;;  %v7288_v9 = vrot.slane %v676_v1, %v7153_v54  ;;  %v6126_v0 = vld [vmem:[#allocation5 + $0x1e0] ss:$8 sps:$4 sm:$0xff]  }
  0xc4   :  { %v6129_v1 = vld [vmem:[#allocation5 + $0x8e0] ss:$8 sps:$4 sm:$0xff]  }
  0xc5   :  { %4046 = vmatpush1.bf16.msra.mxu1 %v6048_v10  ;;  %v6101_v10 = vld [vmem:[#allocation5 + $0x894] ss:$8 sps:$4 sm:$0xff]   ;;  %v420_v63 = vcombine.low %v7280_v4, %v7285_v7  ;;  %v6141_v53 = vld [vmem:[#allocation5 + $0x900] ss:$8 sps:$4 sm:$0xff]  }
  0xc6   :  { %4347 = vmatpush1.bf16.msra.mxu0 %v6051_v11  ;;  %4047 = vmatprep.subr.bf16.mxu1 %v6056_v15  ;;  %v7291_v11 = vrot.slane %v678_v5, %v7153_v54  ;;  %v421_v15 = vcombine.high %v7280_v4, %v7285_v7  ;;  %v6146_v4 = vld [vmem:[#allocation5 + $0x214] ss:$8 sps:$4 sm:$0xff]  }
  0xc7   :  { %4348 = vmatprep.subr.bf16.mxu0 %v6059_v16  ;;  %v6096_v16 = vld [vmem:[#allocation5 + $0x190] ss:$8 sps:$4 sm:$0xff]   ;;  %v6149_v7 = vld [vmem:[#allocation5 + $0x914] ss:$8 sps:$4 sm:$0xff]  }
  0xc9   :  { %4048 = vmatpush1.bf16.msra.mxu1 %v6054_v22  ;;  %v6099_v22 = vld [vmem:[#allocation5 + $0x890] ss:$8 sps:$4 sm:$0xff]  }
  0xca   :  { %4349 = vmatpush1.bf16.msra.mxu0 %v6057_v24  ;;  %4049 = vmatprep.subr.bf16.mxu1 %v6062_v25  ;;  %v709_v24 = vcombine.high %v7288_v9, %v7291_v11  ;;  %v6104_v25 = vld [vmem:[#allocation5 + $0x1a4] ss:$8 sps:$4 sm:$0xff]  }
  0xcb   :  { %4350 = vmatprep.subr.bf16.mxu0 %v6065_v27  ;;  %v6107_v27 = vld [vmem:[#allocation5 + $0x8a4] ss:$8 sps:$4 sm:$0xff]  }
  0xcd   :  { %4050 = vmatpush1.bf16.msra.mxu1 %v6060_v29  ;;  %v901_v29 = vpack.c.bf16 %v709_v24, %v421_v15  ;;  %v6143_v15 = vld [vmem:[#allocation5 + $0x904] ss:$8 sps:$4 sm:$0xff]   ;;  %v6147_v24 = vld [vmem:[#allocation5 + $0x910] ss:$8 sps:$4 sm:$0xff]  }
  0xce   :  { %4351 = vmatpush1.bf16.msra.mxu0 %v6063_v30  ;;  %4051 = vmatprep.subr.bf16.mxu1 %v6068_v31  ;;  %v6102_v30 = vld [vmem:[#allocation5 + $0x1a0] ss:$8 sps:$4 sm:$0xff]  }
  0xcf   :  { %4352 = vmatprep.subr.bf16.mxu0 %v6071_v32  ;;  %v6105_v31 = vld [vmem:[#allocation5 + $0x8a0] ss:$8 sps:$4 sm:$0xff]   ;;  %4376 = vmatprep.mubr.bf16.mxu0 %v901_v29  ;;  %v6110_v32 = vld [vmem:[#allocation5 + $0x1b4] ss:$8 sps:$4 sm:$0xff]  }
  0xd0   :  { %v6150_v29 = vld [vmem:[#allocation5 + $0x220] ss:$8 sps:$4 sm:$0xff]  }
  0xd1   :  { %4052 = vmatpush1.bf16.msra.mxu1 %v6066_v33  ;;  %v6113_v33 = vld [vmem:[#allocation5 + $0x8b4] ss:$8 sps:$4 sm:$0xff]  }
  0xd2   :  { %4353 = vmatpush1.bf16.msra.mxu0 %v6069_v34  ;;  %4053 = vmatprep.subr.bf16.mxu1 %v6074_v35  ;;  %v6108_v34 = vld [vmem:[#allocation5 + $0x1b0] ss:$8 sps:$4 sm:$0xff]  }
  0xd3   :  { %4354 = vmatprep.subr.bf16.mxu0 %v6077_v36  ;;  %v6111_v35 = vld [vmem:[#allocation5 + $0x8b0] ss:$8 sps:$4 sm:$0xff]   ;;  %v6116_v36 = vld [vmem:[#allocation5 + $0x1c4] ss:$8 sps:$4 sm:$0xff]  }
  0xd5   :  { %4054 = vmatpush1.bf16.msra.mxu1 %v6072_v37  ;;  %v6119_v37 = vld [vmem:[#allocation5 + $0x8c4] ss:$8 sps:$4 sm:$0xff]  }
  0xd6   :  { %4355 = vmatpush1.bf16.msra.mxu0 %v6075_v38  ;;  %4055 = vmatprep.subr.bf16.mxu1 %v6080_v39  ;;  %v6114_v38 = vld [vmem:[#allocation5 + $0x1c0] ss:$8 sps:$4 sm:$0xff]  }
  0xd7   :  { %4356 = vmatprep.subr.bf16.mxu0 %v6083_v40  ;;  %v6117_v39 = vld [vmem:[#allocation5 + $0x8c0] ss:$8 sps:$4 sm:$0xff]   ;;  %v6122_v40 = vld [vmem:[#allocation5 + $0x1d4] ss:$8 sps:$4 sm:$0xff]  }
  0xd9   :  { %4056 = vmatpush1.bf16.msra.mxu1 %v6078_v41  ;;  %v6125_v41 = vld [vmem:[#allocation5 + $0x8d4] ss:$8 sps:$4 sm:$0xff]  }
  0xda   :  { %4357 = vmatpush1.bf16.msra.mxu0 %v6081_v42  ;;  %4057 = vmatprep.subr.bf16.mxu1 %v6086_v43  ;;  %v6120_v42 = vld [vmem:[#allocation5 + $0x1d0] ss:$8 sps:$4 sm:$0xff]  }
  0xdb   :  { %4358 = vmatprep.subr.bf16.mxu0 %v6089_v44  ;;  %v6123_v43 = vld [vmem:[#allocation5 + $0x8d0] ss:$8 sps:$4 sm:$0xff]   ;;  %v6128_v44 = vld [vmem:[#allocation5 + $0x1e4] ss:$8 sps:$4 sm:$0xff]  }
  0xdd   :  { %4058 = vmatpush1.bf16.msra.mxu1 %v6084_v45  ;;  %v6131_v45 = vld [vmem:[#allocation5 + $0x8e4] ss:$8 sps:$4 sm:$0xff]  }
  0xde   :  { %4359 = vmatpush1.bf16.msra.mxu0 %v6087_v47  ;;  %4059 = vmatprep.subr.bf16.mxu1 %v6092_v48  ;;  %v389_v47 = vcombine.high %v7257_v50, %v7259_v56  ;;  %v391_v48 = vcombine.high %v7261_v57, %v7263_v58  ;;  %v7315_v57 = vrot.slane %v679_v61, %v7153_v54  ;;  %v6132_v58 = vld [vmem:[#allocation5 + $0x1f0] ss:$8 sps:$4 sm:$0xff]  }
  0xdf   :  { %4360 = vmatprep.subr.bf16.mxu0 %v6095_v49  ;;  %v677_v49 = vcombine.high %v7265_v59, %v7267_v60  ;;  %v6135_v59 = vld [vmem:[#allocation5 + $0x8f0] ss:$8 sps:$4 sm:$0xff]   ;;  %v278_v60 = vcombine.low %v7238_v51, %v7241_v52  ;;  %v6138_v52 = vld [vmem:[#allocation5 + $0x200] ss:$8 sps:$4 sm:$0xff]  }
  0xe0   :  { %v7306_v5 = vrot.slane %v389_v47, %v7153_v54  ;;  %v7309_v50 = vrot.slane %v391_v48, %v7153_v54 }
  0xe1   :  { %4060 = vmatpush1.bf16.msra.mxu1 %v6090_v2  ;;  %v6134_v2 = vld [vmem:[#allocation5 + $0x1f4] ss:$8 sps:$4 sm:$0xff]   ;;  %v7312_v56 = vrot.slane %v677_v49, %v7153_v54  ;;  %v886_v55 = vpack.c.bf16 %v566_v62, %v278_v60  ;;  %v6164_v49 = vld [vmem:[#allocation5 + $0x244] ss:$8 sps:$4 sm:$0xff]  }
  0xe2   :  { %4361 = vmatpush1.bf16.msra.mxu0 %v6093_v3  ;;  %4061 = vmatprep.subr.bf16.mxu1 %v6098_v6  ;;  %v6137_v3 = vld [vmem:[#allocation5 + $0x8f4] ss:$8 sps:$4 sm:$0xff]   ;;  %v708_v6 = vcombine.low %v7288_v9, %v7291_v11  ;;  %v6144_v11 = vld [vmem:[#allocation5 + $0x210] ss:$8 sps:$4 sm:$0xff]  }
  0xe3   :  { %4362 = vmatprep.subr.bf16.mxu0 %v6101_v10  ;;  %v6140_v10 = vld [vmem:[#allocation5 + $0x204] ss:$8 sps:$4 sm:$0xff]   ;;  %v711_v51 = vcombine.high %v7312_v56, %v7315_v57  ;;  %v6170_v62 = vld [vmem:[#allocation5 + $0x254] ss:$8 sps:$4 sm:$0xff]  }
  0xe5   :  { %4062 = vmatpush1.bf16.msra.mxu1 %v6096_v16  ;;  %v423_v16 = vcombine.high %v7306_v5, %v7309_v50 }
  0xe6   :  { %4363 = vmatpush1.bf16.msra.mxu0 %v6099_v22  ;;  %4063 = vmatprep.subr.bf16.mxu1 %v6104_v25  ;;  %v900_v22 = vpack.c.bf16 %v708_v6, %v420_v63  ;;  %v6152_v25 = vld [vmem:[#allocation5 + $0x224] ss:$8 sps:$4 sm:$0xff]   ;;  %v6173_v63 = vld [vmem:[#allocation5 + $0x954] ss:$8 sps:$4 sm:$0xff]  }
  0xe7   :  { %4364 = vmatprep.subr.bf16.mxu0 %v6107_v27  ;;  %v903_v9 = vpack.c.bf16 %v711_v51, %v423_v16  ;;  %v6155_v27 = vld [vmem:[#allocation5 + $0x924] ss:$8 sps:$4 sm:$0xff]  }
  0xe8   :  { %v6176_v16 = vld [vmem:[#allocation5 + $0x264] ss:$8 sps:$4 sm:$0xff]  }
  0xe9   :  { %4064 = vmatpush1.bf16.msra.mxu1 %v6102_v30  ;;  %v6153_v30 = vld [vmem:[#allocation5 + $0x920] ss:$8 sps:$4 sm:$0xff]   ;;  %v6179_v51 = vld [vmem:[#allocation5 + $0x964] ss:$8 sps:$4 sm:$0xff]  }
  0xea   :  { %4365 = vmatpush1.bf16.msra.mxu0 %v6105_v31  ;;  %4065 = vmatprep.subr.bf16.mxu1 %v6110_v32  ;;  %v6158_v31 = vld [vmem:[#allocation5 + $0x234] ss:$8 sps:$4 sm:$0xff]  }
  0xeb   :  { %4366 = vmatprep.subr.bf16.mxu0 %v6113_v33  ;;  %v6161_v32 = vld [vmem:[#allocation5 + $0x934] ss:$8 sps:$4 sm:$0xff]   ;;  %v7329_v33 = vld [vmem:[#allocation2 + $0x8] sm:$0xff] }
  0xed   :  { %4066 = vmatpush1.bf16.msra.mxu1 %v6108_v34  ;;  %v7331_v34 = vld [vmem:[#allocation2 + $0x48] sm:$0xff] }
  0xee   :  { %4367 = vmatpush1.bf16.msra.mxu0 %v6111_v35  ;;  %4067 = vmatprep.subr.bf16.mxu1 %v6116_v36  ;;  %v7333_v35 = vld [vmem:[#allocation2 + $0x88] sm:$0xff] }
  0xef   :  { %4368 = vmatprep.subr.bf16.mxu0 %v6119_v37  ;;  %v7335_v36 = vld [vmem:[#allocation2 + $0xc8] sm:$0xff] }
  0xf0   :  { %v7337_v37 = vld [vmem:[#allocation2 + $0x108] sm:$0xff] }
  0xf1   :  { %4068 = vmatpush1.bf16.msra.mxu1 %v6114_v38  ;;  %v7339_v38 = vld [vmem:[#allocation2 + $0x148] sm:$0xff] }
  0xf2   :  { %4369 = vmatpush1.bf16.msra.mxu0 %v6117_v39  ;;  %4069 = vmatprep.subr.bf16.mxu1 %v6122_v40  ;;  %v280_v39 = vcombine.low %v7329_v33, %v7331_v34  ;;  %v7343_v40 = vld [vmem:[#allocation2 + $0x188] sm:$0xff] }
  0xf3   :  { %4370 = vmatprep.subr.bf16.mxu0 %v6125_v41  ;;  %v7345_v41 = vld [vmem:[#allocation2 + $0x1c8] sm:$0xff] }
  0xf4   :  { %v7352_v47 = vrot.slane %v280_v39, %v7153_v54  ;;  %v570_v48 = vcombine.low %v7343_v40, %v7345_v41  ;;  %v6203_v39 = vld [vmem:[#allocation5 + $0x9a4] ss:$8 sps:$4 sm:$0xff]  }
  0xf5   :  { %4070 = vmatpush1.bf16.msra.mxu1 %v6120_v42  ;;  %v282_v42 = vcombine.low %v7333_v35, %v7335_v36 }
  0xf6   :  { %4371 = vmatpush1.bf16.msra.mxu0 %v6123_v43  ;;  %4071 = vmatprep.subr.bf16.mxu1 %v6128_v44  ;;  %v568_v43 = vcombine.low %v7337_v37, %v7339_v38  ;;  %v6156_v44 = vld [vmem:[#allocation5 + $0x230] ss:$8 sps:$4 sm:$0xff]  }
  0xf7   :  { %4372 = vmatprep.subr.bf16.mxu0 %v6131_v45  ;;  %v6159_v45 = vld [vmem:[#allocation5 + $0x930] ss:$8 sps:$4 sm:$0xff]   ;;  %v7357_v61 = vrot.slane %v282_v42, %v7153_v54  ;;  %v6198_v42 = vld [vmem:[#allocation5 + $0x2a0] ss:$8 sps:$4 sm:$0xff]  }
  0xf9   :  { %4072 = vmatpush1.bf16.msra.mxu1 %v6126_v0  ;;  %v7360_v0 = vrot.slane %v568_v43, %v7153_v54  ;;  %v6201_v43 = vld [vmem:[#allocation5 + $0x9a0] ss:$8 sps:$4 sm:$0xff]  }
  0xfa   :  { %4373 = vmatpush1.bf16.msra.mxu0 %v6129_v1  ;;  %4073 = vmatprep.subr.bf16.mxu1 %v6134_v2  ;;  %v6167_v1 = vld [vmem:[#allocation5 + $0x944] ss:$8 sps:$4 sm:$0xff]   ;;  %v7363_v2 = vrot.slane %v570_v48, %v7153_v54  ;;  %v6204_v48 = vld [vmem:[#allocation5 + $0x2b0] ss:$8 sps:$4 sm:$0xff]  }
  0xfb   :  { %4374 = vmatprep.subr.bf16.mxu0 %v6137_v3  ;;  %v313_v3 = vcombine.high %v7352_v47, %v7357_v61 }
  0xfc   :  { %v601_v60 = vcombine.high %v7360_v0, %v7363_v2 }
  0xfd   :  { %4074 = vmatpush1.bf16.msra.mxu1 %v6132_v58  ;;  %v6162_v58 = vld [vmem:[#allocation5 + $0x240] ss:$8 sps:$4 sm:$0xff]  }
  0xfe   :  { %4375 = vmatpush1.bf16.msra.mxu0 %v6135_v59  ;;  %4086 = vmatprep.subr.bf16.mxu1 %v6140_v10  ;;  %v6165_v59 = vld [vmem:[#allocation5 + $0x940] ss:$8 sps:$4 sm:$0xff]   ;;  %v889_v6 = vpack.c.bf16 %v601_v60, %v313_v3  ;;  %v6168_v10 = vld [vmem:[#allocation5 + $0x250] ss:$8 sps:$4 sm:$0xff]   ;;  %v6215_v3 = vld [vmem:[#allocation5 + $0x9c4] ss:$8 sps:$4 sm:$0xff]  }
  0xff   :  { %4387 = vmatprep.subr.bf16.mxu0 %v6143_v15  ;;  %v6171_v15 = vld [vmem:[#allocation5 + $0x950] ss:$8 sps:$4 sm:$0xff]   ;;  %v6218_v60 = vld [vmem:[#allocation5 + $0x2d4] ss:$8 sps:$4 sm:$0xff]  }
 0x100   :  { %4076 = vmatmul.mubr.bf16.vlgmr.msra.gmra.mrb[0].mxu1 %v886_v55  ;;  %v6182_v55 = vld [vmem:[#allocation5 + $0x274] ss:$8 sps:$4 sm:$0xff]  }
 0x101   :  { %4377 = vmatmul.mubr.bf16.vlgmr.msra.gmra.mrb[0].mxu0 %v900_v22  ;;  %4087 = vmatpush1.bf16.msra.mxu1 %v6138_v52  ;;  %v6174_v52 = vld [vmem:[#allocation5 + $0x260] ss:$8 sps:$4 sm:$0xff]   ;;  %v6185_v22 = vld [vmem:[#allocation5 + $0x974] ss:$8 sps:$4 sm:$0xff]  }
 0x102   :  { %4388 = vmatpush1.bf16.msra.mxu0 %v6141_v53  ;;  %4088 = vmatprep.subr.bf16.mxu1 %v6146_v4  ;;  %v6177_v53 = vld [vmem:[#allocation5 + $0x960] ss:$8 sps:$4 sm:$0xff]   ;;  %v6180_v4 = vld [vmem:[#allocation5 + $0x270] ss:$8 sps:$4 sm:$0xff]  }
 0x103   :  { %4389 = vmatprep.subr.bf16.mxu0 %v6149_v7  ;;  %4419 = vmatprep.mubr.bf16.mxu0 %v903_v9  ;;  %v6183_v7 = vld [vmem:[#allocation5 + $0x970] ss:$8 sps:$4 sm:$0xff]   ;;  %v6188_v9 = vld [vmem:[#allocation5 + $0x284] ss:$8 sps:$4 sm:$0xff]  }
 0x104   :  { %4118 = vmatprep.mubr.bf16.mxu1 %v889_v6  ;;  %v6219_v6 = vld [vmem:[#allocation5 + $0x9d0] ss:$8 sps:$4 sm:$0xff]  }
 0x105   :  { %4089 = vmatpush1.bf16.msra.mxu1 %v6144_v11  ;;  %v6191_v11 = vld [vmem:[#allocation5 + $0x984] ss:$8 sps:$4 sm:$0xff]  }
 0x106   :  { %4390 = vmatpush1.bf16.msra.mxu0 %v6147_v24  ;;  %4090 = vmatprep.subr.bf16.mxu1 %v6152_v25  ;;  %v6186_v24 = vld [vmem:[#allocation5 + $0x280] ss:$8 sps:$4 sm:$0xff]  }
 0x107   :  { %4391 = vmatprep.subr.bf16.mxu0 %v6155_v27  ;;  %v6189_v25 = vld [vmem:[#allocation5 + $0x980] ss:$8 sps:$4 sm:$0xff]   ;;  %v6194_v27 = vld [vmem:[#allocation5 + $0x294] ss:$8 sps:$4 sm:$0xff]  }
 0x109   :  { %4091 = vmatpush1.bf16.msra.mxu1 %v6150_v29  ;;  %v6197_v29 = vld [vmem:[#allocation5 + $0x994] ss:$8 sps:$4 sm:$0xff]  }
 0x10a   :  { %4392 = vmatpush1.bf16.msra.mxu0 %v6153_v30  ;;  %4092 = vmatprep.subr.bf16.mxu1 %v6158_v31  ;;  %v6192_v30 = vld [vmem:[#allocation5 + $0x290] ss:$8 sps:$4 sm:$0xff]  }
 0x10b   :  { %4393 = vmatprep.subr.bf16.mxu0 %v6161_v32  ;;  %v6195_v31 = vld [vmem:[#allocation5 + $0x990] ss:$8 sps:$4 sm:$0xff]   ;;  %v6200_v32 = vld [vmem:[#allocation5 + $0x2a4] ss:$8 sps:$4 sm:$0xff]  }
 0x10d   :  { %4093 = vmatpush1.bf16.msra.mxu1 %v6156_v44  ;;  %v6206_v44 = vld [vmem:[#allocation5 + $0x2b4] ss:$8 sps:$4 sm:$0xff]  }
 0x10e   :  { %4394 = vmatpush1.bf16.msra.mxu0 %v6159_v45  ;;  %4094 = vmatprep.subr.bf16.mxu1 %v6164_v49  ;;  %v6209_v45 = vld [vmem:[#allocation5 + $0x9b4] ss:$8 sps:$4 sm:$0xff]   ;;  %v6207_v49 = vld [vmem:[#allocation5 + $0x9b0] ss:$8 sps:$4 sm:$0xff]  }
 0x10f   :  { %4395 = vmatprep.subr.bf16.mxu0 %v6167_v1  ;;  %v6212_v1 = vld [vmem:[#allocation5 + $0x2c4] ss:$8 sps:$4 sm:$0xff]  }
 0x111   :  { %4095 = vmatpush1.bf16.msra.mxu1 %v6162_v58  ;;  %v6210_v58 = vld [vmem:[#allocation5 + $0x2c0] ss:$8 sps:$4 sm:$0xff]  }
 0x112   :  { %4396 = vmatpush1.bf16.msra.mxu0 %v6165_v59  ;;  %4096 = vmatprep.subr.bf16.mxu1 %v6170_v62  ;;  %v6213_v59 = vld [vmem:[#allocation5 + $0x9c0] ss:$8 sps:$4 sm:$0xff]   ;;  %v6221_v62 = vld [vmem:[#allocation5 + $0x9d4] ss:$8 sps:$4 sm:$0xff]  }
 0x113   :  { %4397 = vmatprep.subr.bf16.mxu0 %v6173_v63  ;;  %v6216_v63 = vld [vmem:[#allocation5 + $0x2d0] ss:$8 sps:$4 sm:$0xff]  }
 0x115   :  { %4097 = vmatpush1.bf16.msra.mxu1 %v6168_v10  ;;  %v281_v10 = vcombine.high %v7329_v33, %v7331_v34  ;;  %v6233_v33 = vld [vmem:[#allocation5 + $0x9f4] ss:$8 sps:$4 sm:$0xff]   ;;  %v422_v34 = vcombine.low %v7306_v5, %v7309_v50  ;;  %v169_v5 = vld [vmem:[#allocation2 + $0x1a8] sm:$0xff] }
 0x116   :  { %4398 = vmatpush1.bf16.msra.mxu0 %v6171_v15  ;;  %4098 = vmatprep.subr.bf16.mxu1 %v6176_v16  ;;  %v283_v15 = vcombine.high %v7333_v35, %v7335_v36  ;;  %v6224_v16 = vld [vmem:[#allocation5 + $0x2e4] ss:$8 sps:$4 sm:$0xff]   ;;  %v710_v35 = vcombine.low %v7312_v56, %v7315_v57  ;;  %v312_v56 = vcombine.low %v7352_v47, %v7357_v61 }
 0x117   :  { %4399 = vmatprep.subr.bf16.mxu0 %v6179_v51  ;;  %v569_v51 = vcombine.high %v7337_v37, %v7339_v38  ;;  %v7382_v36 = vrot.slane %v281_v10, %v7153_v54  ;;  %v129_v38 = vld [vmem:[#allocation2 + $0x68] sm:$0xff] }
 0x118   :  { %v7385_v37 = vrot.slane %v283_v15, %v7153_v54  ;;  %v6237_v10 = vld [vmem:[#allocation5 + $0xa00] ss:$8 sps:$4 sm:$0xff]  }
 0x119   :  { %4099 = vmatpush1.bf16.msra.mxu1 %v6174_v52  ;;  %v6227_v52 = vld [vmem:[#allocation5 + $0x9e4] ss:$8 sps:$4 sm:$0xff]  }
 0x11a   :  { %4400 = vmatpush1.bf16.msra.mxu0 %v6177_v53  ;;  %4100 = vmatprep.subr.bf16.mxu1 %v6182_v55  ;;  %v571_v53 = vcombine.high %v7343_v40, %v7345_v41  ;;  %v6222_v55 = vld [vmem:[#allocation5 + $0x2e0] ss:$8 sps:$4 sm:$0xff]   ;;  %v7388_v41 = vrot.slane %v569_v51, %v7153_v54 }
 0x11b   :  { %4401 = vmatprep.subr.bf16.mxu0 %v6185_v22  ;;  %v6225_v22 = vld [vmem:[#allocation5 + $0x9e0] ss:$8 sps:$4 sm:$0xff]  }
 0x11c   :  { %v145_v40 = vld [vmem:[#allocation2 + $0xe8] sm:$0xff]  ;;  %v7393_v57 = vrot.slane %v571_v53, %v7153_v54  ;;  %v6242_v53 = vld [vmem:[#allocation5 + $0x314] ss:$8 sps:$4 sm:$0xff]  }
 0x11d   :  { %4101 = vmatpush1.bf16.msra.mxu1 %v6180_v4  ;;  %v121_v4 = vld [vmem:[#allocation2 + $0x28] sm:$0xff] }
 0x11e   :  { %4402 = vmatpush1.bf16.msra.mxu0 %v6183_v7  ;;  %4102 = vmatprep.subr.bf16.mxu1 %v6188_v9  ;;  %v6230_v7 = vld [vmem:[#allocation5 + $0x2f4] ss:$8 sps:$4 sm:$0xff]   ;;  %v137_v9 = vld [vmem:[#allocation2 + $0xa8] sm:$0xff]  ;;  %v424_v50 = vcombine.low %v121_v4, %v129_v38  ;;  %v425_v47 = vcombine.high %v121_v4, %v129_v38 }
 0x11f   :  { %4403 = vmatprep.subr.bf16.mxu0 %v6191_v11  ;;  %v153_v11 = vld [vmem:[#allocation2 + $0x128] sm:$0xff]  ;;  %v427_v61 = vcombine.high %v137_v9, %v145_v40 }
 0x121   :  { %4103 = vmatpush1.bf16.msra.mxu1 %v6186_v24  ;;  %v161_v24 = vld [vmem:[#allocation2 + $0x168] sm:$0xff] }
 0x122   :  { %4404 = vmatpush1.bf16.msra.mxu0 %v6189_v25  ;;  %4104 = vmatprep.subr.bf16.mxu1 %v6194_v27  ;;  %v426_v25 = vcombine.low %v137_v9, %v145_v40  ;;  %v177_v27 = vld [vmem:[#allocation2 + $0x1e8] sm:$0xff]  ;;  %v6240_v9 = vld [vmem:[#allocation5 + $0x310] ss:$8 sps:$4 sm:$0xff]  }
 0x123   :  { %4405 = vmatprep.subr.bf16.mxu0 %v6197_v29  ;;  %v712_v29 = vcombine.low %v153_v11, %v161_v24  ;;  %v6243_v40 = vld [vmem:[#allocation5 + $0xa10] ss:$8 sps:$4 sm:$0xff]  }
 0x125   :  { %4105 = vmatpush1.bf16.msra.mxu1 %v6192_v30  ;;  %v600_v30 = vcombine.low %v7360_v0, %v7363_v2  ;;  %v315_v0 = vcombine.high %v7382_v36, %v7385_v37 }
 0x126   :  { %4406 = vmatpush1.bf16.msra.mxu0 %v6195_v31  ;;  %4106 = vmatprep.subr.bf16.mxu1 %v6200_v32  ;;  %v7398_v31 = vrot.slane %v424_v50, %v7153_v54  ;;  %v7401_v32 = vrot.slane %v426_v25, %v7153_v54  ;;  %v6249_v50 = vld [vmem:[#allocation5 + $0xa20] ss:$8 sps:$4 sm:$0xff]   ;;  %v6254_v25 = vld [vmem:[#allocation5 + $0x334] ss:$8 sps:$4 sm:$0xff]  }
 0x127   :  { %4407 = vmatprep.subr.bf16.mxu0 %v6203_v39  ;;  %v714_v39 = vcombine.low %v169_v5, %v177_v27  ;;  %v888_v15 = vpack.c.bf16 %v600_v30, %v312_v56  ;;  %v6257_v56 = vld [vmem:[#allocation5 + $0xa34] ss:$8 sps:$4 sm:$0xff]   ;;  %v6260_v30 = vld [vmem:[#allocation5 + $0x344] ss:$8 sps:$4 sm:$0xff]  }
 0x129   :  { %4107 = vmatpush1.bf16.msra.mxu1 %v6198_v42  ;;  %v6228_v42 = vld [vmem:[#allocation5 + $0x2f0] ss:$8 sps:$4 sm:$0xff]   ;;  %v7409_v2 = vrot.slane %v714_v39, %v7153_v54  ;;  %v6263_v39 = vld [vmem:[#allocation5 + $0xa44] ss:$8 sps:$4 sm:$0xff]  }
 0x12a   :  { %4408 = vmatpush1.bf16.msra.mxu0 %v6201_v43  ;;  %4108 = vmatprep.subr.bf16.mxu1 %v6206_v44  ;;  %v6231_v43 = vld [vmem:[#allocation5 + $0x9f0] ss:$8 sps:$4 sm:$0xff]   ;;  %v7404_v44 = vrot.slane %v712_v29, %v7153_v54 }
 0x12b   :  { %4409 = vmatprep.subr.bf16.mxu0 %v6209_v45  ;;  %v713_v45 = vcombine.high %v153_v11, %v161_v24  ;;  %v6251_v24 = vld [vmem:[#allocation5 + $0xa24] ss:$8 sps:$4 sm:$0xff]   ;;  %v6255_v29 = vld [vmem:[#allocation5 + $0xa30] ss:$8 sps:$4 sm:$0xff]  }
 0x12d   :  { %4109 = vmatpush1.bf16.msra.mxu1 %v6204_v48  ;;  %v6236_v48 = vld [vmem:[#allocation5 + $0x304] ss:$8 sps:$4 sm:$0xff]  }
 0x12e   :  { %4410 = vmatpush1.bf16.msra.mxu0 %v6207_v49  ;;  %4110 = vmatprep.subr.bf16.mxu1 %v6212_v1  ;;  %v6239_v49 = vld [vmem:[#allocation5 + $0xa04] ss:$8 sps:$4 sm:$0xff]   ;;  %v441_v1 = vrot.slane %v425_v47, %v7153_v54  ;;  %v6266_v47 = vld [vmem:[#allocation5 + $0x354] ss:$8 sps:$4 sm:$0xff]  }
 0x12f   :  { %4411 = vmatprep.subr.bf16.mxu0 %v6215_v3  ;;  %v455_v3 = vrot.slane %v427_v61, %v7153_v54  ;;  %v6269_v61 = vld [vmem:[#allocation5 + $0xa54] ss:$8 sps:$4 sm:$0xff]  }
 0x131   :  { %4111 = vmatpush1.bf16.msra.mxu1 %v6210_v58  ;;  %v715_v58 = vcombine.high %v169_v5, %v177_v27  ;;  %v459_v51 = vcombine.high %v441_v1, %v455_v3  ;;  %v6246_v5 = vld [vmem:[#allocation5 + $0x320] ss:$8 sps:$4 sm:$0xff]   ;;  %v6252_v27 = vld [vmem:[#allocation5 + $0x330] ss:$8 sps:$4 sm:$0xff]  }
 0x132   :  { %4412 = vmatpush1.bf16.msra.mxu0 %v6213_v59  ;;  %4112 = vmatprep.subr.bf16.mxu1 %v6218_v60  ;;  %v603_v59 = vcombine.high %v7388_v41, %v7393_v57  ;;  %v457_v60 = vcombine.high %v7398_v31, %v7401_v32 }
 0x133   :  { %4413 = vmatprep.subr.bf16.mxu0 %v6221_v62  ;;  %v745_v62 = vcombine.high %v7404_v44, %v7409_v2 }
 0x135   :  { %4113 = vmatpush1.bf16.msra.mxu1 %v6216_v63  ;;  %v729_v63 = vrot.slane %v713_v45, %v7153_v54  ;;  %v905_v38 = vpack.c.bf16 %v745_v62, %v457_v60  ;;  %v6264_v45 = vld [vmem:[#allocation5 + $0x350] ss:$8 sps:$4 sm:$0xff]  }
 0x136   :  { %4414 = vmatpush1.bf16.msra.mxu0 %v6219_v6  ;;  %4114 = vmatprep.subr.bf16.mxu1 %v6224_v16  ;;  %v6234_v6 = vld [vmem:[#allocation5 + $0x300] ss:$8 sps:$4 sm:$0xff]   ;;  %v902_v16 = vpack.c.bf16 %v710_v35, %v422_v34  ;;  %v6248_v35 = vld [vmem:[#allocation5 + $0x324] ss:$8 sps:$4 sm:$0xff]   ;;  %v6276_v60 = vld [vmem:[#allocation5 + $0x370] ss:$8 sps:$4 sm:$0xff]  }
 0x137   :  { %4415 = vmatprep.subr.bf16.mxu0 %v6227_v52  ;;  %v743_v52 = vrot.slane %v715_v58, %v7153_v54  ;;  %v6278_v58 = vld [vmem:[#allocation5 + $0x374] ss:$8 sps:$4 sm:$0xff]   ;;  %v6279_v62 = vld [vmem:[#allocation5 + $0xa70] ss:$8 sps:$4 sm:$0xff]  }
 0x139   :  { %4115 = vmatpush1.bf16.msra.mxu1 %v6222_v55  ;;  %v458_v55 = vcombine.low %v441_v1, %v455_v3  ;;  %v747_v4 = vcombine.high %v729_v63, %v743_v52  ;;  %v6270_v1 = vld [vmem:[#allocation5 + $0x360] ss:$8 sps:$4 sm:$0xff]  }
 0x13a   :  { %4416 = vmatpush1.bf16.msra.mxu0 %v6225_v22  ;;  %4116 = vmatprep.subr.bf16.mxu1 %v6230_v7  ;;  %v6245_v22 = vld [vmem:[#allocation5 + $0xa14] ss:$8 sps:$4 sm:$0xff]   ;;  %v746_v7 = vcombine.low %v729_v63, %v743_v52  ;;  %v6273_v3 = vld [vmem:[#allocation5 + $0xa60] ss:$8 sps:$4 sm:$0xff]   ;;  %v6284_v63 = vld [vmem:[#allocation5 + $0x384] ss:$8 sps:$4 sm:$0xff]  }
 0x13b   :  { %4417 = vmatprep.subr.bf16.mxu0 %v6233_v33  ;;  %v891_v33 = vpack.c.bf16 %v603_v59, %v315_v0  ;;  %v7421_v11 = vpack.c.bf16 %v747_v4, %v459_v51  ;;  %v6272_v0 = vld [vmem:[#allocation5 + $0x364] ss:$8 sps:$4 sm:$0xff]   ;;  %v6281_v59 = vld [vmem:[#allocation5 + $0xa74] ss:$8 sps:$4 sm:$0xff]   ;;  %v6288_v52 = vld [vmem:[#allocation5 + $0x390] ss:$8 sps:$4 sm:$0xff]  }
 0x13c   :  { %v7423_v34 = vpack.c.bf16 %v746_v7, %v458_v55  ;;  %v6293_v51 = vld [vmem:[#allocation5 + $0xa94] ss:$8 sps:$4 sm:$0xff]   ;;  %v6296_v55 = vld [vmem:[#allocation5 + $0x3a4] ss:$8 sps:$4 sm:$0xff]   ;;  %v6294_v4 = vld [vmem:[#allocation5 + $0x3a0] ss:$8 sps:$4 sm:$0xff]  }
 0x13d   :  { %4117 = vmatpush1.bf16.msra.mxu1 %v6228_v42  ;;  %v6258_v42 = vld [vmem:[#allocation5 + $0x340] ss:$8 sps:$4 sm:$0xff]  }
 0x13e   :  { %4418 = vmatpush1.bf16.msra.mxu0 %v6231_v43  ;;  %4129 = vmatprep.subr.bf16.mxu1 %v6236_v48  ;;  %v6261_v43 = vld [vmem:[#allocation5 + $0xa40] ss:$8 sps:$4 sm:$0xff]   ;;  %v6267_v48 = vld [vmem:[#allocation5 + $0xa50] ss:$8 sps:$4 sm:$0xff]  }
 0x13f   :  { %4430 = vmatprep.subr.bf16.mxu0 %v6239_v49  ;;  %v6275_v49 = vld [vmem:[#allocation5 + $0xa64] ss:$8 sps:$4 sm:$0xff]   ;;  %v6297_v7 = vld [vmem:[#allocation5 + $0xaa0] ss:$8 sps:$4 sm:$0xff]  }
 0x140   :  { %4119 = vmatmul.mubr.bf16.vlgmr.msra.gmra.mrb[0].mxu1 %v888_v15  ;;  %v6285_v15 = vld [vmem:[#allocation5 + $0xa80] ss:$8 sps:$4 sm:$0xff]  }
 0x141   :  { %4420 = vmatmul.mubr.bf16.vlgmr.msra.gmra.mrb[0].mxu0 %v902_v16  ;;  %4130 = vmatpush1.bf16.msra.mxu1 %v6234_v6  ;;  %v6287_v6 = vld [vmem:[#allocation5 + $0xa84] ss:$8 sps:$4 sm:$0xff]   ;;  %v6290_v16 = vld [vmem:[#allocation5 + $0x394] ss:$8 sps:$4 sm:$0xff]  }
 0x142   :  { %4431 = vmatpush1.bf16.msra.mxu0 %v6237_v10  ;;  %4131 = vmatprep.subr.bf16.mxu1 %v6242_v53  ;;  %v6282_v10 = vld [vmem:[#allocation5 + $0x380] ss:$8 sps:$4 sm:$0xff]   ;;  %v6291_v53 = vld [vmem:[#allocation5 + $0xa90] ss:$8 sps:$4 sm:$0xff]  }
 0x143   :  { %4432 = vmatprep.subr.bf16.mxu0 %v6245_v22  ;;  %4161 = vmatprep.mubr.bf16.mxu1 %v891_v33  ;;  %v6299_v22 = vld [vmem:[#allocation5 + $0xaa4] ss:$8 sps:$4 sm:$0xff]   ;;  %v6302_v33 = vld [vmem:[#allocation5 + $0x3b4] ss:$8 sps:$4 sm:$0xff]  }
 0x144   :  { %4462 = vmatprep.mubr.bf16.mxu0 %v905_v38  ;;  %v6305_v38 = vld [vmem:[#allocation5 + $0xab4] ss:$8 sps:$4 sm:$0xff]  }
 0x145   :  { %4132 = vmatpush1.bf16.msra.mxu1 %v6240_v9  ;;  %v6300_v9 = vld [vmem:[#allocation5 + $0x3b0] ss:$8 sps:$4 sm:$0xff]  }
 0x146   :  { %4433 = vmatpush1.bf16.msra.mxu0 %v6243_v40  ;;  %4133 = vmatprep.subr.bf16.mxu1 %v6248_v35  ;;  %v6303_v40 = vld [vmem:[#allocation5 + $0xab0] ss:$8 sps:$4 sm:$0xff]   ;;  %v6308_v35 = vld [vmem:[#allocation5 + $0x3c4] ss:$8 sps:$4 sm:$0xff]  }
 0x147   :  { %4434 = vmatprep.subr.bf16.mxu0 %v6251_v24  ;;  %v6311_v24 = vld [vmem:[#allocation5 + $0xac4] ss:$8 sps:$4 sm:$0xff]  }
 0x149   :  { %4134 = vmatpush1.bf16.msra.mxu1 %v6246_v5  ;;  %v6306_v5 = vld [vmem:[#allocation5 + $0x3c0] ss:$8 sps:$4 sm:$0xff]  }
 0x14a   :  { %4435 = vmatpush1.bf16.msra.mxu0 %v6249_v50  ;;  %4135 = vmatprep.subr.bf16.mxu1 %v6254_v25  ;;  %v6309_v50 = vld [vmem:[#allocation5 + $0xac0] ss:$8 sps:$4 sm:$0xff]   ;;  %v6314_v25 = vld [vmem:[#allocation5 + $0x3d4] ss:$8 sps:$4 sm:$0xff]  }
 0x14b   :  { %4436 = vmatprep.subr.bf16.mxu0 %v6257_v56  ;;  %v6317_v56 = vld [vmem:[#allocation5 + $0xad4] ss:$8 sps:$4 sm:$0xff]  }
 0x14d   :  { %4136 = vmatpush1.bf16.msra.mxu1 %v6252_v27  ;;  %v118_v27 = vld [vmem:[#allocation2 + $0x10] sm:$0xff] }
 0x14e   :  { %4437 = vmatpush1.bf16.msra.mxu0 %v6255_v29  ;;  %4137 = vmatprep.subr.bf16.mxu1 %v6260_v30  ;;  %v126_v29 = vld [vmem:[#allocation2 + $0x50] sm:$0xff] }
 0x14f   :  { %4438 = vmatprep.subr.bf16.mxu0 %v6263_v39  ;;  %v134_v30 = vld [vmem:[#allocation2 + $0x90] sm:$0xff] }
 0x150   :  { %v142_v39 = vld [vmem:[#allocation2 + $0xd0] sm:$0xff] }
 0x151   :  { %4138 = vmatpush1.bf16.msra.mxu1 %v6258_v42  ;;  %v6312_v42 = vld [vmem:[#allocation5 + $0x3d0] ss:$8 sps:$4 sm:$0xff]  }
 0x152   :  { %4439 = vmatpush1.bf16.msra.mxu0 %v6261_v43  ;;  %4139 = vmatprep.subr.bf16.mxu1 %v6266_v47  ;;  %v6315_v43 = vld [vmem:[#allocation5 + $0xad0] ss:$8 sps:$4 sm:$0xff]  }
 0x153   :  { %4440 = vmatprep.subr.bf16.mxu0 %v6269_v61  ;;  %v150_v47 = vld [vmem:[#allocation2 + $0x110] sm:$0xff] }
 0x154   :  { %v158_v61 = vld [vmem:[#allocation2 + $0x150] sm:$0xff] }
 0x155   :  { %4140 = vmatpush1.bf16.msra.mxu1 %v6264_v45  ;;  %v166_v45 = vld [vmem:[#allocation2 + $0x190] sm:$0xff] }
 0x156   :  { %4441 = vmatpush1.bf16.msra.mxu0 %v6267_v48  ;;  %4141 = vmatprep.subr.bf16.mxu1 %v6272_v0  ;;  %v174_v48 = vld [vmem:[#allocation2 + $0x1d0] sm:$0xff]  ;;  %v6320_v0 = vld [vmem:[#allocation5 + $0x3e4] ss:$8 sps:$4 sm:$0xff]  }
 0x157   :  { %4442 = vmatprep.subr.bf16.mxu0 %v6275_v49  ;;  %v6323_v49 = vld [vmem:[#allocation5 + $0xae4] ss:$8 sps:$4 sm:$0xff]  }
 0x159   :  { %4142 = vmatpush1.bf16.msra.mxu1 %v6270_v1  ;;  %v316_v1 = vcombine.low %v118_v27, %v126_v29 }
 0x15a   :  { %4443 = vmatpush1.bf16.msra.mxu0 %v6273_v3  ;;  %4143 = vmatprep.subr.bf16.mxu1 %v6278_v58  ;;  %v318_v3 = vcombine.low %v134_v30, %v142_v39  ;;  %v604_v58 = vcombine.low %v150_v47, %v158_v61 }
 0x15b   :  { %4444 = vmatprep.subr.bf16.mxu0 %v6281_v59  ;;  %v606_v59 = vcombine.low %v166_v45, %v174_v48 }
 0x15d   :  { %4144 = vmatpush1.bf16.msra.mxu1 %v6276_v60  ;;  %v6318_v60 = vld [vmem:[#allocation5 + $0x3e0] ss:$8 sps:$4 sm:$0xff]  }
 0x15e   :  { %4445 = vmatpush1.bf16.msra.mxu0 %v6279_v62  ;;  %4145 = vmatprep.subr.bf16.mxu1 %v6284_v63  ;;  %v6321_v62 = vld [vmem:[#allocation5 + $0xae0] ss:$8 sps:$4 sm:$0xff]   ;;  %v6326_v63 = vld [vmem:[#allocation5 + $0x3f4] ss:$8 sps:$4 sm:$0xff]  }
 0x15f   :  { %4446 = vmatprep.subr.bf16.mxu0 %v6287_v6  ;;  %v314_v6 = vcombine.low %v7382_v36, %v7385_v37  ;;  %v7440_v36 = vrot.slane %v604_v58, %v7153_v54  ;;  %v7443_v37 = vrot.slane %v606_v59, %v7153_v54  ;;  %v6353_v58 = vld [vmem:[#allocation5 + $0xb34] ss:$8 sps:$4 sm:$0xff]   ;;  %v6348_v59 = vld [vmem:[#allocation5 + $0x430] ss:$8 sps:$4 sm:$0xff]  }
 0x161   :  { %4146 = vmatpush1.bf16.msra.mxu1 %v6282_v10  ;;  %v6329_v10 = vld [vmem:[#allocation5 + $0xaf4] ss:$8 sps:$4 sm:$0xff]  }
 0x162   :  { %4447 = vmatpush1.bf16.msra.mxu0 %v6285_v15  ;;  %4147 = vmatprep.subr.bf16.mxu1 %v6290_v16  ;;  %v602_v15 = vcombine.low %v7388_v41, %v7393_v57  ;;  %v456_v16 = vcombine.low %v7398_v31, %v7401_v32  ;;  %v6327_v41 = vld [vmem:[#allocation5 + $0xaf0] ss:$8 sps:$4 sm:$0xff]   ;;  %v317_v57 = vcombine.high %v118_v27, %v126_v29 }
 0x163   :  { %4448 = vmatprep.subr.bf16.mxu0 %v6293_v51  ;;  %v744_v51 = vcombine.low %v7404_v44, %v7409_v2  ;;  %v605_v31 = vcombine.high %v150_v47, %v158_v61  ;;  %v607_v32 = vcombine.high %v166_v45, %v174_v48  ;;  %v6332_v44 = vld [vmem:[#allocation5 + $0x404] ss:$8 sps:$4 sm:$0xff]   ;;  %v6336_v61 = vld [vmem:[#allocation5 + $0x410] ss:$8 sps:$4 sm:$0xff]  }
 0x164   :  { %v6335_v2 = vld [vmem:[#allocation5 + $0xb04] ss:$8 sps:$4 sm:$0xff]   ;;  %v6339_v45 = vld [vmem:[#allocation5 + $0xb10] ss:$8 sps:$4 sm:$0xff]  }
 0x165   :  { %4148 = vmatpush1.bf16.msra.mxu1 %v6288_v52  ;;  %v7434_v52 = vrot.slane %v316_v1, %v7153_v54  ;;  %v6344_v48 = vld [vmem:[#allocation5 + $0x424] ss:$8 sps:$4 sm:$0xff]   ;;  %v6345_v1 = vld [vmem:[#allocation5 + $0xb20] ss:$8 sps:$4 sm:$0xff]  }
 0x166   :  { %4449 = vmatpush1.bf16.msra.mxu0 %v6291_v53  ;;  %4149 = vmatprep.subr.bf16.mxu1 %v6296_v55  ;;  %v7437_v53 = vrot.slane %v318_v3, %v7153_v54  ;;  %v6324_v55 = vld [vmem:[#allocation5 + $0x3f0] ss:$8 sps:$4 sm:$0xff]   ;;  %v6350_v3 = vld [vmem:[#allocation5 + $0x434] ss:$8 sps:$4 sm:$0xff]  }
 0x167   :  { %4450 = vmatprep.subr.bf16.mxu0 %v6299_v22  ;;  %v319_v22 = vcombine.high %v134_v30, %v142_v39  ;;  %v6341_v39 = vld [vmem:[#allocation5 + $0xb14] ss:$8 sps:$4 sm:$0xff]  }
 0x169   :  { %4150 = vmatpush1.bf16.msra.mxu1 %v6294_v4  ;;  %v333_v4 = vrot.slane %v317_v57, %v7153_v54  ;;  %v6366_v57 = vld [vmem:[#allocation5 + $0x460] ss:$8 sps:$4 sm:$0xff]  }
 0x16a   :  { %4451 = vmatpush1.bf16.msra.mxu0 %v6297_v7  ;;  %4151 = vmatprep.subr.bf16.mxu1 %v6302_v33  ;;  %v347_v7 = vrot.slane %v319_v22, %v7153_v54  ;;  %v621_v33 = vrot.slane %v605_v31, %v7153_v54  ;;  %v6369_v22 = vld [vmem:[#allocation5 + $0xb60] ss:$8 sps:$4 sm:$0xff]   ;;  %v6374_v31 = vld [vmem:[#allocation5 + $0x474] ss:$8 sps:$4 sm:$0xff]  }
 0x16b   :  { %4452 = vmatprep.subr.bf16.mxu0 %v6305_v38  ;;  %v349_v38 = vcombine.high %v7434_v52, %v7437_v53 }
 0x16c   :  { %v350_v29 = vcombine.low %v333_v4, %v347_v7 }
 0x16d   :  { %4152 = vmatpush1.bf16.msra.mxu1 %v6300_v9  ;;  %v637_v9 = vcombine.high %v7440_v36, %v7443_v37 }
 0x16e   :  { %4453 = vmatpush1.bf16.msra.mxu0 %v6303_v40  ;;  %4153 = vmatprep.subr.bf16.mxu1 %v6308_v35  ;;  %v635_v40 = vrot.slane %v607_v32, %v7153_v54  ;;  %v6330_v35 = vld [vmem:[#allocation5 + $0x400] ss:$8 sps:$4 sm:$0xff]   ;;  %v6377_v32 = vld [vmem:[#allocation5 + $0xb74] ss:$8 sps:$4 sm:$0xff]  }
 0x16f   :  { %4454 = vmatprep.subr.bf16.mxu0 %v6311_v24  ;;  %v6333_v24 = vld [vmem:[#allocation5 + $0xb00] ss:$8 sps:$4 sm:$0xff]  }
 0x170   :  { %v639_v27 = vcombine.high %v621_v33, %v635_v40  ;;  %v638_v30 = vcombine.low %v621_v33, %v635_v40  ;;  %v6378_v33 = vld [vmem:[#allocation5 + $0x480] ss:$8 sps:$4 sm:$0xff]   ;;  %v6389_v40 = vld [vmem:[#allocation5 + $0xb94] ss:$8 sps:$4 sm:$0xff]  }
 0x171   :  { %4154 = vmatpush1.bf16.msra.mxu1 %v6306_v5  ;;  %v890_v5 = vpack.c.bf16 %v602_v15, %v314_v6  ;;  %v6354_v6 = vld [vmem:[#allocation5 + $0x440] ss:$8 sps:$4 sm:$0xff]   ;;  %v6365_v15 = vld [vmem:[#allocation5 + $0xb54] ss:$8 sps:$4 sm:$0xff]  }
 0x172   :  { %4455 = vmatpush1.bf16.msra.mxu0 %v6309_v50  ;;  %4155 = vmatprep.subr.bf16.mxu1 %v6314_v25  ;;  %v904_v50 = vpack.c.bf16 %v744_v51, %v456_v16  ;;  %v351_v25 = vcombine.high %v333_v4, %v347_v7  ;;  %v7455_v47 = vpack.c.bf16 %v638_v30, %v350_v29  ;;  %v6360_v16 = vld [vmem:[#allocation5 + $0x450] ss:$8 sps:$4 sm:$0xff]   ;;  %v6380_v4 = vld [vmem:[#allocation5 + $0x484] ss:$8 sps:$4 sm:$0xff]   ;;  %v6401_v29 = vld [vmem:[#allocation5 + $0xbb4] ss:$8 sps:$4 sm:$0xff]  }
 0x173   :  { %4456 = vmatprep.subr.bf16.mxu0 %v6317_v56  ;;  %v6338_v56 = vld [vmem:[#allocation5 + $0x414] ss:$8 sps:$4 sm:$0xff]   ;;  %v6363_v51 = vld [vmem:[#allocation5 + $0xb50] ss:$8 sps:$4 sm:$0xff]   ;;  %v6383_v7 = vld [vmem:[#allocation5 + $0xb84] ss:$8 sps:$4 sm:$0xff]  }
 0x174   :  { %v6396_v30 = vld [vmem:[#allocation5 + $0x4b0] ss:$8 sps:$4 sm:$0xff]  }
 0x175   :  { %4156 = vmatpush1.bf16.msra.mxu1 %v6312_v42  ;;  %v893_v42 = vpack.c.bf16 %v637_v9, %v349_v38  ;;  %v6381_v38 = vld [vmem:[#allocation5 + $0xb80] ss:$8 sps:$4 sm:$0xff]   ;;  %v6386_v9 = vld [vmem:[#allocation5 + $0x494] ss:$8 sps:$4 sm:$0xff]  }
 0x176   :  { %4457 = vmatpush1.bf16.msra.mxu0 %v6315_v43  ;;  %4157 = vmatprep.subr.bf16.mxu1 %v6320_v0  ;;  %v7453_v43 = vpack.c.bf16 %v639_v27, %v351_v25  ;;  %v6347_v0 = vld [vmem:[#allocation5 + $0xb24] ss:$8 sps:$4 sm:$0xff]   ;;  %v6390_v25 = vld [vmem:[#allocation5 + $0x4a0] ss:$8 sps:$4 sm:$0xff]   ;;  %v6398_v27 = vld [vmem:[#allocation5 + $0x4b4] ss:$8 sps:$4 sm:$0xff]  }
 0x177   :  { %4458 = vmatprep.subr.bf16.mxu0 %v6323_v49  ;;  %v6342_v49 = vld [vmem:[#allocation5 + $0x420] ss:$8 sps:$4 sm:$0xff]  }
 0x179   :  { %4158 = vmatpush1.bf16.msra.mxu1 %v6318_v60  ;;  %v6351_v60 = vld [vmem:[#allocation5 + $0xb30] ss:$8 sps:$4 sm:$0xff]  }
 0x17a   :  { %4459 = vmatpush1.bf16.msra.mxu0 %v6321_v62  ;;  %4159 = vmatprep.subr.bf16.mxu1 %v6326_v63  ;;  %v6356_v62 = vld [vmem:[#allocation5 + $0x444] ss:$8 sps:$4 sm:$0xff]  }
 0x17b   :  { %4460 = vmatprep.subr.bf16.mxu0 %v6329_v10  ;;  %v6359_v63 = vld [vmem:[#allocation5 + $0xb44] ss:$8 sps:$4 sm:$0xff]   ;;  %v6362_v10 = vld [vmem:[#allocation5 + $0x454] ss:$8 sps:$4 sm:$0xff]  }
 0x17d   :  { %4160 = vmatpush1.bf16.msra.mxu1 %v6324_v55  ;;  %v6368_v55 = vld [vmem:[#allocation5 + $0x464] ss:$8 sps:$4 sm:$0xff]  }
 0x17e   :  { %4461 = vmatpush1.bf16.msra.mxu0 %v6327_v41  ;;  %4172 = vmatprep.subr.bf16.mxu1 %v6332_v44  ;;  %v6371_v41 = vld [vmem:[#allocation5 + $0xb64] ss:$8 sps:$4 sm:$0xff]   ;;  %v6372_v44 = vld [vmem:[#allocation5 + $0x470] ss:$8 sps:$4 sm:$0xff]  }
 0x17f   :  { %4473 = vmatprep.subr.bf16.mxu0 %v6335_v2  ;;  %v6375_v2 = vld [vmem:[#allocation5 + $0xb70] ss:$8 sps:$4 sm:$0xff]  }
 0x180   :  { %4162 = vmatmul.mubr.bf16.vlgmr.msra.gmra.mrb[0].mxu1 %v890_v5  ;;  %v6392_v5 = vld [vmem:[#allocation5 + $0x4a4] ss:$8 sps:$4 sm:$0xff]  }
 0x181   :  { %4463 = vmatmul.mubr.bf16.vlgmr.msra.gmra.mrb[0].mxu0 %v904_v50  ;;  %4173 = vmatpush1.bf16.msra.mxu1 %v6330_v35  ;;  %v6384_v35 = vld [vmem:[#allocation5 + $0x490] ss:$8 sps:$4 sm:$0xff]   ;;  %v6395_v50 = vld [vmem:[#allocation5 + $0xba4] ss:$8 sps:$4 sm:$0xff]  }
 0x182   :  { %4474 = vmatpush1.bf16.msra.mxu0 %v6333_v24  ;;  %4174 = vmatprep.subr.bf16.mxu1 %v6338_v56  ;;  %v6387_v24 = vld [vmem:[#allocation5 + $0xb90] ss:$8 sps:$4 sm:$0xff]   ;;  %v6393_v56 = vld [vmem:[#allocation5 + $0xba0] ss:$8 sps:$4 sm:$0xff]  }
 0x183   :  { %4475 = vmatprep.subr.bf16.mxu0 %v6341_v39  ;;  %4204 = vmatprep.mubr.bf16.mxu1 %v893_v42  ;;  %v6399_v39 = vld [vmem:[#allocation5 + $0xbb0] ss:$8 sps:$4 sm:$0xff]   ;;  %v6404_v42 = vld [vmem:[#allocation5 + $0x4c4] ss:$8 sps:$4 sm:$0xff]  }
 0x184   :  { %4505 = vmatprep.mubr.bf16.mxu0 %v7421_v11  ;;  %v6357_v11 = vld [vmem:[#allocation5 + $0xb40] ss:$8 sps:$4 sm:$0xff]  }
 0x185   :  { %4175 = vmatpush1.bf16.msra.mxu1 %v6336_v61  ;;  %v6407_v61 = vld [vmem:[#allocation5 + $0xbc4] ss:$8 sps:$4 sm:$0xff]  }
 0x186   :  { %4476 = vmatpush1.bf16.msra.mxu0 %v6339_v45  ;;  %4176 = vmatprep.subr.bf16.mxu1 %v6344_v48  ;;  %v6402_v45 = vld [vmem:[#allocation5 + $0x4c0] ss:$8 sps:$4 sm:$0xff]  }
 0x187   :  { %4477 = vmatprep.subr.bf16.mxu0 %v6347_v0  ;;  %v6405_v48 = vld [vmem:[#allocation5 + $0xbc0] ss:$8 sps:$4 sm:$0xff]   ;;  %v122_v0 = vld [vmem:[#allocation2 + $0x30] sm:$0xff] }
 0x189   :  { %4177 = vmatpush1.bf16.msra.mxu1 %v6342_v49  ;;  %v130_v49 = vld [vmem:[#allocation2 + $0x70] sm:$0xff] }
 0x18a   :  { %4478 = vmatpush1.bf16.msra.mxu0 %v6345_v1  ;;  %4178 = vmatprep.subr.bf16.mxu1 %v6350_v3  ;;  %v138_v1 = vld [vmem:[#allocation2 + $0xb0] sm:$0xff] }
 0x18b   :  { %4479 = vmatprep.subr.bf16.mxu0 %v6353_v58  ;;  %v146_v3 = vld [vmem:[#allocation2 + $0xf0] sm:$0xff] }
 0x18c   :  { %v6410_v58 = vld [vmem:[#allocation5 + $0x4d4] ss:$8 sps:$4 sm:$0xff]  }
 0x18d   :  { %4179 = vmatpush1.bf16.msra.mxu1 %v6348_v59  ;;  %v6413_v59 = vld [vmem:[#allocation5 + $0xbd4] ss:$8 sps:$4 sm:$0xff]  }
 0x18e   :  { %4480 = vmatpush1.bf16.msra.mxu0 %v6351_v60  ;;  %4180 = vmatprep.subr.bf16.mxu1 %v6356_v62  ;;  %v6408_v60 = vld [vmem:[#allocation5 + $0x4d0] ss:$8 sps:$4 sm:$0xff]  }
 0x18f   :  { %4481 = vmatprep.subr.bf16.mxu0 %v6359_v63  ;;  %v6411_v62 = vld [vmem:[#allocation5 + $0xbd0] ss:$8 sps:$4 sm:$0xff]  }
 0x190   :  { %v154_v63 = vld [vmem:[#allocation2 + $0x130] sm:$0xff] }
 0x191   :  { %4181 = vmatpush1.bf16.msra.mxu1 %v6354_v6  ;;  %v162_v6 = vld [vmem:[#allocation2 + $0x170] sm:$0xff] }
 0x192   :  { %4482 = vmatpush1.bf16.msra.mxu0 %v6357_v11  ;;  %4182 = vmatprep.subr.bf16.mxu1 %v6362_v10  ;;  %v460_v11 = vcombine.low %v122_v0, %v130_v49  ;;  %v462_v10 = vcombine.low %v138_v1, %v146_v3 }
 0x193   :  { %4483 = vmatprep.subr.bf16.mxu0 %v6365_v15  ;;  %v170_v15 = vld [vmem:[#allocation2 + $0x1b0] sm:$0xff] }
 0x195   :  { %4183 = vmatpush1.bf16.msra.mxu1 %v6360_v16  ;;  %v178_v16 = vld [vmem:[#allocation2 + $0x1f0] sm:$0xff] }
 0x196   :  { %4484 = vmatpush1.bf16.msra.mxu0 %v6363_v51  ;;  %4184 = vmatprep.subr.bf16.mxu1 %v6368_v55  ;;  %v6416_v51 = vld [vmem:[#allocation5 + $0x4e4] ss:$8 sps:$4 sm:$0xff]  }
 0x197   :  { %4485 = vmatprep.subr.bf16.mxu0 %v6371_v41  ;;  %v6419_v55 = vld [vmem:[#allocation5 + $0xbe4] ss:$8 sps:$4 sm:$0xff]   ;;  %v348_v41 = vcombine.low %v7434_v52, %v7437_v53 }
 0x199   :  { %4185 = vmatpush1.bf16.msra.mxu1 %v6366_v57  ;;  %v636_v57 = vcombine.low %v7440_v36, %v7443_v37 }
 0x19a   :  { %4486 = vmatpush1.bf16.msra.mxu0 %v6369_v22  ;;  %4186 = vmatprep.subr.bf16.mxu1 %v6374_v31  ;;  %v7463_v22 = vrot.slane %v460_v11, %v7153_v54  ;;  %v7466_v31 = vrot.slane %v462_v10, %v7153_v54  ;;  %v6441_v11 = vld [vmem:[#allocation5 + $0xc20] ss:$8 sps:$4 sm:$0xff]   ;;  %v6446_v10 = vld [vmem:[#allocation5 + $0x534] ss:$8 sps:$4 sm:$0xff]  }
 0x19b   :  { %4487 = vmatprep.subr.bf16.mxu0 %v6377_v32  ;;  %v748_v32 = vcombine.low %v154_v63, %v162_v6  ;;  %v892_v52 = vpack.c.bf16 %v636_v57, %v348_v41  ;;  %v6450_v41 = vld [vmem:[#allocation5 + $0x540] ss:$8 sps:$4 sm:$0xff]  }
 0x19c   :  { %v493_v53 = vcombine.high %v7463_v22, %v7466_v31  ;;  %v6453_v57 = vld [vmem:[#allocation5 + $0xc40] ss:$8 sps:$4 sm:$0xff]  }
 0x19d   :  { %4187 = vmatpush1.bf16.msra.mxu1 %v6372_v44  ;;  %v750_v44 = vcombine.low %v170_v15, %v178_v16  ;;  %v7471_v36 = vrot.slane %v748_v32, %v7153_v54  ;;  %v6461_v32 = vld [vmem:[#allocation5 + $0xc54] ss:$8 sps:$4 sm:$0xff]  }
 0x19e   :  { %4488 = vmatpush1.bf16.msra.mxu0 %v6375_v2  ;;  %4188 = vmatprep.subr.bf16.mxu1 %v6380_v4  ;;  %v6414_v2 = vld [vmem:[#allocation5 + $0x4e0] ss:$8 sps:$4 sm:$0xff]  }
 0x19f   :  { %4489 = vmatprep.subr.bf16.mxu0 %v6383_v7  ;;  %v6417_v4 = vld [vmem:[#allocation5 + $0xbe0] ss:$8 sps:$4 sm:$0xff]   ;;  %v6422_v7 = vld [vmem:[#allocation5 + $0x4f4] ss:$8 sps:$4 sm:$0xff]   ;;  %v7474_v37 = vrot.slane %v750_v44, %v7153_v54  ;;  %v6456_v44 = vld [vmem:[#allocation5 + $0x550] ss:$8 sps:$4 sm:$0xff]  }
 0x1a1   :  { %4189 = vmatpush1.bf16.msra.mxu1 %v6378_v33  ;;  %v6425_v33 = vld [vmem:[#allocation5 + $0xbf4] ss:$8 sps:$4 sm:$0xff]  }
 0x1a2   :  { %4490 = vmatpush1.bf16.msra.mxu0 %v6381_v38  ;;  %4190 = vmatprep.subr.bf16.mxu1 %v6386_v9  ;;  %v461_v38 = vcombine.high %v122_v0, %v130_v49  ;;  %v463_v9 = vcombine.high %v138_v1, %v146_v3  ;;  %v6432_v1 = vld [vmem:[#allocation5 + $0x510] ss:$8 sps:$4 sm:$0xff]  }
 0x1a3   :  { %4491 = vmatprep.subr.bf16.mxu0 %v6389_v40  ;;  %v749_v40 = vcombine.high %v154_v63, %v162_v6  ;;  %v6435_v3 = vld [vmem:[#allocation5 + $0xc10] ss:$8 sps:$4 sm:$0xff]   ;;  %v6443_v63 = vld [vmem:[#allocation5 + $0xc24] ss:$8 sps:$4 sm:$0xff]   ;;  %v6438_v6 = vld [vmem:[#allocation5 + $0x520] ss:$8 sps:$4 sm:$0xff]  }
 0x1a4   :  { %v477_v12 = vrot.slane %v461_v38, %v7153_v54  ;;  %v6473_v38 = vld [vmem:[#allocation5 + $0xc74] ss:$8 sps:$4 sm:$0xff]  }
 0x1a5   :  { %4191 = vmatpush1.bf16.msra.mxu1 %v6384_v35  ;;  %v751_v35 = vcombine.high %v170_v15, %v178_v16  ;;  %v765_v18 = vrot.slane %v749_v40, %v7153_v54  ;;  %v6449_v15 = vld [vmem:[#allocation5 + $0xc34] ss:$8 sps:$4 sm:$0xff]   ;;  %v6444_v16 = vld [vmem:[#allocation5 + $0x530] ss:$8 sps:$4 sm:$0xff]  }
 0x1a6   :  { %4492 = vmatpush1.bf16.msra.mxu0 %v6387_v24  ;;  %4192 = vmatprep.subr.bf16.mxu1 %v6392_v5  ;;  %v6420_v24 = vld [vmem:[#allocation5 + $0x4f0] ss:$8 sps:$4 sm:$0xff]  }
 0x1a7   :  { %4493 = vmatprep.subr.bf16.mxu0 %v6395_v50  ;;  %v6423_v5 = vld [vmem:[#allocation5 + $0xbf0] ss:$8 sps:$4 sm:$0xff]   ;;  %v362_v50 = vrot.slane %v352_v20, %v7153_v54  ;;  %v491_v20 = vrot.slane %v463_v9, %v7153_v54 }
 0x1a8   :  { %v6468_v9 = vld [vmem:[#allocation5 + $0x570] ss:$8 sps:$4 sm:$0xff]  }
 0x1a9   :  { %4193 = vmatpush1.bf16.msra.mxu1 %v6390_v25  ;;  %v376_v25 = vrot.slane %v354_v23, %v7153_v54  ;;  %v781_v23 = vcombine.high %v7471_v36, %v7474_v37  ;;  %v495_v19 = vcombine.high %v477_v12, %v491_v20  ;;  %v494_v28 = vcombine.low %v477_v12, %v491_v20  ;;  %v6471_v40 = vld [vmem:[#allocation5 + $0xc70] ss:$8 sps:$4 sm:$0xff]   ;;  %v6491_v12 = vld [vmem:[#allocation5 + $0xca4] ss:$8 sps:$4 sm:$0xff]   ;;  %v6486_v20 = vld [vmem:[#allocation5 + $0x5a0] ss:$8 sps:$4 sm:$0xff]  }
 0x1aa   :  { %4494 = vmatpush1.bf16.msra.mxu0 %v6393_v56  ;;  %4194 = vmatprep.subr.bf16.mxu1 %v6398_v27  ;;  %v650_v56 = vrot.slane %v640_v26, %v7153_v54  ;;  %v6428_v27 = vld [vmem:[#allocation5 + $0x504] ss:$8 sps:$4 sm:$0xff]   ;;  %v779_v26 = vrot.slane %v751_v35, %v7153_v54 }
 0x1ab   :  { %4495 = vmatprep.subr.bf16.mxu0 %v6401_v29  ;;  %v6431_v29 = vld [vmem:[#allocation5 + $0xc04] ss:$8 sps:$4 sm:$0xff]   ;;  %v385_v17 = vcombine.high %v362_v50, %v376_v25 }
 0x1ac   :  { %v783_v21 = vcombine.high %v765_v18, %v779_v26  ;;  %v6476_v35 = vld [vmem:[#allocation5 + $0x584] ss:$8 sps:$4 sm:$0xff]  }
 0x1ad   :  { %4195 = vmatpush1.bf16.msra.mxu1 %v6396_v30  ;;  %v6434_v30 = vld [vmem:[#allocation5 + $0x514] ss:$8 sps:$4 sm:$0xff]  }
 0x1ae   :  { %4496 = vmatpush1.bf16.msra.mxu0 %v6399_v39  ;;  %4196 = vmatprep.subr.bf16.mxu1 %v6404_v42  ;;  %v673_v39 = vcombine.high %v650_v56, %v664_v8  ;;  %v384_v42 = vcombine.low %v362_v50, %v376_v25  ;;  %v6477_v50 = vld [vmem:[#allocation5 + $0xc80] ss:$8 sps:$4 sm:$0xff]   ;;  %v6482_v25 = vld [vmem:[#allocation5 + $0x594] ss:$8 sps:$4 sm:$0xff]  }
 0x1af   :  { %4497 = vmatprep.subr.bf16.mxu0 %v6407_v61  ;;  %v672_v61 = vcombine.low %v650_v56, %v664_v8  ;;  %v6485_v56 = vld [vmem:[#allocation5 + $0xc94] ss:$8 sps:$4 sm:$0xff]   ;;  %v6488_v8 = vld [vmem:[#allocation5 + $0x5a4] ss:$8 sps:$4 sm:$0xff]  }
 0x1b0   :  { %v7498_v0 = vpack.c.bf16 %v673_v39, %v385_v17  ;;  %v6492_v17 = vld [vmem:[#allocation5 + $0x5b0] ss:$8 sps:$4 sm:$0xff]   ;;  %v6498_v39 = vld [vmem:[#allocation5 + $0x5c0] ss:$8 sps:$4 sm:$0xff]  }
 0x1b1   :  { %4197 = vmatpush1.bf16.msra.mxu1 %v6402_v45  ;;  %v782_v45 = vcombine.low %v765_v18, %v779_v26  ;;  %v7500_v49 = vpack.c.bf16 %v672_v61, %v384_v42  ;;  %v6495_v18 = vld [vmem:[#allocation5 + $0xcb0] ss:$8 sps:$4 sm:$0xff]   ;;  %v6500_v26 = vld [vmem:[#allocation5 + $0x5c4] ss:$8 sps:$4 sm:$0xff]   ;;  %v6501_v42 = vld [vmem:[#allocation5 + $0xcc0] ss:$8 sps:$4 sm:$0xff]  }
 0x1b2   :  { %4498 = vmatpush1.bf16.msra.mxu0 %v6405_v48  ;;  %4198 = vmatprep.subr.bf16.mxu1 %v6410_v58  ;;  %v6437_v48 = vld [vmem:[#allocation5 + $0xc14] ss:$8 sps:$4 sm:$0xff]   ;;  %v909_v58 = vpack.c.bf16 %v781_v23, %v493_v53 }
 0x1b3   :  { %4499 = vmatprep.subr.bf16.mxu0 %v6413_v59  ;;  %v7502_v59 = vpack.c.bf16 %v783_v21, %v495_v19  ;;  %v6470_v53 = vld [vmem:[#allocation5 + $0x574] ss:$8 sps:$4 sm:$0xff]   ;;  %v6504_v21 = vld [vmem:[#allocation5 + $0x5d0] ss:$8 sps:$4 sm:$0xff]  }
 0x1b4   :  { %v6497_v23 = vld [vmem:[#allocation5 + $0xcb4] ss:$8 sps:$4 sm:$0xff]  }
 0x1b5   :  { %4199 = vmatpush1.bf16.msra.mxu1 %v6408_v60  ;;  %v7504_v60 = vpack.c.bf16 %v782_v45, %v494_v28  ;;  %v6506_v61 = vld [vmem:[#allocation5 + $0x5d4] ss:$8 sps:$4 sm:$0xff]   ;;  %v6507_v28 = vld [vmem:[#allocation5 + $0xcd0] ss:$8 sps:$4 sm:$0xff]   ;;  %v6512_v45 = vld [vmem:[#allocation5 + $0x5e4] ss:$8 sps:$4 sm:$0xff]  }
 0x1b6   :  { %4500 = vmatpush1.bf16.msra.mxu0 %v6411_v62  ;;  %4200 = vmatprep.subr.bf16.mxu1 %v6416_v51  ;;  %v6440_v62 = vld [vmem:[#allocation5 + $0x524] ss:$8 sps:$4 sm:$0xff]   ;;  %v6447_v51 = vld [vmem:[#allocation5 + $0xc30] ss:$8 sps:$4 sm:$0xff]   ;;  %v6509_v19 = vld [vmem:[#allocation5 + $0xcd4] ss:$8 sps:$4 sm:$0xff]  }
 0x1b7   :  { %4501 = vmatprep.subr.bf16.mxu0 %v6419_v55  ;;  %v6455_v55 = vld [vmem:[#allocation5 + $0xc44] ss:$8 sps:$4 sm:$0xff]  }
 0x1b9   :  { %4201 = vmatpush1.bf16.msra.mxu1 %v6414_v2  ;;  %v6459_v2 = vld [vmem:[#allocation5 + $0xc50] ss:$8 sps:$4 sm:$0xff]  }
 0x1ba   :  { %4502 = vmatpush1.bf16.msra.mxu0 %v6417_v4  ;;  %4202 = vmatprep.subr.bf16.mxu1 %v6422_v7  ;;  %v6464_v4 = vld [vmem:[#allocation5 + $0x564] ss:$8 sps:$4 sm:$0xff]  }
 0x1bb   :  { %4503 = vmatprep.subr.bf16.mxu0 %v6425_v33  ;;  %v6467_v7 = vld [vmem:[#allocation5 + $0xc64] ss:$8 sps:$4 sm:$0xff]   ;;  %v6462_v33 = vld [vmem:[#allocation5 + $0x560] ss:$8 sps:$4 sm:$0xff]  }
 0x1bd   :  { %4203 = vmatpush1.bf16.msra.mxu1 %v6420_v24  ;;  %v6479_v24 = vld [vmem:[#allocation5 + $0xc84] ss:$8 sps:$4 sm:$0xff]  }
 0x1be   :  { %4504 = vmatpush1.bf16.msra.mxu0 %v6423_v5  ;;  %4215 = vmatprep.subr.bf16.mxu1 %v6428_v27  ;;  %v6474_v5 = vld [vmem:[#allocation5 + $0x580] ss:$8 sps:$4 sm:$0xff]   ;;  %v6480_v27 = vld [vmem:[#allocation5 + $0x590] ss:$8 sps:$4 sm:$0xff]  }
 0x1bf   :  { %4516 = vmatprep.subr.bf16.mxu0 %v6431_v29  ;;  %v6483_v29 = vld [vmem:[#allocation5 + $0xc90] ss:$8 sps:$4 sm:$0xff]  }
 0x1c0   :  { %4205 = vmatmul.mubr.bf16.vlgmr.msra.gmra.mrb[0].mxu1 %v892_v52  ;;  %v6465_v52 = vld [vmem:[#allocation5 + $0xc60] ss:$8 sps:$4 sm:$0xff]  }
 0x1c1   :  { %4506 = vmatmul.mubr.bf16.vlgmr.msra.gmra.mrb[0].mxu0 %v7423_v34  ;;  %4216 = vmatpush1.bf16.msra.mxu1 %v6426_v13  ;;  %v6452_v34 = vld [vmem:[#allocation5 + $0x544] ss:$8 sps:$4 sm:$0xff]   ;;  %v6489_v13 = vld [vmem:[#allocation5 + $0xca0] ss:$8 sps:$4 sm:$0xff]  }
 0x1c2   :  { %4517 = vmatpush1.bf16.msra.mxu0 %v6429_v14  ;;  %4217 = vmatprep.subr.bf16.mxu1 %v6434_v30  ;;  %v6494_v14 = vld [vmem:[#allocation5 + $0x5b4] ss:$8 sps:$4 sm:$0xff]   ;;  %v6503_v30 = vld [vmem:[#allocation5 + $0xcc4] ss:$8 sps:$4 sm:$0xff]  }
 0x1c3   :  { %4518 = vmatprep.subr.bf16.mxu0 %v6437_v48  ;;  %4247 = vmatprep.mubr.bf16.mxu1 %v7453_v43  ;;  %v6458_v43 = vld [vmem:[#allocation5 + $0x554] ss:$8 sps:$4 sm:$0xff]   ;;  %v6515_v48 = vld [vmem:[#allocation5 + $0xce4] ss:$8 sps:$4 sm:$0xff]  }
 0x1c4   :  { %4548 = vmatprep.mubr.bf16.mxu0 %v909_v58  ;;  %v6518_v58 = vld [vmem:[#allocation5 + $0x5f4] ss:$8 sps:$4 sm:$0xff]  }
 0x1c5   :  { %4218 = vmatpush1.bf16.msra.mxu1 %v6432_v1  ;;  %v6510_v1 = vld [vmem:[#allocation5 + $0x5e0] ss:$8 sps:$4 sm:$0xff]  }
 0x1c6   :  { %4519 = vmatpush1.bf16.msra.mxu0 %v6435_v3  ;;  %4219 = vmatprep.subr.bf16.mxu1 %v6440_v62  ;;  %v6513_v3 = vld [vmem:[#allocation5 + $0xce0] ss:$8 sps:$4 sm:$0xff]   ;;  %v6521_v62 = vld [vmem:[#allocation5 + $0xcf4] ss:$8 sps:$4 sm:$0xff]  }
 0x1c7   :  { %4520 = vmatprep.subr.bf16.mxu0 %v6443_v63  ;;  %v7508_v63 = vld [vmem:[#allocation2 + $0x38] sm:$0xff] }
 0x1c9   :  { %4220 = vmatpush1.bf16.msra.mxu1 %v6438_v6  ;;  %v7510_v6 = vld [vmem:[#allocation2 + $0x78] sm:$0xff] }
 0x1ca   :  { %4521 = vmatpush1.bf16.msra.mxu0 %v6441_v11  ;;  %4221 = vmatprep.subr.bf16.mxu1 %v6446_v10  ;;  %v7512_v11 = vld [vmem:[#allocation2 + $0xb8] sm:$0xff]  ;;  %v492_v10 = vcombine.low %v7463_v22, %v7466_v31 }
 0x1cb   :  { %4522 = vmatprep.subr.bf16.mxu0 %v6449_v15  ;;  %v780_v15 = vcombine.low %v7471_v36, %v7474_v37  ;;  %v6524_v36 = vld [vmem:[#allocation5 + $0x604] ss:$8 sps:$4 sm:$0xff]  }
 0x1cc   :  { %v6527_v37 = vld [vmem:[#allocation5 + $0xd04] ss:$8 sps:$4 sm:$0xff]  }
 0x1cd   :  { %4222 = vmatpush1.bf16.msra.mxu1 %v6444_v16  ;;  %v7518_v16 = vld [vmem:[#allocation2 + $0xf8] sm:$0xff] }
 0x1ce   :  { %4523 = vmatpush1.bf16.msra.mxu0 %v6447_v51  ;;  %4223 = vmatprep.subr.bf16.mxu1 %v6452_v34  ;;  %v7520_v51 = vld [vmem:[#allocation2 + $0x138] sm:$0xff]  ;;  %v498_v22 = vcombine.low %v7512_v11, %v7518_v16 }
 0x1cf   :  { %4524 = vmatprep.subr.bf16.mxu0 %v6455_v55  ;;  %v7522_v34 = vld [vmem:[#allocation2 + $0x178] sm:$0xff]  ;;  %v496_v55 = vcombine.low %v7508_v63, %v7510_v6 }
 0x1d0   :  { %v784_v31 = vcombine.low %v7520_v51, %v7522_v34 }
 0x1d1   :  { %4224 = vmatpush1.bf16.msra.mxu1 %v6450_v41  ;;  %v6516_v41 = vld [vmem:[#allocation5 + $0x5f0] ss:$8 sps:$4 sm:$0xff]  }
 0x1d2   :  { %4525 = vmatpush1.bf16.msra.mxu0 %v6453_v57  ;;  %4225 = vmatprep.subr.bf16.mxu1 %v6458_v43  ;;  %v6519_v57 = vld [vmem:[#allocation5 + $0xcf0] ss:$8 sps:$4 sm:$0xff]  }
 0x1d3   :  { %4526 = vmatprep.subr.bf16.mxu0 %v6461_v32  ;;  %v7526_v43 = vld [vmem:[#allocation2 + $0x1b8] sm:$0xff] }
 0x1d4   :  { %v7532_v32 = vld [vmem:[#allocation2 + $0x1f8] sm:$0xff] }
 0x1d5   :  { %4226 = vmatpush1.bf16.msra.mxu1 %v6456_v44  ;;  %v7535_v44 = vrot.slane %v496_v55, %v7153_v54  ;;  %v6576_v55 = vld [vmem:[#allocation5 + $0x690] ss:$8 sps:$4 sm:$0xff]  }
 0x1d6   :  { %4527 = vmatpush1.bf16.msra.mxu0 %v6459_v2  ;;  %4227 = vmatprep.subr.bf16.mxu1 %v6464_v4  ;;  %v7538_v2 = vrot.slane %v498_v22, %v7153_v54  ;;  %v786_v4 = vcombine.low %v7526_v43, %v7532_v32  ;;  %v6587_v22 = vld [vmem:[#allocation5 + $0xda4] ss:$8 sps:$4 sm:$0xff]  }
 0x1d7   :  { %4528 = vmatprep.subr.bf16.mxu0 %v6467_v7  ;;  %v7543_v7 = vrot.slane %v784_v31, %v7153_v54  ;;  %v6582_v31 = vld [vmem:[#allocation5 + $0x6a0] ss:$8 sps:$4 sm:$0xff]  }
 0x1d9   :  { %4228 = vmatpush1.bf16.msra.mxu1 %v6462_v33  ;;  %v908_v33 = vpack.c.bf16 %v780_v15, %v492_v10  ;;  %v6578_v10 = vld [vmem:[#allocation5 + $0x694] ss:$8 sps:$4 sm:$0xff]  }
 0x1da   :  { %4529 = vmatpush1.bf16.msra.mxu0 %v6465_v52  ;;  %4229 = vmatprep.subr.bf16.mxu1 %v6470_v53  ;;  %v6522_v52 = vld [vmem:[#allocation5 + $0x600] ss:$8 sps:$4 sm:$0xff]   ;;  %v6581_v15 = vld [vmem:[#allocation5 + $0xd94] ss:$8 sps:$4 sm:$0xff]  }
 0x1db   :  { %4530 = vmatprep.subr.bf16.mxu0 %v6473_v38  ;;  %v6525_v53 = vld [vmem:[#allocation5 + $0xd00] ss:$8 sps:$4 sm:$0xff]   ;;  %v7546_v38 = vrot.slane %v786_v4, %v7153_v54  ;;  %v6593_v4 = vld [vmem:[#allocation5 + $0xdb4] ss:$8 sps:$4 sm:$0xff]  }
 0x1dd   :  { %4230 = vmatpush1.bf16.msra.mxu1 %v6468_v9  ;;  %v528_v9 = vcombine.low %v7535_v44, %v7538_v2 }
 0x1de   :  { %4531 = vmatpush1.bf16.msra.mxu0 %v6471_v40  ;;  %4231 = vmatprep.subr.bf16.mxu1 %v6476_v35  ;;  %v6530_v40 = vld [vmem:[#allocation5 + $0x614] ss:$8 sps:$4 sm:$0xff]  }
 0x1df   :  { %4532 = vmatprep.subr.bf16.mxu0 %v6479_v24  ;;  %v6533_v35 = vld [vmem:[#allocation5 + $0xd14] ss:$8 sps:$4 sm:$0xff]   ;;  %v816_v24 = vcombine.low %v7543_v7, %v7546_v38 }
 0x1e1   :  { %4232 = vmatpush1.bf16.msra.mxu1 %v6474_v5  ;;  %v6528_v5 = vld [vmem:[#allocation5 + $0x610] ss:$8 sps:$4 sm:$0xff]  }
 0x1e2   :  { %4533 = vmatpush1.bf16.msra.mxu0 %v6477_v50  ;;  %4233 = vmatprep.subr.bf16.mxu1 %v6482_v25  ;;  %v6531_v50 = vld [vmem:[#allocation5 + $0xd10] ss:$8 sps:$4 sm:$0xff]   ;;  %v7553_v25 = vpack.c.bf16 %v816_v24, %v528_v9  ;;  %v6599_v9 = vld [vmem:[#allocation5 + $0xdc4] ss:$8 sps:$4 sm:$0xff]   ;;  %v6602_v24 = vld [vmem:[#allocation5 + $0x6d4] ss:$8 sps:$4 sm:$0xff]  }
 0x1e3   :  { %4534 = vmatprep.subr.bf16.mxu0 %v6485_v56  ;;  %v6536_v56 = vld [vmem:[#allocation5 + $0x624] ss:$8 sps:$4 sm:$0xff]  }
 0x1e5   :  { %4234 = vmatpush1.bf16.msra.mxu1 %v6480_v27  ;;  %v6539_v27 = vld [vmem:[#allocation5 + $0xd24] ss:$8 sps:$4 sm:$0xff]  }
 0x1e6   :  { %4535 = vmatpush1.bf16.msra.mxu0 %v6483_v29  ;;  %4235 = vmatprep.subr.bf16.mxu1 %v6488_v8  ;;  %v6534_v29 = vld [vmem:[#allocation5 + $0x620] ss:$8 sps:$4 sm:$0xff]  }
 0x1e7   :  { %4536 = vmatprep.subr.bf16.mxu0 %v6491_v12  ;;  %v6537_v8 = vld [vmem:[#allocation5 + $0xd20] ss:$8 sps:$4 sm:$0xff]   ;;  %v6545_v12 = vld [vmem:[#allocation5 + $0xd34] ss:$8 sps:$4 sm:$0xff]  }
 0x1e9   :  { %4236 = vmatpush1.bf16.msra.mxu1 %v6486_v20  ;;  %v6540_v20 = vld [vmem:[#allocation5 + $0x630] ss:$8 sps:$4 sm:$0xff]  }
 0x1ea   :  { %4537 = vmatpush1.bf16.msra.mxu0 %v6489_v13  ;;  %4237 = vmatprep.subr.bf16.mxu1 %v6494_v14  ;;  %v6543_v13 = vld [vmem:[#allocation5 + $0xd30] ss:$8 sps:$4 sm:$0xff]   ;;  %v6548_v14 = vld [vmem:[#allocation5 + $0x644] ss:$8 sps:$4 sm:$0xff]  }
 0x1eb   :  { %4538 = vmatprep.subr.bf16.mxu0 %v6497_v23  ;;  %v6551_v23 = vld [vmem:[#allocation5 + $0xd44] ss:$8 sps:$4 sm:$0xff]  }
 0x1ed   :  { %4238 = vmatpush1.bf16.msra.mxu1 %v6492_v17  ;;  %v6554_v17 = vld [vmem:[#allocation5 + $0x654] ss:$8 sps:$4 sm:$0xff]  }
 0x1ee   :  { %4539 = vmatpush1.bf16.msra.mxu0 %v6495_v18  ;;  %4239 = vmatprep.subr.bf16.mxu1 %v6500_v26  ;;  %v6557_v18 = vld [vmem:[#allocation5 + $0xd54] ss:$8 sps:$4 sm:$0xff]   ;;  %v6552_v26 = vld [vmem:[#allocation5 + $0x650] ss:$8 sps:$4 sm:$0xff]  }
 0x1ef   :  { %4540 = vmatprep.subr.bf16.mxu0 %v6503_v30  ;;  %v6555_v30 = vld [vmem:[#allocation5 + $0xd50] ss:$8 sps:$4 sm:$0xff]  }
 0x1f1   :  { %4240 = vmatpush1.bf16.msra.mxu1 %v6498_v39  ;;  %v6560_v39 = vld [vmem:[#allocation5 + $0x664] ss:$8 sps:$4 sm:$0xff]  }
 0x1f2   :  { %4541 = vmatpush1.bf16.msra.mxu0 %v6501_v42  ;;  %4241 = vmatprep.subr.bf16.mxu1 %v6506_v61  ;;  %v6563_v42 = vld [vmem:[#allocation5 + $0xd64] ss:$8 sps:$4 sm:$0xff]   ;;  %v6558_v61 = vld [vmem:[#allocation5 + $0x660] ss:$8 sps:$4 sm:$0xff]  }
 0x1f3   :  { %4542 = vmatprep.subr.bf16.mxu0 %v6509_v19  ;;  %v6561_v19 = vld [vmem:[#allocation5 + $0xd60] ss:$8 sps:$4 sm:$0xff]  }
 0x1f5   :  { %4242 = vmatpush1.bf16.msra.mxu1 %v6504_v21  ;;  %v6566_v21 = vld [vmem:[#allocation5 + $0x674] ss:$8 sps:$4 sm:$0xff]  }
 0x1f6   :  { %4543 = vmatpush1.bf16.msra.mxu0 %v6507_v28  ;;  %4243 = vmatprep.subr.bf16.mxu1 %v6512_v45  ;;  %v6569_v28 = vld [vmem:[#allocation5 + $0xd74] ss:$8 sps:$4 sm:$0xff]   ;;  %v6564_v45 = vld [vmem:[#allocation5 + $0x670] ss:$8 sps:$4 sm:$0xff]  }
 0x1f7   :  { %4544 = vmatprep.subr.bf16.mxu0 %v6515_v48  ;;  %v6567_v48 = vld [vmem:[#allocation5 + $0xd70] ss:$8 sps:$4 sm:$0xff]  }
 0x1f9   :  { %4244 = vmatpush1.bf16.msra.mxu1 %v6510_v1  ;;  %v6572_v1 = vld [vmem:[#allocation5 + $0x684] ss:$8 sps:$4 sm:$0xff]  }
 0x1fa   :  { %4545 = vmatpush1.bf16.msra.mxu0 %v6513_v3  ;;  %4245 = vmatprep.subr.bf16.mxu1 %v6518_v58  ;;  %v6575_v3 = vld [vmem:[#allocation5 + $0xd84] ss:$8 sps:$4 sm:$0xff]   ;;  %v6570_v58 = vld [vmem:[#allocation5 + $0x680] ss:$8 sps:$4 sm:$0xff]  }
 0x1fb   :  { %4546 = vmatprep.subr.bf16.mxu0 %v6521_v62  ;;  %v6573_v62 = vld [vmem:[#allocation5 + $0xd80] ss:$8 sps:$4 sm:$0xff]  }
 0x1fd   :  { %4246 = vmatpush1.bf16.msra.mxu1 %v6516_v41  ;;  %v6579_v41 = vld [vmem:[#allocation5 + $0xd90] ss:$8 sps:$4 sm:$0xff]  }
 0x1fe   :  { %4547 = vmatpush1.bf16.msra.mxu0 %v6519_v57  ;;  %4258 = vmatprep.subr.bf16.mxu1 %v6524_v36  ;;  %v6584_v57 = vld [vmem:[#allocation5 + $0x6a4] ss:$8 sps:$4 sm:$0xff]   ;;  %v6585_v36 = vld [vmem:[#allocation5 + $0xda0] ss:$8 sps:$4 sm:$0xff]  }
 0x1ff   :  { %4559 = vmatprep.subr.bf16.mxu0 %v6527_v37  ;;  %v6590_v37 = vld [vmem:[#allocation5 + $0x6b4] ss:$8 sps:$4 sm:$0xff]  }
 0x200   :  { %4248 = vmatmul.mubr.bf16.vlgmr.msra.gmra.mrb[0].mxu1 %v7455_v47  ;;  %v6542_v47 = vld [vmem:[#allocation5 + $0x634] ss:$8 sps:$4 sm:$0xff]  }
 0x201   :  { %4549 = vmatmul.mubr.bf16.vlgmr.msra.gmra.mrb[0].mxu0 %v908_v33  ;;  %4259 = vmatpush1.bf16.msra.mxu1 %v6522_v52  ;;  %v6588_v33 = vld [vmem:[#allocation5 + $0x6b0] ss:$8 sps:$4 sm:$0xff]  }
 0x202   :  { %4560 = vmatpush1.bf16.msra.mxu0 %v6525_v53  ;;  %4260 = vmatprep.subr.bf16.mxu1 %v6530_v40  ;;  %v6591_v52 = vld [vmem:[#allocation5 + $0xdb0] ss:$8 sps:$4 sm:$0xff]   ;;  %v6596_v53 = vld [vmem:[#allocation5 + $0x6c4] ss:$8 sps:$4 sm:$0xff]   ;;  %v6594_v40 = vld [vmem:[#allocation5 + $0x6c0] ss:$8 sps:$4 sm:$0xff]  }
 0x203   :  { %4561 = vmatprep.subr.bf16.mxu0 %v6533_v35  ;;  %4290 = vmatprep.mubr.bf16.mxu1 %v7498_v0  ;;  %v6546_v0 = vld [vmem:[#allocation5 + $0x640] ss:$8 sps:$4 sm:$0xff]  }
 0x204   :  { %4591 = vmatprep.mubr.bf16.mxu0 %v7502_v59  ;;  %v6549_v59 = vld [vmem:[#allocation5 + $0xd40] ss:$8 sps:$4 sm:$0xff]  }
 0x205   :  { %4261 = vmatpush1.bf16.msra.mxu1 %v6528_v5  ;;  %v6597_v35 = vld [vmem:[#allocation5 + $0xdc0] ss:$8 sps:$4 sm:$0xff]   ;;  %v6605_v5 = vld [vmem:[#allocation5 + $0xdd4] ss:$8 sps:$4 sm:$0xff]  }
 0x206   :  { %4562 = vmatpush1.bf16.msra.mxu0 %v6531_v50  ;;  %4262 = vmatprep.subr.bf16.mxu1 %v6536_v56  ;;  %v6600_v50 = vld [vmem:[#allocation5 + $0x6d0] ss:$8 sps:$4 sm:$0xff]  }
 0x207   :  { %4563 = vmatprep.subr.bf16.mxu0 %v6539_v27  ;;  %v6603_v56 = vld [vmem:[#allocation5 + $0xdd0] ss:$8 sps:$4 sm:$0xff]   ;;  %v6608_v27 = vld [vmem:[#allocation5 + $0x6e4] ss:$8 sps:$4 sm:$0xff]  }
 0x209   :  { %4263 = vmatpush1.bf16.msra.mxu1 %v6534_v29  ;;  %v6611_v29 = vld [vmem:[#allocation5 + $0xde4] ss:$8 sps:$4 sm:$0xff]  }
 0x20a   :  { %4564 = vmatpush1.bf16.msra.mxu0 %v6537_v8  ;;  %4264 = vmatprep.subr.bf16.mxu1 %v6542_v47  ;;  %v6606_v8 = vld [vmem:[#allocation5 + $0x6e0] ss:$8 sps:$4 sm:$0xff]  }
 0x20b   :  { %4565 = vmatprep.subr.bf16.mxu0 %v6545_v12  ;;  %v6609_v47 = vld [vmem:[#allocation5 + $0xde0] ss:$8 sps:$4 sm:$0xff]   ;;  %v6614_v12 = vld [vmem:[#allocation5 + $0x6f4] ss:$8 sps:$4 sm:$0xff]  }
 0x20d   :  { %4265 = vmatpush1.bf16.msra.mxu1 %v6540_v20  ;;  %v6617_v20 = vld [vmem:[#allocation5 + $0xdf4] ss:$8 sps:$4 sm:$0xff]  }
 0x20e   :  { %4566 = vmatpush1.bf16.msra.mxu0 %v6543_v13  ;;  %4266 = vmatprep.subr.bf16.mxu1 %v6548_v14  ;;  %v497_v13 = vcombine.high %v7508_v63, %v7510_v6  ;;  %v499_v14 = vcombine.high %v7512_v11, %v7518_v16  ;;  %v6620_v16 = vld [vmem:[#allocation5 + $0xe04] ss:$8 sps:$4 sm:$0xff]  }
 0x20f   :  { %4567 = vmatprep.subr.bf16.mxu0 %v6551_v23  ;;  %v785_v23 = vcombine.high %v7520_v51, %v7522_v34 }
 0x210   :  { %v513_v63 = vrot.slane %v497_v13, %v7153_v54  ;;  %v527_v6 = vrot.slane %v499_v14, %v7153_v54  ;;  %v6683_v13 = vld [vmem:[#allocation5 + $0xf54] ss:$8 sps:$4 sm:$0xff]   ;;  %v6686_v14 = vld [vmem:[#allocation5 + $0xf64] ss:$8 sps:$4 sm:$0xff]  }
 0x211   :  { %4267 = vmatpush1.bf16.msra.mxu1 %v6546_v0  ;;  %v787_v0 = vcombine.high %v7526_v43, %v7532_v32  ;;  %v801_v11 = vrot.slane %v785_v23, %v7153_v54  ;;  %v6684_v23 = vld [vmem:[#allocation5 + $0xf60] ss:$8 sps:$4 sm:$0xff]  }
 0x212   :  { %4568 = vmatpush1.bf16.msra.mxu0 %v6549_v59  ;;  %4268 = vmatprep.subr.bf16.mxu1 %v6554_v17  ;;  %v529_v59 = vcombine.high %v7535_v44, %v7538_v2  ;;  %v817_v17 = vcombine.high %v7543_v7, %v7546_v38  ;;  %v531_v34 = vcombine.high %v513_v63, %v527_v6  ;;  %v6618_v2 = vld [vmem:[#allocation5 + $0xe00] ss:$8 sps:$4 sm:$0xff]   ;;  %v6623_v38 = vld [vmem:[#allocation5 + $0xe14] ss:$8 sps:$4 sm:$0xff]  }
 0x213   :  { %4569 = vmatprep.subr.bf16.mxu0 %v6557_v18  ;;  %v6612_v18 = vld [vmem:[#allocation5 + $0x6f0] ss:$8 sps:$4 sm:$0xff]   ;;  %v815_v51 = vrot.slane %v787_v0, %v7153_v54  ;;  %v530_v32 = vcombine.low %v513_v63, %v527_v6  ;;  %v6689_v0 = vld [vmem:[#allocation5 + $0xf74] ss:$8 sps:$4 sm:$0xff]   ;;  %v6692_v63 = vld [vmem:[#allocation5 + $0xf84] ss:$8 sps:$4 sm:$0xff]  }
 0x214   :  { %v913_v7 = vpack.c.bf16 %v817_v17, %v529_v59  ;;  %v6714_v59 = vld [vmem:[#allocation8] ss:$8 sps:$4 sm:$0xff]   ;;  %v6716_v17 = vld [vmem:[#allocation8 + $0x4] ss:$8 sps:$4 sm:$0xff]   ;;  %v6717_v6 = vld [vmem:[#allocation8 + $0x10] ss:$8 sps:$4 sm:$0xff]  }
 0x215   :  { %4269 = vmatpush1.bf16.msra.mxu1 %v6552_v26  ;;  %v6615_v26 = vld [vmem:[#allocation5 + $0xdf0] ss:$8 sps:$4 sm:$0xff]   ;;  %v819_v43 = vcombine.high %v801_v11, %v815_v51  ;;  %v818_v44 = vcombine.low %v801_v11, %v815_v51  ;;  %v6695_v51 = vld [vmem:[#allocation5 + $0xf94] ss:$8 sps:$4 sm:$0xff]  }
 0x216   :  { %4570 = vmatpush1.bf16.msra.mxu0 %v6555_v30  ;;  %4270 = vmatprep.subr.bf16.mxu1 %v6560_v39  ;;  %v6722_v11 = vld [vmem:[#allocation8 + $0x24] ss:$8 sps:$4 sm:$0xff]  }
 0x217   :  { %4571 = vmatprep.subr.bf16.mxu0 %v6563_v42  ;;  %v7573_v30 = vpack.c.bf16 %v819_v43, %v531_v34  ;;  %v7575_v39 = vpack.c.bf16 %v818_v44, %v530_v32  ;;  %v6621_v42 = vld [vmem:[#allocation5 + $0xe10] ss:$8 sps:$4 sm:$0xff]   ;;  %v6720_v34 = vld [vmem:[#allocation8 + $0x20] ss:$8 sps:$4 sm:$0xff]  }
 0x218   :  { %v6725_v43 = vld [vmem:[#allocation8 + $0x34] ss:$8 sps:$4 sm:$0xff]   ;;  %v6698_v44 = vld [vmem:[#allocation5 + $0xfa4] ss:$8 sps:$4 sm:$0xff]  }
 0x219   :  { %4271 = vmatpush1.bf16.msra.mxu1 %v6558_v61  ;;  %v6626_v61 = vld [vmem:[#allocation5 + $0xe24] ss:$8 sps:$4 sm:$0xff]   ;;  %v6693_v32 = vld [vmem:[#allocation5 + $0xf90] ss:$8 sps:$4 sm:$0xff]  }
 0x21a   :  { %4572 = vmatpush1.bf16.msra.mxu0 %v6561_v19  ;;  %4272 = vmatprep.subr.bf16.mxu1 %v6566_v21  ;;  %v6624_v19 = vld [vmem:[#allocation5 + $0xe20] ss:$8 sps:$4 sm:$0xff]   ;;  %v6629_v21 = vld [vmem:[#allocation5 + $0xe34] ss:$8 sps:$4 sm:$0xff]  }
 0x21b   :  { %4573 = vmatprep.subr.bf16.mxu0 %v6569_v28  ;;  %v6627_v28 = vld [vmem:[#allocation5 + $0xe30] ss:$8 sps:$4 sm:$0xff]  }
 0x21d   :  { %4273 = vmatpush1.bf16.msra.mxu1 %v6564_v45  ;;  %v6632_v45 = vld [vmem:[#allocation5 + $0xe44] ss:$8 sps:$4 sm:$0xff]  }
 0x21e   :  { %4574 = vmatpush1.bf16.msra.mxu0 %v6567_v48  ;;  %4274 = vmatprep.subr.bf16.mxu1 %v6572_v1  ;;  %v6630_v48 = vld [vmem:[#allocation5 + $0xe40] ss:$8 sps:$4 sm:$0xff]   ;;  %v6635_v1 = vld [vmem:[#allocation5 + $0xe54] ss:$8 sps:$4 sm:$0xff]  }
 0x21f   :  { %4575 = vmatprep.subr.bf16.mxu0 %v6575_v3  ;;  %v6636_v3 = vld [vmem:[#allocation5 + $0xe60] ss:$8 sps:$4 sm:$0xff]  }
 0x221   :  { %4275 = vmatpush1.bf16.msra.mxu1 %v6570_v58  ;;  %v6641_v58 = vld [vmem:[#allocation5 + $0xe74] ss:$8 sps:$4 sm:$0xff]  }
 0x222   :  { %4576 = vmatpush1.bf16.msra.mxu0 %v6573_v62  ;;  %4276 = vmatprep.subr.bf16.mxu1 %v6578_v10  ;;  %v6639_v62 = vld [vmem:[#allocation5 + $0xe70] ss:$8 sps:$4 sm:$0xff]   ;;  %v6644_v10 = vld [vmem:[#allocation5 + $0xe84] ss:$8 sps:$4 sm:$0xff]  }
 0x223   :  { %4577 = vmatprep.subr.bf16.mxu0 %v6581_v15  ;;  %v6642_v15 = vld [vmem:[#allocation5 + $0xe80] ss:$8 sps:$4 sm:$0xff]  }
 0x225   :  { %4277 = vmatpush1.bf16.msra.mxu1 %v6576_v55  ;;  %v6647_v55 = vld [vmem:[#allocation5 + $0xe94] ss:$8 sps:$4 sm:$0xff]  }
 0x226   :  { %4578 = vmatpush1.bf16.msra.mxu0 %v6579_v41  ;;  %4278 = vmatprep.subr.bf16.mxu1 %v6584_v57  ;;  %v6645_v41 = vld [vmem:[#allocation5 + $0xe90] ss:$8 sps:$4 sm:$0xff]   ;;  %v6650_v57 = vld [vmem:[#allocation5 + $0xea4] ss:$8 sps:$4 sm:$0xff]  }
 0x227   :  { %4579 = vmatprep.subr.bf16.mxu0 %v6587_v22  ;;  %v6648_v22 = vld [vmem:[#allocation5 + $0xea0] ss:$8 sps:$4 sm:$0xff]  }
 0x229   :  { %4279 = vmatpush1.bf16.msra.mxu1 %v6582_v31  ;;  %v6653_v31 = vld [vmem:[#allocation5 + $0xeb4] ss:$8 sps:$4 sm:$0xff]  }
 0x22a   :  { %4580 = vmatpush1.bf16.msra.mxu0 %v6585_v36  ;;  %4280 = vmatprep.subr.bf16.mxu1 %v6590_v37  ;;  %v6651_v36 = vld [vmem:[#allocation5 + $0xeb0] ss:$8 sps:$4 sm:$0xff]   ;;  %v6656_v37 = vld [vmem:[#allocation5 + $0xec4] ss:$8 sps:$4 sm:$0xff]  }
 0x22b   :  { %4581 = vmatprep.subr.bf16.mxu0 %v6593_v4  ;;  %v6654_v4 = vld [vmem:[#allocation5 + $0xec0] ss:$8 sps:$4 sm:$0xff]  }
 0x22d   :  { %4281 = vmatpush1.bf16.msra.mxu1 %v6588_v33  ;;  %v6659_v33 = vld [vmem:[#allocation5 + $0xed4] ss:$8 sps:$4 sm:$0xff]  }
 0x22e   :  { %4582 = vmatpush1.bf16.msra.mxu0 %v6591_v52  ;;  %4282 = vmatprep.subr.bf16.mxu1 %v6596_v53  ;;  %v6657_v52 = vld [vmem:[#allocation5 + $0xed0] ss:$8 sps:$4 sm:$0xff]   ;;  %v6662_v53 = vld [vmem:[#allocation5 + $0xee4] ss:$8 sps:$4 sm:$0xff]  }
 0x22f   :  { %4583 = vmatprep.subr.bf16.mxu0 %v6599_v9  ;;  %v6660_v9 = vld [vmem:[#allocation5 + $0xee0] ss:$8 sps:$4 sm:$0xff]  }
 0x231   :  { %4283 = vmatpush1.bf16.msra.mxu1 %v6594_v40  ;;  %v6665_v40 = vld [vmem:[#allocation5 + $0xef4] ss:$8 sps:$4 sm:$0xff]  }
 0x232   :  { %4584 = vmatpush1.bf16.msra.mxu0 %v6597_v35  ;;  %4284 = vmatprep.subr.bf16.mxu1 %v6602_v24  ;;  %v6663_v35 = vld [vmem:[#allocation5 + $0xef0] ss:$8 sps:$4 sm:$0xff]   ;;  %v6668_v24 = vld [vmem:[#allocation5 + $0xf04] ss:$8 sps:$4 sm:$0xff]  }
 0x233   :  { %4585 = vmatprep.subr.bf16.mxu0 %v6605_v5  ;;  %v6666_v5 = vld [vmem:[#allocation5 + $0xf00] ss:$8 sps:$4 sm:$0xff]  }
 0x235   :  { %4285 = vmatpush1.bf16.msra.mxu1 %v6600_v50  ;;  %v6671_v50 = vld [vmem:[#allocation5 + $0xf14] ss:$8 sps:$4 sm:$0xff]  }
 0x236   :  { %4586 = vmatpush1.bf16.msra.mxu0 %v6603_v56  ;;  %4286 = vmatprep.subr.bf16.mxu1 %v6608_v27  ;;  %v6669_v56 = vld [vmem:[#allocation5 + $0xf10] ss:$8 sps:$4 sm:$0xff]   ;;  %v6674_v27 = vld [vmem:[#allocation5 + $0xf24] ss:$8 sps:$4 sm:$0xff]  }
 0x237   :  { %4587 = vmatprep.subr.bf16.mxu0 %v6611_v29  ;;  %v6672_v29 = vld [vmem:[#allocation5 + $0xf20] ss:$8 sps:$4 sm:$0xff]  }
 0x239   :  { %4287 = vmatpush1.bf16.msra.mxu1 %v6606_v8  ;;  %v6677_v8 = vld [vmem:[#allocation5 + $0xf34] ss:$8 sps:$4 sm:$0xff]  }
 0x23a   :  { %4588 = vmatpush1.bf16.msra.mxu0 %v6609_v47  ;;  %4288 = vmatprep.subr.bf16.mxu1 %v6614_v12  ;;  %v6675_v47 = vld [vmem:[#allocation5 + $0xf30] ss:$8 sps:$4 sm:$0xff]   ;;  %v6680_v12 = vld [vmem:[#allocation5 + $0xf44] ss:$8 sps:$4 sm:$0xff]  }
 0x23b   :  { %4589 = vmatprep.subr.bf16.mxu0 %v6617_v20  ;;  %v6678_v20 = vld [vmem:[#allocation5 + $0xf40] ss:$8 sps:$4 sm:$0xff]  }
 0x23d   :  { %4289 = vmatpush1.bf16.msra.mxu1 %v6612_v18  ;;  %v6719_v18 = vld [vmem:[#allocation8 + $0x14] ss:$8 sps:$4 sm:$0xff]  }
 0x23e   :  { %4590 = vmatpush1.bf16.msra.mxu0 %v6615_v26  ;;  %v6687_v26 = vld [vmem:[#allocation5 + $0xf70] ss:$8 sps:$4 sm:$0xff]   ;;  %4898 = vmatprep.subr.bf16.mxu1 %v6716_v17 }
 0x23f   :  { %4602 = vmatprep.subr.bf16.mxu0 %v6620_v16  ;;  %v6690_v16 = vld [vmem:[#allocation5 + $0xf80] ss:$8 sps:$4 sm:$0xff]  }
 0x240   :  { %4291 = vmatmul.mubr.bf16.vlgmr.msra.gmra.mrb[0].mxu1 %v7500_v49  ;;  %v6633_v49 = vld [vmem:[#allocation5 + $0xe50] ss:$8 sps:$4 sm:$0xff]  }
 0x241   :  { %4592 = vmatmul.mubr.bf16.vlgmr.msra.gmra.mrb[0].mxu0 %v7504_v60  ;;  %v6638_v60 = vld [vmem:[#allocation5 + $0xe64] ss:$8 sps:$4 sm:$0xff]   ;;  %4899 = vmatpush1.bf16.msra.mxu1 %v6714_v59 }
 0x242   :  { %4603 = vmatpush1.bf16.msra.mxu0 %v6618_v2  ;;  %4634 = vmatprep.mubr.bf16.mxu0 %v913_v7  ;;  %v6723_v2 = vld [vmem:[#allocation8 + $0x30] ss:$8 sps:$4 sm:$0xff]   ;;  %v6728_v7 = vld [vmem:[#allocation8 + $0x44] ss:$8 sps:$4 sm:$0xff]  }
 0x243   :  { %4604 = vmatprep.subr.bf16.mxu0 %v6623_v38  ;;  %4900 = vmatprep.subr.bf16.mxu1 %v6719_v18  ;;  %v6696_v38 = vld [vmem:[#allocation5 + $0xfa0] ss:$8 sps:$4 sm:$0xff]  }
 0x245   :  { %4901 = vmatpush1.bf16.msra.mxu1 %v6717_v6 }
 0x246   :  { %4605 = vmatpush1.bf16.msra.mxu0 %v6621_v42  ;;  %4902 = vmatprep.subr.bf16.mxu1 %v6722_v11  ;;  %v6726_v42 = vld [vmem:[#allocation8 + $0x40] ss:$8 sps:$4 sm:$0xff]  }
 0x247   :  { %4606 = vmatprep.subr.bf16.mxu0 %v6626_v61  ;;  %v6731_v61 = vld [vmem:[#allocation8 + $0x54] ss:$8 sps:$4 sm:$0xff]  }
 0x249   :  { %4903 = vmatpush1.bf16.msra.mxu1 %v6720_v34 }
 0x24a   :  { %4607 = vmatpush1.bf16.msra.mxu0 %v6624_v19  ;;  %4904 = vmatprep.subr.bf16.mxu1 %v6725_v43  ;;  %v6699_v19 = vld [vmem:[#allocation5 + $0xfb0] ss:$8 sps:$4 sm:$0xff]  }
 0x24b   :  { %4608 = vmatprep.subr.bf16.mxu0 %v6629_v21  ;;  %v6704_v21 = vld [vmem:[#allocation5 + $0xfc4] ss:$8 sps:$4 sm:$0xff]  }
 0x24d   :  { %4905 = vmatpush1.bf16.msra.mxu1 %v6723_v2 }
 0x24e   :  { %4609 = vmatpush1.bf16.msra.mxu0 %v6627_v28  ;;  %4906 = vmatprep.subr.bf16.mxu1 %v6728_v7  ;;  %v6729_v28 = vld [vmem:[#allocation8 + $0x50] ss:$8 sps:$4 sm:$0xff]   ;;  %v6762_v7 = vld [vmem:[#allocation11] ss:$8 sps:$4 sm:$0xff]  }
 0x24f   :  { %4610 = vmatprep.subr.bf16.mxu0 %v6632_v45  ;;  %v6734_v45 = vld [vmem:[#allocation8 + $0x64] ss:$8 sps:$4 sm:$0xff]  }
 0x251   :  { %4907 = vmatpush1.bf16.msra.mxu1 %v6726_v42  ;;  %v6770_v42 = vld [vmem:[#allocation11 + $0x24] ss:$8 sps:$4 sm:$0xff]  }
 0x252   :  { %4611 = vmatpush1.bf16.msra.mxu0 %v6630_v48  ;;  %4908 = vmatprep.subr.bf16.mxu1 %v6731_v61  ;;  %v6702_v48 = vld [vmem:[#allocation5 + $0xfc0] ss:$8 sps:$4 sm:$0xff]   ;;  %v6768_v61 = vld [vmem:[#allocation11 + $0x20] ss:$8 sps:$4 sm:$0xff]  }
 0x253   :  { %4612 = vmatprep.subr.bf16.mxu0 %v6635_v1  ;;  %v6707_v1 = vld [vmem:[#allocation5 + $0xfd4] ss:$8 sps:$4 sm:$0xff]  }
 0x255   :  { %4909 = vmatpush1.bf16.msra.mxu1 %v6729_v28  ;;  %v6776_v28 = vld [vmem:[#allocation11 + $0x44] ss:$8 sps:$4 sm:$0xff]  }
 0x256   :  { %4613 = vmatpush1.bf16.msra.mxu0 %v6633_v49  ;;  %v6732_v49 = vld [vmem:[#allocation8 + $0x60] ss:$8 sps:$4 sm:$0xff]   ;;  %4910 = vmatprep.subr.bf16.mxu1 %v6734_v45 }
 0x257   :  { %4614 = vmatprep.subr.bf16.mxu0 %v6638_v60  ;;  %v6737_v60 = vld [vmem:[#allocation8 + $0x74] ss:$8 sps:$4 sm:$0xff]   ;;  %v6774_v45 = vld [vmem:[#allocation11 + $0x40] ss:$8 sps:$4 sm:$0xff]  }
 0x259   :  { %4911 = vmatpush1.bf16.msra.mxu1 %v6732_v49  ;;  %v6782_v49 = vld [vmem:[#allocation11 + $0x64] ss:$8 sps:$4 sm:$0xff]  }
 0x25a   :  { %4615 = vmatpush1.bf16.msra.mxu0 %v6636_v3  ;;  %v6705_v3 = vld [vmem:[#allocation5 + $0xfd0] ss:$8 sps:$4 sm:$0xff]   ;;  %4912 = vmatprep.subr.bf16.mxu1 %v6737_v60  ;;  %v6780_v60 = vld [vmem:[#allocation11 + $0x60] ss:$8 sps:$4 sm:$0xff]  }
 0x25b   :  { %4616 = vmatprep.subr.bf16.mxu0 %v6641_v58  ;;  %v6710_v58 = vld [vmem:[#allocation5 + $0xfe4] ss:$8 sps:$4 sm:$0xff]  }
 0x25e   :  { %4617 = vmatpush1.bf16.msra.mxu0 %v6639_v62  ;;  %v6735_v62 = vld [vmem:[#allocation8 + $0x70] ss:$8 sps:$4 sm:$0xff]  }
 0x25f   :  { %4618 = vmatprep.subr.bf16.mxu0 %v6644_v10  ;;  %v6740_v10 = vld [vmem:[#allocation8 + $0x84] ss:$8 sps:$4 sm:$0xff]   ;;  %4913 = vmatpush1.bf16.msra.mxu1 %v6735_v62 }
 0x260   :  { %4914 = vmatprep.subr.bf16.mxu1 %v6740_v10  ;;  %v6788_v62 = vld [vmem:[#allocation11 + $0x84] ss:$8 sps:$4 sm:$0xff]   ;;  %v6786_v10 = vld [vmem:[#allocation11 + $0x80] ss:$8 sps:$4 sm:$0xff]  }
 0x262   :  { %4619 = vmatpush1.bf16.msra.mxu0 %v6642_v15  ;;  %v6708_v15 = vld [vmem:[#allocation5 + $0xfe0] ss:$8 sps:$4 sm:$0xff]  }
 0x263   :  { %4620 = vmatprep.subr.bf16.mxu0 %v6647_v55  ;;  %v6713_v55 = vld [vmem:[#allocation5 + $0xff4] ss:$8 sps:$4 sm:$0xff]  }
 0x266   :  { %4621 = vmatpush1.bf16.msra.mxu0 %v6645_v41  ;;  %v6738_v41 = vld [vmem:[#allocation8 + $0x80] ss:$8 sps:$4 sm:$0xff]  }
 0x267   :  { %4622 = vmatprep.subr.bf16.mxu0 %v6650_v57  ;;  %v6743_v57 = vld [vmem:[#allocation8 + $0x94] ss:$8 sps:$4 sm:$0xff]   ;;  %4915 = vmatpush1.bf16.msra.mxu1 %v6738_v41  ;;  %v6794_v41 = vld [vmem:[#allocation11 + $0xa4] ss:$8 sps:$4 sm:$0xff]  }
 0x268   :  { %4916 = vmatprep.subr.bf16.mxu1 %v6743_v57  ;;  %v6792_v57 = vld [vmem:[#allocation11 + $0xa0] ss:$8 sps:$4 sm:$0xff]  }
 0x26a   :  { %4623 = vmatpush1.bf16.msra.mxu0 %v6648_v22  ;;  %v6711_v22 = vld [vmem:[#allocation5 + $0xff0] ss:$8 sps:$4 sm:$0xff]  }
 0x26b   :  { %4624 = vmatprep.subr.bf16.mxu0 %v6653_v31  ;;  %v6741_v31 = vld [vmem:[#allocation8 + $0x90] ss:$8 sps:$4 sm:$0xff]  }
 0x26c   :  { %4917 = vmatpush1.bf16.msra.mxu1 %v6741_v31  ;;  %v6795_v31 = vld [vmem:[#allocation11 + $0xb0] ss:$8 sps:$4 sm:$0xff]  }
 0x26e   :  { %4625 = vmatpush1.bf16.msra.mxu0 %v6651_v36  ;;  %v6746_v36 = vld [vmem:[#allocation8 + $0xa4] ss:$8 sps:$4 sm:$0xff]  }
 0x26f   :  { %4626 = vmatprep.subr.bf16.mxu0 %v6656_v37  ;;  %v6744_v37 = vld [vmem:[#allocation8 + $0xa0] ss:$8 sps:$4 sm:$0xff]   ;;  %4918 = vmatprep.subr.bf16.mxu1 %v6746_v36 }
 0x270   :  { %4919 = vmatpush1.bf16.msra.mxu1 %v6744_v37  ;;  %v6800_v36 = vld [vmem:[#allocation11 + $0xc4] ss:$8 sps:$4 sm:$0xff]   ;;  %v6798_v37 = vld [vmem:[#allocation11 + $0xc0] ss:$8 sps:$4 sm:$0xff]  }
 0x272   :  { %4627 = vmatpush1.bf16.msra.mxu0 %v6654_v4  ;;  %v6749_v4 = vld [vmem:[#allocation8 + $0xb4] ss:$8 sps:$4 sm:$0xff]  }
 0x273   :  { %4628 = vmatprep.subr.bf16.mxu0 %v6659_v33  ;;  %v6747_v33 = vld [vmem:[#allocation8 + $0xb0] ss:$8 sps:$4 sm:$0xff]   ;;  %4920 = vmatprep.subr.bf16.mxu1 %v6749_v4 }
 0x274   :  { %4921 = vmatpush1.bf16.msra.mxu1 %v6747_v33  ;;  %v6803_v4 = vld [vmem:[#allocation11 + $0xd4] ss:$8 sps:$4 sm:$0xff]   ;;  %v6801_v33 = vld [vmem:[#allocation11 + $0xd0] ss:$8 sps:$4 sm:$0xff]  }
 0x276   :  { %4629 = vmatpush1.bf16.msra.mxu0 %v6657_v52  ;;  %v6752_v52 = vld [vmem:[#allocation8 + $0xc4] ss:$8 sps:$4 sm:$0xff]  }
 0x277   :  { %4630 = vmatprep.subr.bf16.mxu0 %v6662_v53  ;;  %v6750_v53 = vld [vmem:[#allocation8 + $0xc0] ss:$8 sps:$4 sm:$0xff]   ;;  %4922 = vmatprep.subr.bf16.mxu1 %v6752_v52 }
 0x278   :  { %4923 = vmatpush1.bf16.msra.mxu1 %v6750_v53  ;;  %v6806_v52 = vld [vmem:[#allocation11 + $0xe4] ss:$8 sps:$4 sm:$0xff]   ;;  %v6804_v53 = vld [vmem:[#allocation11 + $0xe0] ss:$8 sps:$4 sm:$0xff]  }
 0x27a   :  { %4631 = vmatpush1.bf16.msra.mxu0 %v6660_v9  ;;  %v6755_v9 = vld [vmem:[#allocation8 + $0xd4] ss:$8 sps:$4 sm:$0xff]  }
 0x27b   :  { %4632 = vmatprep.subr.bf16.mxu0 %v6665_v40  ;;  %v6753_v40 = vld [vmem:[#allocation8 + $0xd0] ss:$8 sps:$4 sm:$0xff]   ;;  %4924 = vmatprep.subr.bf16.mxu1 %v6755_v9 }
 0x27c   :  { %4925 = vmatpush1.bf16.msra.mxu1 %v6753_v40  ;;  %v6809_v9 = vld [vmem:[#allocation11 + $0xf4] ss:$8 sps:$4 sm:$0xff]   ;;  %v6807_v40 = vld [vmem:[#allocation11 + $0xf0] ss:$8 sps:$4 sm:$0xff]  }
 0x27e   :  { %4633 = vmatpush1.bf16.msra.mxu0 %v6663_v35 }
 0x27f   :  { %4645 = vmatprep.subr.bf16.mxu0 %v6668_v24 }
 0x281   :  { %4635 = vmatmul.mubr.bf16.vlgmr.msra.gmra.mrb[0].mxu0 %v7553_v25  ;;  %v6681_v25 = vld [vmem:[#allocation5 + $0xf50] ss:$8 sps:$4 sm:$0xff]  }
 0x282   :  { %4646 = vmatpush1.bf16.msra.mxu0 %v6666_v5  ;;  %4677 = vmatprep.mubr.bf16.mxu0 %v7573_v30  ;;  %v6701_v30 = vld [vmem:[#allocation5 + $0xfb4] ss:$8 sps:$4 sm:$0xff]   ;;  %v6758_v5 = vld [vmem:[#allocation8 + $0xe4] ss:$8 sps:$4 sm:$0xff]  }
 0x283   :  { %4647 = vmatprep.subr.bf16.mxu0 %v6671_v50  ;;  %4926 = vmatprep.subr.bf16.mxu1 %v6758_v5 }
 0x286   :  { %4648 = vmatpush1.bf16.msra.mxu0 %v6669_v56  ;;  %v6756_v56 = vld [vmem:[#allocation8 + $0xe0] ss:$8 sps:$4 sm:$0xff]  }
 0x287   :  { %4649 = vmatprep.subr.bf16.mxu0 %v6674_v27  ;;  %4927 = vmatpush1.bf16.msra.mxu1 %v6756_v56 }
 0x28a   :  { %4650 = vmatpush1.bf16.msra.mxu0 %v6672_v29  ;;  %v6759_v29 = vld [vmem:[#allocation8 + $0xf0] ss:$8 sps:$4 sm:$0xff]  }
 0x28b   :  { %4651 = vmatprep.subr.bf16.mxu0 %v6677_v8  ;;  %v6764_v8 = vld [vmem:[#allocation11 + $0x4] ss:$8 sps:$4 sm:$0xff]  }
 0x28e   :  { %4652 = vmatpush1.bf16.msra.mxu0 %v6675_v47  ;;  %v7583_v47 = vsub.s32 0, %v7148_v46 }
 0x28f   :  { %4653 = vmatprep.subr.bf16.mxu0 %v6680_v12  ;;  %v1428_v12 = vld [vmem:[#allocation7] sm:$0x3] }
 0x292   :  { %4654 = vmatpush1.bf16.msra.mxu0 %v6678_v20  ;;  %v7586_v20 = vsub.s32 1, %v7148_v46 }
 0x293   :  { %4655 = vmatprep.subr.bf16.mxu0 %v6683_v13  ;;  %v1433_v13 = vrot.slane %v1428_v12, %v7583_v47 }
 0x296   :  { %4656 = vmatpush1.bf16.msra.mxu0 %v6681_v25  ;;  %v1437_v25 = vrot.slane %v1428_v12, %v7586_v20 }
 0x297   :  { %4657 = vmatprep.subr.bf16.mxu0 %v6686_v14 }
 0x29a   :  { %4658 = vmatpush1.bf16.msra.mxu0 %v6684_v23 }
 0x29b   :  { %4659 = vmatprep.subr.bf16.mxu0 %v6689_v0 }
 0x29e   :  { %4660 = vmatpush1.bf16.msra.mxu0 %v6687_v26 }
 0x29f   :  { %4661 = vmatprep.subr.bf16.mxu0 %v6692_v63 }
 0x2a2   :  { %4662 = vmatpush1.bf16.msra.mxu0 %v6690_v16 }
 0x2a3   :  { %4663 = vmatprep.subr.bf16.mxu0 %v6695_v51 }
 0x2a6   :  { %4664 = vmatpush1.bf16.msra.mxu0 %v6693_v32 }
 0x2a7   :  { %4665 = vmatprep.subr.bf16.mxu0 %v6698_v44 }
 0x2aa   :  { %4666 = vmatpush1.bf16.msra.mxu0 %v6696_v38  ;;  %v6767_v38 = vld [vmem:[#allocation11 + $0x14] ss:$8 sps:$4 sm:$0xff]  }
 0x2ab   :  { %4667 = vmatprep.subr.bf16.mxu0 %v6701_v30  ;;  %v6765_v30 = vld [vmem:[#allocation11 + $0x10] ss:$8 sps:$4 sm:$0xff]  }
 0x2ae   :  { %4668 = vmatpush1.bf16.msra.mxu0 %v6699_v19  ;;  %v6773_v19 = vld [vmem:[#allocation11 + $0x34] ss:$8 sps:$4 sm:$0xff]  }
 0x2af   :  { %4669 = vmatprep.subr.bf16.mxu0 %v6704_v21  ;;  %v6771_v21 = vld [vmem:[#allocation11 + $0x30] ss:$8 sps:$4 sm:$0xff]  }
 0x2b2   :  { %4670 = vmatpush1.bf16.msra.mxu0 %v6702_v48  ;;  %v6779_v48 = vld [vmem:[#allocation11 + $0x54] ss:$8 sps:$4 sm:$0xff]  }
 0x2b3   :  { %4671 = vmatprep.subr.bf16.mxu0 %v6707_v1  ;;  %v6777_v1 = vld [vmem:[#allocation11 + $0x50] ss:$8 sps:$4 sm:$0xff]  }
 0x2b6   :  { %4672 = vmatpush1.bf16.msra.mxu0 %v6705_v3  ;;  %v6785_v3 = vld [vmem:[#allocation11 + $0x74] ss:$8 sps:$4 sm:$0xff]  }
 0x2b7   :  { %4673 = vmatprep.subr.bf16.mxu0 %v6710_v58  ;;  %v6783_v58 = vld [vmem:[#allocation11 + $0x70] ss:$8 sps:$4 sm:$0xff]  }
 0x2ba   :  { %4674 = vmatpush1.bf16.msra.mxu0 %v6708_v15  ;;  %v6791_v15 = vld [vmem:[#allocation11 + $0x94] ss:$8 sps:$4 sm:$0xff]  }
 0x2bb   :  { %4675 = vmatprep.subr.bf16.mxu0 %v6713_v55  ;;  %v6789_v55 = vld [vmem:[#allocation11 + $0x90] ss:$8 sps:$4 sm:$0xff]  }
 0x2be   :  { %4676 = vmatpush1.bf16.msra.mxu0 %v6711_v22  ;;  %v6797_v22 = vld [vmem:[#allocation11 + $0xb4] ss:$8 sps:$4 sm:$0xff]  }
 0x2c1   :  { %4678 = vmatmul.mubr.bf16.vlgmr.msra.gmra.mrb[0].mxu0 %v7575_v39  ;;  %v6761_v39 = vld [vmem:[#allocation8 + $0xf4] ss:$8 sps:$4 sm:$0xff]  }
 0x2c2   :  { %4928 = vmatprep.subr.bf16.mxu1 %v6761_v39 }
 0x2c3   :  { %4929 = vmatpush1.bf16.msra.mxu1 %v6759_v29 }
 0x2c4   :  { %5151 = vmatprep.subr.bf16.mxu1 %v6764_v8 }
 0x313   :  { %v4292_v35 = vpop.f32.mrb[0].mxu1 }
 0x314   :  { %v4294_v24 = vpop.f32.mrb[1].mxu1  ;;  %v5868_v14 = vadd.f32 %v4292_v35, %v1433_v13  ;;  %v4726_v35 = vld [vmem:[#allocation10] sm:$0x3] }
 0x315   :  { %v4296_v50 = vpop.f32.mrb[2].mxu1  ;;  %v5870_v23 = vadd.f32 %v4294_v24, %v1437_v25  ;;  %v4731_v24 = vrot.slane %v4726_v35, %v7583_v47  ;;  %v4735_v5 = vrot.slane %v4726_v35, %v7586_v20 }
 0x316   :  { %v4298_v27 = vpop.f32.mrb[3].mxu1  ;;  %v5872_v59 = vadd.f32 %v4296_v50, %v1433_v13 }
 0x317   :  { %v5874_v26 = vadd.f32 %v4298_v27, %v1437_v25 }
 0x394   :  { %v4679_v0 = vpop.f32.mrb[0].mxu0 }
 0x395   :  { %v5869_v17 = vadd.f32 %v5868_v14, %v4679_v0  ;;  %v4681_v18 = vpop.f32.mrb[1].mxu0 }
 0x396   :  { %v5871_v63 = vadd.f32 %v5870_v23, %v4681_v18  ;;  %v4683_v6 = vpop.f32.mrb[2].mxu0  ;;  %v4979_v18 = vld [vmem:[#allocation13] sm:$0x3] }
 0x397   :  { %v5873_v11 = vadd.f32 %v5872_v59, %v4683_v6  ;;  %v4685_v16 = vpop.f32.mrb[3].mxu0  ;;  %v4688_v34 = vmax.f32 %v5869_v17, 0.0 }
 0x398   :  { %v5875_v51 = vadd.f32 %v5874_v26, %v4685_v16  ;;  %v4689_v46 = vmax.f32 %v5871_v63, 0.0  ;;  %v4984_v26 = vrot.slane %v4979_v18, %v7583_v47  ;;  %v4988_v63 = vrot.slane %v4979_v18, %v7586_v20 }
 0x399   :  { %v4690_v43 = vmax.f32 %v5873_v11, 0.0 }
 0x39a   :  { %v4691_v32 = vmax.f32 %v5875_v51, 0.0 }
 0x39b   :  { %v4692_v44 = vpack.c.bf16 %v4690_v43, %v4688_v34 }
 0x39c   :  { %v4693_v2 = vpack.c.bf16 %v4691_v32, %v4689_v46 }
 0x39e   :  { %4930 = vmatprep.mubr.bf16.mxu1 %v4693_v2 }
 0x39f   :  { %4931 = vmatmul.mubr.bf16.vlgmr.msra.gmra.mrb[4].mxu1 %v4692_v44 }
 0x3a0   :  { %5152 = vmatpush1.bf16.msra.mxu1 %v6762_v7 }
 0x3a1   :  { %5153 = vmatprep.subr.bf16.mxu1 %v6767_v38 }
 0x3a4   :  { %5154 = vmatpush1.bf16.msra.mxu1 %v6765_v30 }
 0x3a5   :  { %5155 = vmatprep.subr.bf16.mxu1 %v6770_v42 }
 0x3a8   :  { %5156 = vmatpush1.bf16.msra.mxu1 %v6768_v61 }
 0x3a9   :  { %5157 = vmatprep.subr.bf16.mxu1 %v6773_v19 }
 0x3ac   :  { %5158 = vmatpush1.bf16.msra.mxu1 %v6771_v21 }
 0x3ad   :  { %5159 = vmatprep.subr.bf16.mxu1 %v6776_v28 }
 0x3b0   :  { %5160 = vmatpush1.bf16.msra.mxu1 %v6774_v45 }
 0x3b1   :  { %5161 = vmatprep.subr.bf16.mxu1 %v6779_v48 }
 0x3b4   :  { %5162 = vmatpush1.bf16.msra.mxu1 %v6777_v1 }
 0x3b5   :  { %5163 = vmatprep.subr.bf16.mxu1 %v6782_v49 }
 0x3b8   :  { %5164 = vmatpush1.bf16.msra.mxu1 %v6780_v60 }
 0x3b9   :  { %5165 = vmatprep.subr.bf16.mxu1 %v6785_v3 }
 0x3bc   :  { %5166 = vmatpush1.bf16.msra.mxu1 %v6783_v58 }
 0x3bd   :  { %5167 = vmatprep.subr.bf16.mxu1 %v6788_v62 }
 0x3c0   :  { %5168 = vmatpush1.bf16.msra.mxu1 %v6786_v10 }
 0x3c1   :  { %5169 = vmatprep.subr.bf16.mxu1 %v6791_v15 }
 0x3c4   :  { %5170 = vmatpush1.bf16.msra.mxu1 %v6789_v55 }
 0x3c5   :  { %5171 = vmatprep.subr.bf16.mxu1 %v6794_v41 }
 0x3c8   :  { %5172 = vmatpush1.bf16.msra.mxu1 %v6792_v57 }
 0x3c9   :  { %5173 = vmatprep.subr.bf16.mxu1 %v6797_v22 }
 0x3cc   :  { %5174 = vmatpush1.bf16.msra.mxu1 %v6795_v31 }
 0x3cd   :  { %5175 = vmatprep.subr.bf16.mxu1 %v6800_v36 }
 0x3d0   :  { %5176 = vmatpush1.bf16.msra.mxu1 %v6798_v37 }
 0x3d1   :  { %5177 = vmatprep.subr.bf16.mxu1 %v6803_v4 }
 0x3d4   :  { %5178 = vmatpush1.bf16.msra.mxu1 %v6801_v33 }
 0x3d5   :  { %5179 = vmatprep.subr.bf16.mxu1 %v6806_v52 }
 0x3d8   :  { %5180 = vmatpush1.bf16.msra.mxu1 %v6804_v53 }
 0x3d9   :  { %5181 = vmatprep.subr.bf16.mxu1 %v6809_v9 }
 0x3dc   :  { %5182 = vmatpush1.bf16.msra.mxu1 %v6807_v40 }
 0x472   :  { %v4932_v50 = vpop.f32.mrb[4].mxu1 }
 0x473   :  { %v4933_v56 = vadd.f32 %v4932_v50, %v4731_v24  ;;  %v4934_v27 = vpop.f32.mrb[5].mxu1 }
 0x474   :  { %v4935_v39 = vadd.f32 %v4934_v27, %v4735_v5  ;;  %v4936_v29 = vpop.f32.mrb[6].mxu1 }
 0x475   :  { %v4937_v8 = vadd.f32 %v4936_v29, %v4731_v24  ;;  %v4938_v12 = vpop.f32.mrb[7].mxu1  ;;  %v4941_v25 = vmax.f32 %v4933_v56, 0.0 }
 0x476   :  { %v4939_v13 = vadd.f32 %v4938_v12, %v4735_v5  ;;  %v4942_v23 = vmax.f32 %v4935_v39, 0.0 }
 0x477   :  { %v4943_v14 = vmax.f32 %v4937_v8, 0.0 }
 0x478   :  { %v4944_v0 = vmax.f32 %v4939_v13, 0.0 }
 0x479   :  { %v4945_v59 = vpack.c.bf16 %v4943_v14, %v4941_v25 }
 0x47a   :  { %v4946_v17 = vpack.c.bf16 %v4944_v0, %v4942_v23 }
 0x47c   :  { %5183 = vmatprep.mubr.bf16.mxu1 %v4946_v17 }
 0x47d   :  { %5184 = vmatmul.mubr.bf16.vlgmr.msra.gmra.mrb[8].mxu1 %v4945_v59 }
 0x550   :  { %v5185_v6 = vpop.f32.mrb[8].mxu1 }
 0x551   :  { %v5186_v11 = vadd.f32 %v5185_v6, %v4984_v26  ;;  %v5187_v16 = vpop.f32.mrb[9].mxu1 }
 0x552   :  { %v5188_v51 = vadd.f32 %v5187_v16, %v4988_v63  ;;  %v5189_v34 = vpop.f32.mrb[10].mxu1 }
 0x553   :  { %v5190_v43 = vadd.f32 %v5189_v34, %v4984_v26  ;;  %v5191_v46 = vpop.f32.mrb[11].mxu1  ;;  %v5194_v32 = vmul.f32 %v5186_v11, %v5186_v11 }
 0x554   :  { %v5192_v44 = vadd.f32 %v5191_v46, %v4988_v63  ;;  %v5195_v2 = vmul.f32 %v5188_v51, %v5188_v51 }
 0x555   :  { %v5196_v7 = vmul.f32 %v5190_v43, %v5190_v43 }
 0x556   :  { %v5197_v38 = vmul.f32 %v5192_v44, %v5192_v44  ;;  %v5198_v30 = vadd.f32 %v5195_v2, %v5194_v32 }
 0x558   :  { %5199 = vadd.xlane.f32.xlu0 %v5198_v30  ;;  %v5201_v42 = vadd.f32 %v5197_v38, %v5196_v7 }
 0x55c   :  { %5202 = vadd.xlane.f32.xlu0 %v5201_v42 }
 0x5e5   :  { %v5200_v61 = vpop.xlane.xlu0 %5199 }
 0x5e6   :  { %v5204_v47 = vmax.f32 %v5200_v61, 1e-24 }
 0x5e8   :  { %6810 = vrsqrt.f32 %v5204_v47 }
 0x5e9   :  { %v5203_v20 = vpop.xlane.xlu0 %5202 }
 0x5ea   :  { %v5205_v19 = vmax.f32 %v5203_v20, 1e-24 }
 0x5ec   :  { %6812 = vrsqrt.f32 %v5205_v19 }
 0x5f2   :  { %v6811_v21 = vpop.eup %6810 }
 0x5f3   :  { %v5208_v28 = vmul.f32 %v6811_v21, %v5186_v11  ;;  %v5209_v45 = vmul.f32 %v6811_v21, %v5188_v51 }
 0x5f5   :  { %v5216_v48 = vcombine.low %v5208_v28, %v5209_v45  ;;  %v5217_v1 = vcombine.high %v5208_v28, %v5209_v45 }
 0x5f6   :  { %v6813_v49 = vpop.eup %6812 }
 0x5f7   :  { %v5224_v60 = vrot.slane %v5216_v48, %v7153_v54  ;;  %v5231_v3 = vrot.slane %v5217_v1, %v7153_v54  ;;  %5864 = vst.sshfl [vmem:[#allocation14] sm:$0x33 pattern:$0x76325410] %v5216_v48  ;;  %v5210_v58 = vmul.f32 %v6813_v49, %v5190_v43  ;;  %v5211_v62 = vmul.f32 %v6813_v49, %v5192_v44 }
 0x5f8   :  { %5865 = vst.sshfl [vmem:[#allocation14 + $0x8] sm:$0x33 pattern:$0x76325410] %v5217_v1 }
 0x5f9   :  { %v5232_v10 = vcombine.high %v5224_v60, %v5224_v60  ;;  %v5233_v15 = vcombine.high %v5231_v3, %v5231_v3  ;;  %v5234_v55 = vcombine.low %v5210_v58, %v5211_v62  ;;  %v5235_v41 = vcombine.high %v5210_v58, %v5211_v62 }
 0x5fb   :  { %5261 = vst [vmem:[#allocation14 + $0x4] sm:$0xf] %v5232_v10  ;;  %5263 = vst [vmem:[#allocation14 + $0xc] sm:$0xf] %v5233_v15  ;;  %v5242_v57 = vrot.slane %v5234_v55, %v7153_v54  ;;  %v5249_v22 = vrot.slane %v5235_v41, %v7153_v54 }
 0x5fc   :  { %5866 = vst.sshfl [vmem:[#allocation14 + $0x10] sm:$0x33 pattern:$0x76325410] %v5234_v55 }
 0x5fd   :  { %5867 = vst.sshfl [vmem:[#allocation14 + $0x18] sm:$0x33 pattern:$0x76325410] %v5235_v41  ;;  %v5250_v31 = vcombine.high %v5242_v57, %v5242_v57  ;;  %v5251_v36 = vcombine.high %v5249_v22, %v5249_v22 }
 0x5ff   :  { %5265 = vst [vmem:[#allocation14 + $0x14] sm:$0xf] %v5250_v31  ;;  %5267 = vst [vmem:[#allocation14 + $0x1c] sm:$0xf] %v5251_v36 }
 0x600   :  { %5272 = vsyncadd [#allocation4], 448  ;;  %s7012_s6 = smov [#allocation14]  }
 0x601   :  { %s5273_s14 = sshll.u32 %s7012_s6, 4  ;;  %s5274_s14 = int_to_ptr.vmem [resolvable:$true] %s5273_s14 }
 0x602   :  { %s6968_s3 = scalar_lea.vmem %s5274_s14, 64  ;;  %s6972_s15 = scalar_lea.vmem %s5274_s14, 512 }
 0x603   :  { %p6969_p0 = scmp.ne.s32.totalorder %s5274_s14, %s6968_s3  ;;  %p6973_p1 = scmp.lt.s32.totalorder %s5274_s14, %s5274_s14 }
 0x604   :  { %p6974_p2 = scmp.lt.s32.totalorder %s6972_s15, %s6968_s3 }
 0x606   :  { %p6975_p3 = por %p6974_p2, %p6973_p1 }
 0x608   :  { %p6976_p4 = pnand %p6975_p3, %p6969_p0 }
 0x60a   :  { %6979 = shalt.err (!%p6976_p4)
}
 0x60b   :  { %s6980_s17 = scalar_lea.hbm %s7619_s7, 64 }
 0x60c   :  { %p6981_p5 = scmp.ne.s32.totalorder %s7619_s7, %s6980_s17  ;;  %p6984_p6 = scmp.lt.u32.totalorder %s6980_s17, %s7619_s7 }
 0x60e   :  { %p6986_p7 = pnand %p6984_p6, %p6981_p5 }
 0x610   :  { %6989 = shalt.err (!%p6986_p7)
}
 0x611   :  { %s7013_s23 = smov 4  }
 0x612   :  { %5279 = dma.vmem_to_hbm [thread:$0]  %s5274_s14, 64, %s7619_s7, [#allocation4], %s7007_s12, %s7007_s12, %s7013_s23  }
 0x613   :  { %6998 = dma.done.wait [#allocation4], 512  }
 0x614   :  { %6999 = vsyncadd [#allocation4], 4294966784 }
 0x615   :  { %5283 = vsyncpa [#allocation3], 1 }
 0x616   :  { %5284 = vsyncpa [#allocation6], 1 }
 0x617   :  { %5285 = vsyncpa [#allocation9], 1 }
 0x618   :  { %5286 = vsyncpa [#allocation12], 1 }
 0x619   :  { %5287 = vsyncpa [#allocation4], 1 }

</bundles_post_ra>
